<compile_context>
chip_gen: v5e
topology: v5e:2x2
jax: 0.10.0
libtpu: 0.0.40
codegen_flags: <defaults>
</compile_context>

<pallas_src>
import functools

import jax
import jax.numpy as jnp
from jax.experimental import pallas as pl
from jax.experimental.pallas import tpu as pltpu

BN_EPS = 1e-5


def _round_up(x, m):
    return (x + m - 1) // m * m


@functools.partial(jax.jit, static_argnames=("upscale_factor",))
def duc_forward(x_nchw, weight_oihw, gamma, beta, upscale_factor=2):
    """DUC forward: conv3x3(pad=1) -> BN (training stats) -> ReLU -> PixelShuffle(r)."""
    N, Cin, H, W = x_nchw.shape
    Cout = weight_oihw.shape[0]
    r = upscale_factor
    assert Cout % (r * r) == 0

    COUTP = _round_up(Cout, 128)          # lane-dense padded channel count
    Wp = W + 2                            # padded width (conv padding = 1)
    MROWS = H * Wp                        # padded-width flattened output rows / image
    MROWS_P = _round_up(MROWS, 8)
    XROWS_P = _round_up(2 * Wp + 2 + MROWS_P, 8)   # flat padded-input rows / image
    M_VALID = N * H * W                   # rows that enter the BN statistics
    orig_dtype = x_nchw.dtype

    # ---------------- XLA layout glue (reads x exactly once, no 9x blowup) ---------------
    x = jnp.transpose(x_nchw, (0, 2, 3, 1))                    # (N, H, W, Cin)
    xp = jnp.pad(x, ((0, 0), (1, 1), (1, 1), (0, 0)))          # (N, H+2, Wp, Cin)
    xflat = xp.reshape(N, (H + 2) * Wp, Cin)
    xflat = jnp.pad(xflat, ((0, 0), (0, XROWS_P - (H + 2) * Wp), (0, 0)))
    xflat = xflat.reshape(N * XROWS_P, Cin)                    # (N*XROWS_P, Cin)

    # PyTorch weight (Cout, Cin, 3, 3) -> (9, Cin, COUTP), tap-major, zero-padded channels.
    w9 = jnp.transpose(weight_oihw, (2, 3, 1, 0)).reshape(9, Cin, Cout)
    w9 = jnp.pad(w9, ((0, 0), (0, 0), (0, COUTP - Cout))).astype(orig_dtype)

    # Row-validity mask: padded columns (w_pad >= W) and tail-padding rows must
    # not contribute to the BatchNorm batch statistics.
    rows = jnp.arange(MROWS_P)
    valid = ((rows % Wp) < W) & (rows < MROWS)
    mask = valid.astype(jnp.float32).reshape(MROWS_P, 1)

    # ------------- Pass 1: conv as 9 shifted matmuls + global BN-stat accumulation -------------
    def conv_stats_kernel(x_ref, w_ref, mask_ref, y_ref, stats_ref):
        # 3x3 conv: sum over taps of row-shifted (MROWS_P, Cin) @ (Cin, COUTP) on the MXU.
        acc = jnp.zeros((MROWS_P, COUTP), jnp.float32)
        for t in range(9):
            dh, dw = divmod(t, 3)
            off = dh * Wp + dw
            xs = x_ref[off:off + MROWS_P, :]                       # (MROWS_P, Cin)
            acc = acc + jnp.dot(xs, w_ref[t, :, :],
                                preferred_element_type=jnp.float32)
        y_ref[...] = acc

        # Training-mode BN needs GLOBAL stats: accumulate masked per-channel
        # sum and sum-of-squares across the whole grid (axis is "arbitrary").
        @pl.when(pl.program_id(0) == 0)
        def _init():
            stats_ref[...] = jnp.zeros_like(stats_ref)

        m = mask_ref[...]                                          # (MROWS_P, 1)
        masked = acc * m
        s1 = jnp.sum(masked, axis=0, keepdims=True)                # (1, COUTP)
        s2 = jnp.sum(masked * acc, axis=0, keepdims=True)          # (1, COUTP)
        stats_ref[0:1, :] = stats_ref[0:1, :] + s1
        stats_ref[1:2, :] = stats_ref[1:2, :] + s2

    y, stats = pl.pallas_call(
        conv_stats_kernel,
        grid=(N,),
        in_specs=[
            pl.BlockSpec((XROWS_P, Cin), lambda n: (n, 0)),        # streamed per image
            pl.BlockSpec((9, Cin, COUTP), lambda n: (0, 0, 0)),    # resident weights
            pl.BlockSpec((MROWS_P, 1), lambda n: (0, 0)),          # resident mask
        ],
        out_specs=[
            pl.BlockSpec((MROWS_P, COUTP), lambda n: (n, 0)),      # conv rows (lane-dense)
            pl.BlockSpec((2, COUTP), lambda n: (0, 0)),            # sum / sumsq accumulator
        ],
        out_shape=[
            jax.ShapeDtypeStruct((N * MROWS_P, COUTP), jnp.float32),
            jax.ShapeDtypeStruct((2, COUTP), jnp.float32),
        ],
        compiler_params=pltpu.CompilerParams(
            dimension_semantics=("arbitrary",)),   # stats accumulate across grid steps
    )(xflat, w9, mask)

    # Fold BN into one FMA: scale = gamma*rsqrt(var+eps), shift = beta - mean*scale.
    mean = stats[0] / M_VALID
    var = jnp.maximum(stats[1] / M_VALID - mean * mean, 0.0)       # biased (training) variance
    gamma_p = jnp.pad(gamma.astype(jnp.float32), (0, COUTP - Cout))
    beta_p = jnp.pad(beta.astype(jnp.float32), (0, COUTP - Cout))
    scale_v = gamma_p * jax.lax.rsqrt(var + BN_EPS)
    shift_v = beta_p - mean * scale_v
    scale = scale_v.reshape(1, COUTP)
    shift = shift_v.reshape(1, COUTP)

    # ------------- Pass 2: single fused multiply-add + ReLU (lane-dense sweep) -------------
    def bn_relu_kernel(y_ref, scale_ref, shift_ref, o_ref):
        o_ref[...] = jnp.maximum(y_ref[...] * scale_ref[...] + shift_ref[...], 0.0)

    out = pl.pallas_call(
        bn_relu_kernel,
        grid=(N,),
        in_specs=[
            pl.BlockSpec((MROWS_P, COUTP), lambda n: (n, 0)),
            pl.BlockSpec((1, COUTP), lambda n: (0, 0)),
            pl.BlockSpec((1, COUTP), lambda n: (0, 0)),
        ],
        out_specs=pl.BlockSpec((MROWS_P, COUTP), lambda n: (n, 0)),
        out_shape=jax.ShapeDtypeStruct((N * MROWS_P, COUTP), jnp.float32),
        compiler_params=pltpu.CompilerParams(
            dimension_semantics=("parallel",)),    # independent rows -> megacore-shardable
    )(y, scale, shift)

    # ---------------- XLA layout glue: drop padding, PixelShuffle(r), back to NCHW ----------------
    # TODO(synk): folding the PixelShuffle scatter into the pass-2 output index_map
    #             would save one HBM round trip; kept as XLA layout glue here.
    out = out.reshape(N, MROWS_P, COUTP)[:, :MROWS, :Cout]
    out = out.reshape(N, H, Wp, Cout)[:, :, :W, :]                 # (N, H, W, Cout)
    Cps = Cout // (r * r)
    out = out.reshape(N, H, W, Cps, r, r)
    out = jnp.transpose(out, (0, 1, 4, 2, 5, 3)).reshape(N, H * r, W * r, Cps)
    return jnp.transpose(out, (0, 3, 1, 2)).astype(orig_dtype)     # NCHW


def duc_reference(x_nchw, weight_oihw, gamma, beta, upscale_factor=2):
    """Pure-JAX reference matching the PyTorch module's forward (training-mode BN)."""
    r = upscale_factor
    y = jax.lax.conv_general_dilated(
        x_nchw, weight_oihw, window_strides=(1, 1), padding=((1, 1), (1, 1)),
        dimension_numbers=("NCHW", "OIHW", "NCHW"),
        precision=jax.lax.Precision.HIGHEST)
    mean = jnp.mean(y, axis=(0, 2, 3), keepdims=True)
    var = jnp.mean((y - mean) ** 2, axis=(0, 2, 3), keepdims=True)
    y = (y - mean) * jax.lax.rsqrt(var + BN_EPS)
    y = y * gamma.reshape(1, -1, 1, 1) + beta.reshape(1, -1, 1, 1)
    y = jnp.maximum(y, 0.0)
    N, C, H, W = y.shape
    Cps = C // (r * r)
    y = y.reshape(N, Cps, r, r, H, W)
    y = jnp.transpose(y, (0, 1, 4, 2, 5, 3)).reshape(N, Cps, H * r, W * r)
    return y


if __name__ == "__main__":
    key = jax.random.PRNGKey(0)
    kx, kw, kg, kb = jax.random.split(key, 4)

    # Shapes consistent with DUC(in_dim=4, upsample_dim=16, upscale_factor=2)
    N, Cin, H, W = 2, 4, 16, 16
    upsample_dim, r = 16, 2

    x = jax.random.normal(kx, (N, Cin, H, W), jnp.float32)
    weight = jax.random.normal(kw, (upsample_dim, Cin, 3, 3), jnp.float32) * 0.1
    gamma = 1.0 + 0.1 * jax.random.normal(kg, (upsample_dim,), jnp.float32)
    beta = 0.1 * jax.random.normal(kb, (upsample_dim,), jnp.float32)

    out = duc_forward(x, weight, gamma, beta, upscale_factor=r)
    out = jax.block_until_ready(out)

    expected_shape = (N, upsample_dim // (r * r), H * r, W * r)
    assert out.shape == expected_shape, (out.shape, expected_shape)
    assert bool(jnp.all(out >= 0.0))                    # ReLU post-condition

    ref = duc_reference(x, weight, gamma, beta, upscale_factor=r)
    max_err = float(jnp.max(jnp.abs(out - ref)))
    assert max_err < 1e-2, max_err

    print("KERNEL_OK")
</pallas_src>

<mosaic_0001>
module attributes {stable_mosaic.version = 11 : i64} {
  func.func @conv_stats_kernel(%arg0: i32, %arg1: memref<328x4xf32, #tpu.memory_space<vmem>>, %arg2: memref<9x4x128xf32, #tpu.memory_space<vmem>>, %arg3: memref<288x1xf32, #tpu.memory_space<vmem>>, %arg4: memref<288x128xf32, #tpu.memory_space<vmem>>, %arg5: memref<2x128xf32, #tpu.memory_space<vmem>>) attributes {dimension_semantics = [#tpu.dimension_semantics<arbitrary>], iteration_bounds = array<i64: 2>, scalar_prefetch = 0 : i64, scratch_operands = 0 : i64, tpu.core_type = #tpu.core_type<tc>, window_params = [{transform_indices = @transform_0, window_bounds = array<i64: 328, 4>}, {pipeline_mode = #tpu.pipeline_mode<synchronous>, transform_indices = @transform_1, window_bounds = array<i64: 9, 4, 128>}, {pipeline_mode = #tpu.pipeline_mode<synchronous>, transform_indices = @transform_2, window_bounds = array<i64: 288, 1>}, {transform_indices = @transform_3, window_bounds = array<i64: 288, 128>}, {pipeline_mode = #tpu.pipeline_mode<synchronous>, transform_indices = @transform_4, window_bounds = array<i64: 2, 128>}]} {
    %cst = arith.constant 0.000000e+00 : f32
    %0 = vector.broadcast %cst : f32 to vector<288x128xf32>
    %c0 = arith.constant 0 : index
    %c0_0 = arith.constant 0 : index
    %1 = vector.load %arg1[%c0, %c0_0] : memref<328x4xf32, #tpu.memory_space<vmem>>, vector<288x4xf32>
    %c0_1 = arith.constant 0 : index
    %c0_2 = arith.constant 0 : index
    %c0_3 = arith.constant 0 : index
    %2 = vector.load %arg2[%c0_1, %c0_2, %c0_3] : memref<9x4x128xf32, #tpu.memory_space<vmem>>, vector<1x4x128xf32>
    %3 = vector.shape_cast %2 : vector<1x4x128xf32> to vector<4x128xf32>
    %cst_4 = arith.constant dense<0.000000e+00> : vector<288x128xf32>
    %4 = tpu.matmul %1, %3, %cst_4 {dimension_numbers = #tpu.dot_dimension_numbers<[1], [0], [0], [1], [0, 0, 1, 1], [], []>} : vector<288x4xf32>, vector<4x128xf32>, vector<288x128xf32> -> vector<288x128xf32>
    %5 = arith.addf %0, %4 : vector<288x128xf32>
    %c1 = arith.constant 1 : index
    %c0_5 = arith.constant 0 : index
    %6 = vector.load %arg1[%c1, %c0_5] : memref<328x4xf32, #tpu.memory_space<vmem>>, vector<288x4xf32>
    %c1_6 = arith.constant 1 : index
    %c0_7 = arith.constant 0 : index
    %c0_8 = arith.constant 0 : index
    %7 = vector.load %arg2[%c1_6, %c0_7, %c0_8] : memref<9x4x128xf32, #tpu.memory_space<vmem>>, vector<1x4x128xf32>
    %8 = vector.shape_cast %7 : vector<1x4x128xf32> to vector<4x128xf32>
    %cst_9 = arith.constant dense<0.000000e+00> : vector<288x128xf32>
    %9 = tpu.matmul %6, %8, %cst_9 {dimension_numbers = #tpu.dot_dimension_numbers<[1], [0], [0], [1], [0, 0, 1, 1], [], []>} : vector<288x4xf32>, vector<4x128xf32>, vector<288x128xf32> -> vector<288x128xf32>
    %10 = arith.addf %5, %9 : vector<288x128xf32>
    %c2 = arith.constant 2 : index
    %c0_10 = arith.constant 0 : index
    %11 = vector.load %arg1[%c2, %c0_10] : memref<328x4xf32, #tpu.memory_space<vmem>>, vector<288x4xf32>
    %c2_11 = arith.constant 2 : index
    %c0_12 = arith.constant 0 : index
    %c0_13 = arith.constant 0 : index
    %12 = vector.load %arg2[%c2_11, %c0_12, %c0_13] : memref<9x4x128xf32, #tpu.memory_space<vmem>>, vector<1x4x128xf32>
    %13 = vector.shape_cast %12 : vector<1x4x128xf32> to vector<4x128xf32>
    %cst_14 = arith.constant dense<0.000000e+00> : vector<288x128xf32>
    %14 = tpu.matmul %11, %13, %cst_14 {dimension_numbers = #tpu.dot_dimension_numbers<[1], [0], [0], [1], [0, 0, 1, 1], [], []>} : vector<288x4xf32>, vector<4x128xf32>, vector<288x128xf32> -> vector<288x128xf32>
    %15 = arith.addf %10, %14 : vector<288x128xf32>
    %c18 = arith.constant 18 : index
    %c0_15 = arith.constant 0 : index
    %16 = vector.load %arg1[%c18, %c0_15] : memref<328x4xf32, #tpu.memory_space<vmem>>, vector<288x4xf32>
    %c3 = arith.constant 3 : index
    %c0_16 = arith.constant 0 : index
    %c0_17 = arith.constant 0 : index
    %17 = vector.load %arg2[%c3, %c0_16, %c0_17] : memref<9x4x128xf32, #tpu.memory_space<vmem>>, vector<1x4x128xf32>
    %18 = vector.shape_cast %17 : vector<1x4x128xf32> to vector<4x128xf32>
    %cst_18 = arith.constant dense<0.000000e+00> : vector<288x128xf32>
    %19 = tpu.matmul %16, %18, %cst_18 {dimension_numbers = #tpu.dot_dimension_numbers<[1], [0], [0], [1], [0, 0, 1, 1], [], []>} : vector<288x4xf32>, vector<4x128xf32>, vector<288x128xf32> -> vector<288x128xf32>
    %20 = arith.addf %15, %19 : vector<288x128xf32>
    %c19 = arith.constant 19 : index
    %c0_19 = arith.constant 0 : index
    %21 = vector.load %arg1[%c19, %c0_19] : memref<328x4xf32, #tpu.memory_space<vmem>>, vector<288x4xf32>
    %c4 = arith.constant 4 : index
    %c0_20 = arith.constant 0 : index
    %c0_21 = arith.constant 0 : index
    %22 = vector.load %arg2[%c4, %c0_20, %c0_21] : memref<9x4x128xf32, #tpu.memory_space<vmem>>, vector<1x4x128xf32>
    %23 = vector.shape_cast %22 : vector<1x4x128xf32> to vector<4x128xf32>
    %cst_22 = arith.constant dense<0.000000e+00> : vector<288x128xf32>
    %24 = tpu.matmul %21, %23, %cst_22 {dimension_numbers = #tpu.dot_dimension_numbers<[1], [0], [0], [1], [0, 0, 1, 1], [], []>} : vector<288x4xf32>, vector<4x128xf32>, vector<288x128xf32> -> vector<288x128xf32>
    %25 = arith.addf %20, %24 : vector<288x128xf32>
    %c20 = arith.constant 20 : index
    %c0_23 = arith.constant 0 : index
    %26 = vector.load %arg1[%c20, %c0_23] : memref<328x4xf32, #tpu.memory_space<vmem>>, vector<288x4xf32>
    %c5 = arith.constant 5 : index
    %c0_24 = arith.constant 0 : index
    %c0_25 = arith.constant 0 : index
    %27 = vector.load %arg2[%c5, %c0_24, %c0_25] : memref<9x4x128xf32, #tpu.memory_space<vmem>>, vector<1x4x128xf32>
    %28 = vector.shape_cast %27 : vector<1x4x128xf32> to vector<4x128xf32>
    %cst_26 = arith.constant dense<0.000000e+00> : vector<288x128xf32>
    %29 = tpu.matmul %26, %28, %cst_26 {dimension_numbers = #tpu.dot_dimension_numbers<[1], [0], [0], [1], [0, 0, 1, 1], [], []>} : vector<288x4xf32>, vector<4x128xf32>, vector<288x128xf32> -> vector<288x128xf32>
    %30 = arith.addf %25, %29 : vector<288x128xf32>
    %c36 = arith.constant 36 : index
    %c0_27 = arith.constant 0 : index
    %31 = vector.load %arg1[%c36, %c0_27] : memref<328x4xf32, #tpu.memory_space<vmem>>, vector<288x4xf32>
    %c6 = arith.constant 6 : index
    %c0_28 = arith.constant 0 : index
    %c0_29 = arith.constant 0 : index
    %32 = vector.load %arg2[%c6, %c0_28, %c0_29] : memref<9x4x128xf32, #tpu.memory_space<vmem>>, vector<1x4x128xf32>
    %33 = vector.shape_cast %32 : vector<1x4x128xf32> to vector<4x128xf32>
    %cst_30 = arith.constant dense<0.000000e+00> : vector<288x128xf32>
    %34 = tpu.matmul %31, %33, %cst_30 {dimension_numbers = #tpu.dot_dimension_numbers<[1], [0], [0], [1], [0, 0, 1, 1], [], []>} : vector<288x4xf32>, vector<4x128xf32>, vector<288x128xf32> -> vector<288x128xf32>
    %35 = arith.addf %30, %34 : vector<288x128xf32>
    %c37 = arith.constant 37 : index
    %c0_31 = arith.constant 0 : index
    %36 = vector.load %arg1[%c37, %c0_31] : memref<328x4xf32, #tpu.memory_space<vmem>>, vector<288x4xf32>
    %c7 = arith.constant 7 : index
    %c0_32 = arith.constant 0 : index
    %c0_33 = arith.constant 0 : index
    %37 = vector.load %arg2[%c7, %c0_32, %c0_33] : memref<9x4x128xf32, #tpu.memory_space<vmem>>, vector<1x4x128xf32>
    %38 = vector.shape_cast %37 : vector<1x4x128xf32> to vector<4x128xf32>
    %cst_34 = arith.constant dense<0.000000e+00> : vector<288x128xf32>
    %39 = tpu.matmul %36, %38, %cst_34 {dimension_numbers = #tpu.dot_dimension_numbers<[1], [0], [0], [1], [0, 0, 1, 1], [], []>} : vector<288x4xf32>, vector<4x128xf32>, vector<288x128xf32> -> vector<288x128xf32>
    %40 = arith.addf %35, %39 : vector<288x128xf32>
    %c38 = arith.constant 38 : index
    %c0_35 = arith.constant 0 : index
    %41 = vector.load %arg1[%c38, %c0_35] : memref<328x4xf32, #tpu.memory_space<vmem>>, vector<288x4xf32>
    %c8 = arith.constant 8 : index
    %c0_36 = arith.constant 0 : index
    %c0_37 = arith.constant 0 : index
    %42 = vector.load %arg2[%c8, %c0_36, %c0_37] : memref<9x4x128xf32, #tpu.memory_space<vmem>>, vector<1x4x128xf32>
    %43 = vector.shape_cast %42 : vector<1x4x128xf32> to vector<4x128xf32>
    %cst_38 = arith.constant dense<0.000000e+00> : vector<288x128xf32>
    %44 = tpu.matmul %41, %43, %cst_38 {dimension_numbers = #tpu.dot_dimension_numbers<[1], [0], [0], [1], [0, 0, 1, 1], [], []>} : vector<288x4xf32>, vector<4x128xf32>, vector<288x128xf32> -> vector<288x128xf32>
    %45 = arith.addf %40, %44 : vector<288x128xf32>
    %c0_39 = arith.constant 0 : index
    %c0_40 = arith.constant 0 : index
    %46 = vector.load %arg4[%c0_39, %c0_40] : memref<288x128xf32, #tpu.memory_space<vmem>>, vector<288x128xf32>
    tpu.vector_store %arg4[%c0_39, %c0_40], %45 {strides = array<i32>} : memref<288x128xf32, #tpu.memory_space<vmem>>, vector<288x128xf32>,
    %c0_i32 = arith.constant 0 : i32
    %47 = arith.cmpi eq, %arg0, %c0_i32 : i32
    %48 = arith.extui %47 : i1 to i32
    %c0_i32_41 = arith.constant 0 : i32
    %49 = arith.cmpi ne, %48, %c0_i32_41 : i32
    scf.if %49 {
      %cst_54 = arith.constant 0.000000e+00 : f32
      %64 = vector.broadcast %cst_54 : f32 to vector<2x128xf32>
      %c0_55 = arith.constant 0 : index
      %c0_56 = arith.constant 0 : index
      %65 = vector.load %arg5[%c0_55, %c0_56] : memref<2x128xf32, #tpu.memory_space<vmem>>, vector<2x128xf32>
      tpu.vector_store %arg5[%c0_55, %c0_56], %64 {strides = array<i32>} : memref<2x128xf32, #tpu.memory_space<vmem>>, vector<2x128xf32>,
    } else {
    }
    %c0_42 = arith.constant 0 : index
    %c0_43 = arith.constant 0 : index
    %50 = vector.load %arg3[%c0_42, %c0_43] : memref<288x1xf32, #tpu.memory_space<vmem>>, vector<288x1xf32>
    %51 = vector.broadcast %50 : vector<288x1xf32> to vector<288x128xf32>
    %52 = arith.mulf %45, %51 : vector<288x128xf32>
    %cst_44 = arith.constant dense<0.000000e+00> : vector<128xf32>
    %53 = vector.multi_reduction <add>, %52, %cst_44 [0] : vector<288x128xf32> to vector<128xf32>
    %54 = vector.shape_cast %53 : vector<128xf32> to vector<1x128xf32>
    %55 = arith.mulf %52, %45 : vector<288x128xf32>
    %cst_45 = arith.constant dense<0.000000e+00> : vector<128xf32>
    %56 = vector.multi_reduction <add>, %55, %cst_45 [0] : vector<288x128xf32> to vector<128xf32>
    %57 = vector.shape_cast %56 : vector<128xf32> to vector<1x128xf32>
    %c0_46 = arith.constant 0 : index
    %c0_47 = arith.constant 0 : index
    %58 = vector.load %arg5[%c0_46, %c0_47] : memref<2x128xf32, #tpu.memory_space<vmem>>, vector<1x128xf32>
    %59 = arith.addf %58, %54 : vector<1x128xf32>
    %c0_48 = arith.constant 0 : index
    %c0_49 = arith.constant 0 : index
    %60 = vector.load %arg5[%c0_48, %c0_49] : memref<2x128xf32, #tpu.memory_space<vmem>>, vector<1x128xf32>
    tpu.vector_store %arg5[%c0_48, %c0_49], %59 {strides = array<i32>} : memref<2x128xf32, #tpu.memory_space<vmem>>, vector<1x128xf32>,
    %c1_50 = arith.constant 1 : index
    %c0_51 = arith.constant 0 : index
    %61 = vector.load %arg5[%c1_50, %c0_51] : memref<2x128xf32, #tpu.memory_space<vmem>>, vector<1x128xf32>
    %62 = arith.addf %61, %57 : vector<1x128xf32>
    %c1_52 = arith.constant 1 : index
    %c0_53 = arith.constant 0 : index
    %63 = vector.load %arg5[%c1_52, %c0_53] : memref<2x128xf32, #tpu.memory_space<vmem>>, vector<1x128xf32>
    tpu.vector_store %arg5[%c1_52, %c0_53], %62 {strides = array<i32>} : memref<2x128xf32, #tpu.memory_space<vmem>>, vector<1x128xf32>,
    return
  }
  func.func @transform_0(%arg0: i32) -> (i32, i32) {
    %c0_i32 = arith.constant 0 : i32
    %c0_i32_0 = arith.constant 0 : i32
    return %arg0, %c0_i32 : i32, i32
  }
  func.func @transform_1(%arg0: i32) -> (i32, i32, i32) {
    %c0_i32 = arith.constant 0 : i32
    %c0_i32_0 = arith.constant 0 : i32
    %c0_i32_1 = arith.constant 0 : i32
    %c0_i32_2 = arith.constant 0 : i32
    return %c0_i32, %c0_i32_0, %c0_i32_1 : i32, i32, i32
  }
  func.func @transform_2(%arg0: i32) -> (i32, i32) {
    %c0_i32 = arith.constant 0 : i32
    %c0_i32_0 = arith.constant 0 : i32
    %c0_i32_1 = arith.constant 0 : i32
    return %c0_i32, %c0_i32_0 : i32, i32
  }
  func.func @transform_3(%arg0: i32) -> (i32, i32) {
    %c0_i32 = arith.constant 0 : i32
    %c0_i32_0 = arith.constant 0 : i32
    return %arg0, %c0_i32 : i32, i32
  }
  func.func @transform_4(%arg0: i32) -> (i32, i32) {
    %c0_i32 = arith.constant 0 : i32
    %c0_i32_0 = arith.constant 0 : i32
    %c0_i32_1 = arith.constant 0 : i32
    return %c0_i32, %c0_i32_0 : i32, i32
  }
}

module attributes {stable_mosaic.version = 11 : i64} {
  func.func @bn_relu_kernel(%arg0: i32, %arg1: memref<288x128xf32, #tpu.memory_space<vmem>>, %arg2: memref<1x128xf32, #tpu.memory_space<vmem>>, %arg3: memref<1x128xf32, #tpu.memory_space<vmem>>, %arg4: memref<288x128xf32, #tpu.memory_space<vmem>>) attributes {dimension_semantics = [#tpu.dimension_semantics<parallel>], iteration_bounds = array<i64: 2>, scalar_prefetch = 0 : i64, scratch_operands = 0 : i64, tpu.core_type = #tpu.core_type<tc>, window_params = [{transform_indices = @transform_0, window_bounds = array<i64: 288, 128>}, {pipeline_mode = #tpu.pipeline_mode<synchronous>, transform_indices = @transform_1, window_bounds = array<i64: 1, 128>}, {pipeline_mode = #tpu.pipeline_mode<synchronous>, transform_indices = @transform_2, window_bounds = array<i64: 1, 128>}, {transform_indices = @transform_3, window_bounds = array<i64: 288, 128>}]} {
    %c0 = arith.constant 0 : index
    %c0_0 = arith.constant 0 : index
    %0 = vector.load %arg1[%c0, %c0_0] : memref<288x128xf32, #tpu.memory_space<vmem>>, vector<288x128xf32>
    %c0_1 = arith.constant 0 : index
    %c0_2 = arith.constant 0 : index
    %1 = vector.load %arg2[%c0_1, %c0_2] : memref<1x128xf32, #tpu.memory_space<vmem>>, vector<1x128xf32>
    %2 = vector.broadcast %1 : vector<1x128xf32> to vector<288x128xf32>
    %3 = arith.mulf %0, %2 : vector<288x128xf32>
    %c0_3 = arith.constant 0 : index
    %c0_4 = arith.constant 0 : index
    %4 = vector.load %arg3[%c0_3, %c0_4] : memref<1x128xf32, #tpu.memory_space<vmem>>, vector<1x128xf32>
    %5 = vector.broadcast %4 : vector<1x128xf32> to vector<288x128xf32>
    %6 = arith.addf %3, %5 : vector<288x128xf32>
    %cst = arith.constant 0.000000e+00 : f32
    %7 = vector.broadcast %cst : f32 to vector<288x128xf32>
    %8 = arith.maximumf %6, %7 : vector<288x128xf32>
    %c0_5 = arith.constant 0 : index
    %c0_6 = arith.constant 0 : index
    %9 = vector.load %arg4[%c0_5, %c0_6] : memref<288x128xf32, #tpu.memory_space<vmem>>, vector<288x128xf32>
    tpu.vector_store %arg4[%c0_5, %c0_6], %8 {strides = array<i32>} : memref<288x128xf32, #tpu.memory_space<vmem>>, vector<288x128xf32>,
    return
  }
  func.func @transform_0(%arg0: i32) -> (i32, i32) {
    %c0_i32 = arith.constant 0 : i32
    %c0_i32_0 = arith.constant 0 : i32
    return %arg0, %c0_i32 : i32, i32
  }
  func.func @transform_1(%arg0: i32) -> (i32, i32) {
    %c0_i32 = arith.constant 0 : i32
    %c0_i32_0 = arith.constant 0 : i32
    %c0_i32_1 = arith.constant 0 : i32
    return %c0_i32, %c0_i32_0 : i32, i32
  }
  func.func @transform_2(%arg0: i32) -> (i32, i32) {
    %c0_i32 = arith.constant 0 : i32
    %c0_i32_0 = arith.constant 0 : i32
    %c0_i32_1 = arith.constant 0 : i32
    return %c0_i32, %c0_i32_0 : i32, i32
  }
  func.func @transform_3(%arg0: i32) -> (i32, i32) {
    %c0_i32 = arith.constant 0 : i32
    %c0_i32_0 = arith.constant 0 : i32
    return %arg0, %c0_i32 : i32, i32
  }
}

</mosaic_0001>

<bundles_post_ra>
// kernel: duc_forward.3
= control target key start
LH: loop header
LB: loop body
LE: loop exit
PB: predicated region body
PF: predicated region fallthrough
CT: control target
= control target key end

     0   :  { %s465_s12 = smov 0   ;;  %s640_s0 = inlined_call_operand.vmem [shape: f32[576,128], index: 0, kind: input, shape index: {}]   ;;  %s641_s1 = inlined_call_operand.vmem [shape: f32[1,128], index: 1, kind: input, shape index: {}]   ;;  %s642_s2 = inlined_call_operand.vmem [shape: f32[1,128], index: 2, kind: input, shape index: {}]   ;;  %s643_s3 = inlined_call_operand.vmem [shape: f32[576,128], index: 3, kind: output, shape index: {}]  }
   0x1 LB: > { %s418_s13 = sadd.s32 4294967295, %s443_s12   ;;  %p422_p0 = scmp.ge.s32.totalorder %s443_s12, 1  ;;  %s443_s12 = sphi %s465_s12, %s13_s12  }
   0x2   : > { %p138_p1 = scmp.lt.s32.totalorder %s443_s12, 3 }
   0x4   : > { %p139_p2 = pnand %p422_p0, %p138_p1 }
   0x5   : > { %s162_s14 = smul.u32 (!%p139_p2), 36, %s418_s13 }
   0x6   : > { %142 = sbr.rel (%p139_p2) target bundleno = 57 (0x39), region = 32 }
   0x7   : > { %p163_p3 = scmp.lt.s32.totalorder (!%p139_p2), %s162_s14, 71 }
   0xb   : > { %s645_s14 = smov (!%p163_p3, %s162_s14), 71  ;;  %v476_v0 = vld [vmem:[%s641_s1] ss:$0 sm:$0xff] }
   0xc   : > { %s423_s17 = sshll.u32 %s645_s14, 3  ;;  %v486_v1 = vld [vmem:[%s642_s2] ss:$0 sm:$0xff] }
   0xd   : > { %s481_s20 = scalar_lea.vmem %s640_s0, %s423_s17  ;;  %s509_s25 = scalar_lea.vmem %s643_s3, %s423_s17 }
   0xe   : > { %v174_v2 = vld [vmem:[%s481_s20] sm:$0xff]  ;;  %v175_v3 = vld [vmem:[%s481_s20 + $0x8] sm:$0xff]  ;;  %v176_v4 = vld [vmem:[%s481_s20 + $0x10] sm:$0xff] }
   0xf   : > { %v214_v5 = vmul.f32 %v476_v0, %v174_v2  ;;  %v215_v6 = vmul.f32 %v476_v0, %v175_v3  ;;  %v216_v7 = vmul.f32 %v476_v0, %v176_v4  ;;  %v177_v8 = vld [vmem:[%s481_s20 + $0x18] sm:$0xff]  ;;  %v178_v9 = vld [vmem:[%s481_s20 + $0x20] sm:$0xff]  ;;  %v179_v10 = vld [vmem:[%s481_s20 + $0x28] sm:$0xff] }
  0x10   : > { %v217_v11 = vmul.f32 %v476_v0, %v177_v8  ;;  %v218_v12 = vmul.f32 %v476_v0, %v178_v9  ;;  %v219_v13 = vmul.f32 %v476_v0, %v179_v10  ;;  %v180_v14 = vld [vmem:[%s481_s20 + $0x30] sm:$0xff]  ;;  %v181_v15 = vld [vmem:[%s481_s20 + $0x38] sm:$0xff]  ;;  %v182_v24 = vld [vmem:[%s481_s20 + $0x40] sm:$0xff] }
  0x11   : > { %v254_v16 = vadd.f32 %v486_v1, %v214_v5  ;;  %v255_v17 = vadd.f32 %v486_v1, %v215_v6  ;;  %v256_v18 = vadd.f32 %v486_v1, %v216_v7  ;;  %v220_v19 = vmul.f32 %v476_v0, %v180_v14  ;;  %v183_v25 = vld [vmem:[%s481_s20 + $0x48] sm:$0xff]  ;;  %v184_v26 = vld [vmem:[%s481_s20 + $0x50] sm:$0xff]  ;;  %v185_v31 = vld [vmem:[%s481_s20 + $0x58] sm:$0xff] }
  0x12   : > { %v257_v20 = vadd.f32 %v486_v1, %v217_v11  ;;  %v258_v21 = vadd.f32 %v486_v1, %v218_v12  ;;  %v259_v22 = vadd.f32 %v486_v1, %v219_v13  ;;  %v221_v23 = vmul.f32 %v476_v0, %v181_v15  ;;  %v186_v32 = vld [vmem:[%s481_s20 + $0x60] sm:$0xff]  ;;  %v187_v33 = vld [vmem:[%s481_s20 + $0x68] sm:$0xff]  ;;  %v188_v37 = vld [vmem:[%s481_s20 + $0x70] sm:$0xff] }
  0x13   : > { %v290_v27 = vmax.f32 %v254_v16, 0.0  ;;  %v291_v28 = vmax.f32 %v255_v17, 0.0  ;;  %v292_v29 = vmax.f32 %v256_v18, 0.0  ;;  %v260_v30 = vadd.f32 %v486_v1, %v220_v19  ;;  %v189_v42 = vld [vmem:[%s481_s20 + $0x78] sm:$0xff]  ;;  %v190_v54 = vld [vmem:[%s481_s20 + $0x80] sm:$0xff]  ;;  %v191_v55 = vld [vmem:[%s481_s20 + $0x88] sm:$0xff] }
  0x14   : > { %v293_v34 = vmax.f32 %v257_v20, 0.0  ;;  %v294_v35 = vmax.f32 %v258_v21, 0.0  ;;  %v261_v36 = vadd.f32 %v486_v1, %v221_v23  ;;  %v295_v38 = vmax.f32 %v259_v22, 0.0  ;;  %v192_v56 = vld [vmem:[%s481_s20 + $0x90] sm:$0xff]  ;;  %v193_v59 = vld [vmem:[%s481_s20 + $0x98] sm:$0xff]  ;;  %v194_v63 = vld [vmem:[%s481_s20 + $0xa0] sm:$0xff] }
  0x15   : > { %326 = vst [vmem:[%s509_s25] sm:$0xff] %v290_v27  ;;  %v222_v39 = vmul.f32 %v476_v0, %v182_v24  ;;  %v223_v40 = vmul.f32 %v476_v0, %v183_v25  ;;  %v224_v41 = vmul.f32 %v476_v0, %v184_v26  ;;  %v296_v43 = vmax.f32 %v260_v30, 0.0  ;;  %v195_v6 = vld [vmem:[%s481_s20 + $0xa8] sm:$0xff]  ;;  %v196_v10 = vld [vmem:[%s481_s20 + $0xb0] sm:$0xff]  ;;  %v197_v14 = vld [vmem:[%s481_s20 + $0xb8] sm:$0xff] }
  0x16   : > { %327 = vst [vmem:[%s509_s25 + $0x8] sm:$0xff] %v291_v28  ;;  %v225_v44 = vmul.f32 %v476_v0, %v185_v31  ;;  %v226_v45 = vmul.f32 %v476_v0, %v186_v32  ;;  %v227_v46 = vmul.f32 %v476_v0, %v187_v33  ;;  %v228_v50 = vmul.f32 %v476_v0, %v188_v37  ;;  %v198_v18 = vld [vmem:[%s481_s20 + $0xc0] sm:$0xff]  ;;  %v199_v22 = vld [vmem:[%s481_s20 + $0xc8] sm:$0xff]  ;;  %v200_v26 = vld [vmem:[%s481_s20 + $0xd0] sm:$0xff] }
  0x17   : > { %328 = vst [vmem:[%s509_s25 + $0x10] sm:$0xff] %v292_v29  ;;  %v262_v47 = vadd.f32 %v486_v1, %v222_v39  ;;  %v263_v48 = vadd.f32 %v486_v1, %v223_v40  ;;  %v264_v49 = vadd.f32 %v486_v1, %v224_v41  ;;  %v297_v51 = vmax.f32 %v261_v36, 0.0  ;;  %v201_v30 = vld [vmem:[%s481_s20 + $0xd8] sm:$0xff] }
  0x18   : > { %329 = vst [vmem:[%s509_s25 + $0x18] sm:$0xff] %v293_v34  ;;  %v265_v52 = vadd.f32 %v486_v1, %v225_v44  ;;  %v229_v53 = vmul.f32 %v476_v0, %v189_v42  ;;  %v266_v58 = vadd.f32 %v486_v1, %v226_v45  ;;  %v267_v62 = vadd.f32 %v486_v1, %v227_v46  ;;  %v202_v34 = vld [vmem:[%s481_s20 + $0xe0] sm:$0xff]  ;;  %v204_v42 = vld [vmem:[%s481_s20 + $0xf0] sm:$0xff]  ;;  %v205_v46 = vld [vmem:[%s481_s20 + $0xf8] sm:$0xff] }
  0x19   : > { %330 = vst [vmem:[%s509_s25 + $0x20] sm:$0xff] %v294_v35  ;;  %v298_v57 = vmax.f32 %v262_v47, 0.0  ;;  %v299_v60 = vmax.f32 %v263_v48, 0.0  ;;  %v300_v61 = vmax.f32 %v264_v49, 0.0  ;;  %v268_v2 = vadd.f32 %v486_v1, %v228_v50  ;;  %v206_v50 = vld [vmem:[%s481_s20 + $0x100] sm:$0xff] }
  0x1a   : > { %331 = vst [vmem:[%s509_s25 + $0x28] sm:$0xff] %v295_v38  ;;  %v230_v3 = vmul.f32 %v476_v0, %v190_v54  ;;  %v231_v4 = vmul.f32 %v476_v0, %v191_v55  ;;  %v232_v5 = vmul.f32 %v476_v0, %v192_v56  ;;  %v301_v7 = vmax.f32 %v265_v52, 0.0  ;;  %v203_v38 = vld [vmem:[%s481_s20 + $0xe8] sm:$0xff] }
  0x1b   : > { %332 = vst [vmem:[%s509_s25 + $0x30] sm:$0xff] %v296_v43  ;;  %v269_v8 = vadd.f32 %v486_v1, %v229_v53  ;;  %v233_v9 = vmul.f32 %v476_v0, %v193_v59  ;;  %v302_v11 = vmax.f32 %v266_v58, 0.0  ;;  %v234_v13 = vmul.f32 %v476_v0, %v194_v63  ;;  %v207_v54 = vld [vmem:[%s481_s20 + $0x108] sm:$0xff]  ;;  %v208_v58 = vld [vmem:[%s481_s20 + $0x110] sm:$0xff] }
  0x1c   : > { %333 = vst [vmem:[%s509_s25 + $0x38] sm:$0xff] %v297_v51  ;;  %v270_v12 = vadd.f32 %v486_v1, %v230_v3  ;;  %v303_v15 = vmax.f32 %v267_v62, 0.0  ;;  %v271_v16 = vadd.f32 %v486_v1, %v231_v4  ;;  %v235_v17 = vmul.f32 %v476_v0, %v195_v6  ;;  %v209_v62 = vld [vmem:[%s481_s20 + $0x118] sm:$0xff] }
  0x1d   : > { %334 = vst [vmem:[%s509_s25 + $0x40] sm:$0xff] %v298_v57  ;;  %v304_v19 = vmax.f32 %v268_v2, 0.0  ;;  %v272_v20 = vadd.f32 %v486_v1, %v232_v5  ;;  %v236_v21 = vmul.f32 %v476_v0, %v196_v10  ;;  %v305_v23 = vmax.f32 %v269_v8, 0.0 }
  0x1e   : > { %335 = vst [vmem:[%s509_s25 + $0x48] sm:$0xff] %v299_v60  ;;  %v273_v24 = vadd.f32 %v486_v1, %v233_v9  ;;  %v237_v25 = vmul.f32 %v476_v0, %v197_v14  ;;  %v306_v27 = vmax.f32 %v270_v12, 0.0  ;;  %v274_v28 = vadd.f32 %v486_v1, %v234_v13 }
  0x1f   : > { %336 = vst [vmem:[%s509_s25 + $0x50] sm:$0xff] %v300_v61  ;;  %v238_v29 = vmul.f32 %v476_v0, %v198_v18  ;;  %v307_v31 = vmax.f32 %v271_v16, 0.0  ;;  %v275_v32 = vadd.f32 %v486_v1, %v235_v17  ;;  %v239_v33 = vmul.f32 %v476_v0, %v199_v22 }
  0x20   : > { %337 = vst [vmem:[%s509_s25 + $0x58] sm:$0xff] %v301_v7  ;;  %v308_v35 = vmax.f32 %v272_v20, 0.0  ;;  %v276_v36 = vadd.f32 %v486_v1, %v236_v21  ;;  %v240_v37 = vmul.f32 %v476_v0, %v200_v26  ;;  %v309_v39 = vmax.f32 %v273_v24, 0.0 }
  0x21   : > { %338 = vst [vmem:[%s509_s25 + $0x60] sm:$0xff] %v302_v11  ;;  %v277_v40 = vadd.f32 %v486_v1, %v237_v25  ;;  %v241_v41 = vmul.f32 %v476_v0, %v201_v30  ;;  %v310_v43 = vmax.f32 %v274_v28, 0.0  ;;  %v278_v44 = vadd.f32 %v486_v1, %v238_v29 }
  0x22   : > { %339 = vst [vmem:[%s509_s25 + $0x68] sm:$0xff] %v303_v15  ;;  %v242_v45 = vmul.f32 %v476_v0, %v202_v34  ;;  %v311_v47 = vmax.f32 %v275_v32, 0.0  ;;  %v279_v48 = vadd.f32 %v486_v1, %v239_v33  ;;  %v243_v49 = vmul.f32 %v476_v0, %v203_v38 }
  0x23   : > { %340 = vst [vmem:[%s509_s25 + $0x70] sm:$0xff] %v304_v19  ;;  %v312_v51 = vmax.f32 %v276_v36, 0.0  ;;  %v280_v52 = vadd.f32 %v486_v1, %v240_v37  ;;  %v244_v53 = vmul.f32 %v476_v0, %v204_v42  ;;  %v313_v55 = vmax.f32 %v277_v40, 0.0 }
  0x24   : > { %341 = vst [vmem:[%s509_s25 + $0x78] sm:$0xff] %v305_v23  ;;  %v281_v56 = vadd.f32 %v486_v1, %v241_v41  ;;  %v245_v57 = vmul.f32 %v476_v0, %v205_v46  ;;  %v314_v59 = vmax.f32 %v278_v44, 0.0  ;;  %v282_v60 = vadd.f32 %v486_v1, %v242_v45 }
  0x25   : > { %342 = vst [vmem:[%s509_s25 + $0x80] sm:$0xff] %v306_v27  ;;  %v246_v61 = vmul.f32 %v476_v0, %v206_v50  ;;  %v315_v63 = vmax.f32 %v279_v48, 0.0  ;;  %v283_v2 = vadd.f32 %v486_v1, %v243_v49  ;;  %v247_v3 = vmul.f32 %v476_v0, %v207_v54 }
  0x26   : > { %343 = vst [vmem:[%s509_s25 + $0x88] sm:$0xff] %v307_v31  ;;  %v316_v4 = vmax.f32 %v280_v52, 0.0  ;;  %v284_v5 = vadd.f32 %v486_v1, %v244_v53  ;;  %v248_v6 = vmul.f32 %v476_v0, %v208_v58  ;;  %v317_v7 = vmax.f32 %v281_v56, 0.0 }
  0x27   : > { %344 = vst [vmem:[%s509_s25 + $0x90] sm:$0xff] %v308_v35  ;;  %v285_v8 = vadd.f32 %v486_v1, %v245_v57  ;;  %v249_v9 = vmul.f32 %v476_v0, %v209_v62  ;;  %v318_v10 = vmax.f32 %v282_v60, 0.0  ;;  %v286_v11 = vadd.f32 %v486_v1, %v246_v61 }
  0x28   : > { %345 = vst [vmem:[%s509_s25 + $0x98] sm:$0xff] %v309_v39  ;;  %v319_v12 = vmax.f32 %v283_v2, 0.0  ;;  %v287_v13 = vadd.f32 %v486_v1, %v247_v3  ;;  %v320_v14 = vmax.f32 %v284_v5, 0.0  ;;  %v288_v15 = vadd.f32 %v486_v1, %v248_v6 }
  0x29   : > { %346 = vst [vmem:[%s509_s25 + $0xa0] sm:$0xff] %v310_v43  ;;  %v321_v0 = vmax.f32 %v285_v8, 0.0  ;;  %v289_v16 = vadd.f32 %v486_v1, %v249_v9  ;;  %v322_v17 = vmax.f32 %v286_v11, 0.0 }
  0x2a   : > { %347 = vst [vmem:[%s509_s25 + $0xa8] sm:$0xff] %v311_v47  ;;  %v323_v18 = vmax.f32 %v287_v13, 0.0  ;;  %v324_v19 = vmax.f32 %v288_v15, 0.0 }
  0x2b   : > { %348 = vst [vmem:[%s509_s25 + $0xb0] sm:$0xff] %v312_v51  ;;  %v325_v20 = vmax.f32 %v289_v16, 0.0 }
  0x2c   : > { %349 = vst [vmem:[%s509_s25 + $0xb8] sm:$0xff] %v313_v55 }
  0x2d   : > { %350 = vst [vmem:[%s509_s25 + $0xc0] sm:$0xff] %v314_v59 }
  0x2e   : > { %351 = vst [vmem:[%s509_s25 + $0xc8] sm:$0xff] %v315_v63 }
  0x2f   : > { %352 = vst [vmem:[%s509_s25 + $0xd0] sm:$0xff] %v316_v4 }
  0x30   : > { %353 = vst [vmem:[%s509_s25 + $0xd8] sm:$0xff] %v317_v7 }
  0x31   : > { %354 = vst [vmem:[%s509_s25 + $0xe0] sm:$0xff] %v318_v10 }
  0x32   : > { %355 = vst [vmem:[%s509_s25 + $0xe8] sm:$0xff] %v319_v12 }
  0x33   : > { %356 = vst [vmem:[%s509_s25 + $0xf0] sm:$0xff] %v320_v14 }
  0x34   : > { %357 = vst [vmem:[%s509_s25 + $0xf8] sm:$0xff] %v321_v0 }
  0x35   : > { %358 = vst [vmem:[%s509_s25 + $0x100] sm:$0xff] %v322_v17 }
  0x36   : > { %359 = vst [vmem:[%s509_s25 + $0x108] sm:$0xff] %v323_v18 }
  0x37   : > { %360 = vst [vmem:[%s509_s25 + $0x110] sm:$0xff] %v324_v19 }
  0x38   : > { %361 = vst [vmem:[%s509_s25 + $0x118] sm:$0xff] %v325_v20 }
  0x39 PF: > { %s13_s12 = sadd.s32 1, %s443_s12  }
  0x3a   : > { %p10_p4 = scmp.ge.s32.totalorder %s13_s12, 4  }
  0x3c   :  { %12 = sbr.rel (!%p10_p4) target bundleno = 1 (0x1), region = 62 }

// kernel: duc_forward.2
= control target key start
LH: loop header
LB: loop body
LE: loop exit
PB: predicated region body
PF: predicated region fallthrough
CT: control target
= control target key end

     0   :  { %s3799_s15 = smov 0   ;;  %s4999_s0 = inlined_call_operand.vmem [shape: f32[656,4], index: 0, kind: input, shape index: {}]   ;;  %s5000_s1 = inlined_call_operand.vmem [shape: f32[9,4,128], index: 1, kind: input, shape index: {}]   ;;  %s5001_s2 = inlined_call_operand.vmem [shape: f32[288,1], index: 2, kind: input, shape index: {}]   ;;  %s5002_s3 = inlined_call_operand.vmem [shape: f32[576,128], index: 3, kind: output, shape index: {0}]   ;;  %s5003_s4 = inlined_call_operand.vmem [shape: f32[2,128], index: 4, kind: output, shape index: {1}]  }
   0x1 LB: > { %s3805_s16 = sadd.s32 4294967295, %s3770_s15   ;;  %p3401_p0 = scmp.ge.s32.totalorder %s3770_s15, 1  ;;  %s3770_s15 = sphi %s3799_s15, %s15_s15  }
   0x2   : > { %p161_p1 = scmp.lt.s32.totalorder %s3770_s15, 3 }
   0x4   : > { %p162_p2 = pnand %p3401_p0, %p161_p1 }
   0x5   : > { %s187_s19 = smul.u32 (!%p162_p2), 41, %s3805_s16  ;;  %p3745_p5 = scmp.ne.s32.totalorder (!%p162_p2), %s3805_s16, 0 }
   0x6   : > { %165 = sbr.rel (%p162_p2) target bundleno = 1028 (0x404), region = 32 }
   0x7   : > { %p188_p3 = scmp.lt.s32.totalorder (!%p162_p2), %s187_s19, 81  ;;  %s193_s14 = smul.u32 (!%p162_p2), 36, %s3805_s16 }
   0x9   : > { %p194_p4 = scmp.lt.s32.totalorder (!%p162_p2), %s193_s14, 71 }
   0xb   : > { %v3404_v0 = vld [vmem:[%s5000_s1 + $0x4] sm:$0xf]  ;;  %vm383_vm0 = vcmask 1043456   ;;  %v3479_v1 = vld [vmem:[%s5000_s1 + $0x8] sm:$0xf]  ;;  %s5005_s19 = smov (!%p188_p3, %s187_s19), 81 }
   0xc   : > { %3748 = vmatpush.msk.msra.mxu1 %vm383_vm0, %v3404_v0  ;;  %3749 = vmatpush.msk.msra.mxu2 %vm383_vm0, %v3404_v0  ;;  %v3517_v2 = vld [vmem:[%s5000_s1 + $0xc] sm:$0xf]  ;;  %v235_v3 = vld [vmem:[%s5000_s1] sm:$0xf]  ;;  %v3555_v4 = vld [vmem:[%s5000_s1 + $0x10] sm:$0xf] }
   0xd   : > { %3750 = vmatpush.msk.msra.mxu3 %vm383_vm0, %v3404_v0  ;;  %3405 = vmatpush.msk.msra.mxu0 %vm383_vm0, %v3404_v0  ;;  %s3402_s28 = sshll.u32 %s5005_s19, 3  ;;  %vm274_vm1 = vcmask 31744   ;;  %v3631_v29 = vld [vmem:[%s5000_s1 + $0x18] sm:$0xf]  ;;  %v3669_v30 = vld [vmem:[%s5000_s1 + $0x1c] sm:$0xf] }
   0xe   : > { %3480 = vmatpush.msk.msrb.mxu2 %vm383_vm0, %v3479_v1  ;;  %3442 = vmatpush.msk.msrb.mxu1 %vm383_vm0, %v235_v3  ;;  %s3836_s5 = scalar_lea.vmem %s4999_s0, %s3402_s28  ;;  %v3593_v31 = vld [vmem:[%s5000_s1 + $0x14] sm:$0xf]  ;;  %v3707_v36 = vld [vmem:[%s5000_s1 + $0x20] sm:$0xf]  ;;  %s5007_s14 = smov (!%p194_p4, %s193_s14), 71 }
   0xf   : > { %3518 = vmatpush.msk.msrb.mxu3 %vm383_vm0, %v3517_v2  ;;  %3556 = vmatpush.msk.msrb.mxu0 %vm383_vm0, %v3555_v4  ;;  %v245_v5 = vld [vmem:[%s3836_s5 + $0x49] sm:$0xff]  ;;  %v254_v6 = vld [vmem:[%s3836_s5 + $0x91] sm:$0xff]  ;;  %v263_v7 = vld [vmem:[%s3836_s5 + $0xd9] sm:$0xff]  ;;  %s3403_s17 = sshll.u32 %s5007_s14, 3 }
  0x10   : > { %3415 = vmatmul.msk.f32.vlgmr.msra.gmra.mxu1 %vm274_vm1, %v245_v5  ;;  %3424 = vmatmul.msk.f32.vlgmr.msra.gmra.mxu2 %vm274_vm1, %v254_v6  ;;  %v236_v8 = vld [vmem:[%s3836_s5 + $0x1] sm:$0xff]  ;;  %v246_v9 = vld [vmem:[%s3836_s5 + $0x51] sm:$0xff]  ;;  %v255_v10 = vld [vmem:[%s3836_s5 + $0x99] sm:$0xff]  ;;  %s4489_s20 = scalar_lea.vmem %s5002_s3, %s3403_s17 }
  0x11   : > { %3433 = vmatmul.msk.f32.vlgmr.msra.gmra.mxu3 %vm274_vm1, %v263_v7  ;;  %3406 = vmatmul.msk.f32.vlgmr.msra.gmra.mxu0 %vm274_vm1, %v236_v8  ;;  %v264_v11 = vld [vmem:[%s3836_s5 + $0xe1] sm:$0xff]  ;;  %v237_v12 = vld [vmem:[%s3836_s5 + $0x9] sm:$0xff]  ;;  %v247_v13 = vld [vmem:[%s3836_s5 + $0x59] sm:$0xff] }
  0x12   : > { %v256_v14 = vld [vmem:[%s3836_s5 + $0xa1] sm:$0xff]  ;;  %v265_v15 = vld [vmem:[%s3836_s5 + $0xe9] sm:$0xff]  ;;  %v238_v16 = vld [vmem:[%s3836_s5 + $0x11] sm:$0xff]  ;;  %3632 = vmatpush.msk.msra.mxu2 %vm383_vm0, %v3631_v29  ;;  %3670 = vmatpush.msk.msra.mxu3 %vm383_vm0, %v3669_v30 }
  0x13   : > { %v248_v17 = vld [vmem:[%s3836_s5 + $0x61] sm:$0xff]  ;;  %v257_v18 = vld [vmem:[%s3836_s5 + $0xa9] sm:$0xff]  ;;  %v266_v19 = vld [vmem:[%s3836_s5 + $0xf1] sm:$0xff]  ;;  %3594 = vmatpush.msk.msra.mxu1 %vm383_vm0, %v3593_v31  ;;  %3708 = vmatpush.msk.msra.mxu0 %vm383_vm0, %v3707_v36 }
  0x14   : > { %v239_v20 = vld [vmem:[%s3836_s5 + $0x19] sm:$0xff]  ;;  %v249_v21 = vld [vmem:[%s3836_s5 + $0x69] sm:$0xff]  ;;  %v258_v22 = vld [vmem:[%s3836_s5 + $0xb1] sm:$0xff] }
  0x15   : > { %v267_v23 = vld [vmem:[%s3836_s5 + $0xf9] sm:$0xff]  ;;  %v240_v24 = vld [vmem:[%s3836_s5 + $0x21] sm:$0xff]  ;;  %v250_v25 = vld [vmem:[%s3836_s5 + $0x71] sm:$0xff] }
  0x16   : > { %v259_v26 = vld [vmem:[%s3836_s5 + $0xb9] sm:$0xff]  ;;  %v268_v27 = vld [vmem:[%s3836_s5 + $0x101] sm:$0xff]  ;;  %v241_v28 = vld [vmem:[%s3836_s5 + $0x29] sm:$0xff] }
  0x17   : > { %v251_v32 = vld [vmem:[%s3836_s5 + $0x79] sm:$0xff]  ;;  %v260_v33 = vld [vmem:[%s3836_s5 + $0xc1] sm:$0xff]  ;;  %v269_v34 = vld [vmem:[%s3836_s5 + $0x109] sm:$0xff] }
  0x18   : > { %3416 = vmatmul.msk.f32.gmra.mxu1 %vm274_vm1, %v246_v9  ;;  %3425 = vmatmul.msk.f32.gmra.mxu2 %vm274_vm1, %v255_v10  ;;  %v242_v35 = vld [vmem:[%s3836_s5 + $0x31] sm:$0xff]  ;;  %v252_v37 = vld [vmem:[%s3836_s5 + $0x81] sm:$0xff]  ;;  %v261_v38 = vld [vmem:[%s3836_s5 + $0xc9] sm:$0xff] }
  0x19   : > { %3434 = vmatmul.msk.f32.gmra.mxu3 %vm274_vm1, %v264_v11  ;;  %3407 = vmatmul.msk.f32.gmra.mxu0 %vm274_vm1, %v237_v12  ;;  %v270_v39 = vld [vmem:[%s3836_s5 + $0x111] sm:$0xff]  ;;  %v243_v40 = vld [vmem:[%s3836_s5 + $0x39] sm:$0xff]  ;;  %v253_v41 = vld [vmem:[%s3836_s5 + $0x89] sm:$0xff] }
  0x1a   : > { %v262_v42 = vld [vmem:[%s3836_s5 + $0xd1] sm:$0xff]  ;;  %v271_v43 = vld [vmem:[%s3836_s5 + $0x119] sm:$0xff]  ;;  %v244_v44 = vld [vmem:[%s3836_s5 + $0x41] sm:$0xff] }
  0x1b   : > { %v199_v45 = vld [vmem:[%s3836_s5] sm:$0xff]  ;;  %v1058_v47 = vld [vmem:[%s3836_s5 + $0x12] sm:$0xff]  ;;  %v200_v49 = vld [vmem:[%s3836_s5 + $0x8] sm:$0xff] }
  0x1c   : > { %v748_v46 = vld [vmem:[%s3836_s5 + $0x2] sm:$0xff]  ;;  %v1368_v48 = vld [vmem:[%s3836_s5 + $0x13] sm:$0xff]  ;;  %v749_v50 = vld [vmem:[%s3836_s5 + $0xa] sm:$0xff] }
  0x1d   : > { %v1059_v51 = vld [vmem:[%s3836_s5 + $0x1a] sm:$0xff]  ;;  %v201_v53 = vld [vmem:[%s3836_s5 + $0x10] sm:$0xff]  ;;  %v1060_v54 = vld [vmem:[%s3836_s5 + $0x22] sm:$0xff] }
  0x1e   : > { %v1369_v52 = vld [vmem:[%s3836_s5 + $0x1b] sm:$0xff]  ;;  %v1370_v55 = vld [vmem:[%s3836_s5 + $0x23] sm:$0xff]  ;;  %v1371_v58 = vld [vmem:[%s3836_s5 + $0x2b] sm:$0xff] }
  0x1f   : > { %v202_v56 = vld [vmem:[%s3836_s5 + $0x18] sm:$0xff]  ;;  %v1061_v57 = vld [vmem:[%s3836_s5 + $0x2a] sm:$0xff]  ;;  %v203_v59 = vld [vmem:[%s3836_s5 + $0x20] sm:$0xff] }
  0x20   : > { %3417 = vmatmul.msk.f32.gmra.mxu1 %vm274_vm1, %v247_v13  ;;  %3426 = vmatmul.msk.f32.gmra.mxu2 %vm274_vm1, %v256_v14  ;;  %v1062_v60 = vld [vmem:[%s3836_s5 + $0x32] sm:$0xff]  ;;  %v204_v62 = vld [vmem:[%s3836_s5 + $0x28] sm:$0xff]  ;;  %v1063_v63 = vld [vmem:[%s3836_s5 + $0x3a] sm:$0xff] }
  0x21   : > { %3435 = vmatmul.msk.f32.gmra.mxu3 %vm274_vm1, %v265_v15  ;;  %3408 = vmatmul.msk.f32.gmra.mxu0 %vm274_vm1, %v238_v16  ;;  %v1372_v61 = vld [vmem:[%s3836_s5 + $0x33] sm:$0xff]  ;;  %v1373_v0 = vld [vmem:[%s3836_s5 + $0x3b] sm:$0xff]  ;;  %v1374_v3 = vld [vmem:[%s3836_s5 + $0x43] sm:$0xff] }
  0x22   : > { %v205_v1 = vld [vmem:[%s3836_s5 + $0x30] sm:$0xff]  ;;  %v1064_v2 = vld [vmem:[%s3836_s5 + $0x42] sm:$0xff]  ;;  %v206_v5 = vld [vmem:[%s3836_s5 + $0x38] sm:$0xff] }
  0x23   : > { %v1065_v6 = vld [vmem:[%s3836_s5 + $0x4a] sm:$0xff]  ;;  %v207_v12 = vld [vmem:[%s3836_s5 + $0x40] sm:$0xff]  ;;  %v1066_v13 = vld [vmem:[%s3836_s5 + $0x52] sm:$0xff] }
  0x24   : > { %v1375_v8 = vld [vmem:[%s3836_s5 + $0x4b] sm:$0xff]  ;;  %v1376_v15 = vld [vmem:[%s3836_s5 + $0x53] sm:$0xff]  ;;  %v1378_v29 = vld [vmem:[%s3836_s5 + $0x63] sm:$0xff] }
  0x25   : > { %v1379_v36 = vld [vmem:[%s3836_s5 + $0x6b] sm:$0xff] }
  0x28   : > { %3418 = vmatmul.msk.f32.gmra.mxu1 %vm274_vm1, %v248_v17  ;;  %3427 = vmatmul.msk.f32.gmra.mxu2 %vm274_vm1, %v257_v18 }
  0x29   : > { %3436 = vmatmul.msk.f32.gmra.mxu3 %vm274_vm1, %v266_v19  ;;  %3409 = vmatmul.msk.f32.gmra.mxu0 %vm274_vm1, %v239_v20  ;;  %v208_v19 = vld [vmem:[%s3836_s5 + $0x48] sm:$0xff]  ;;  %v1067_v20 = vld [vmem:[%s3836_s5 + $0x5a] sm:$0xff] }
  0x30   : > { %3419 = vmatmul.msk.f32.gmra.mxu1 %vm274_vm1, %v249_v21  ;;  %3428 = vmatmul.msk.f32.gmra.mxu2 %vm274_vm1, %v258_v22  ;;  %v1377_v22 = vld [vmem:[%s3836_s5 + $0x5b] sm:$0xff] }
  0x31   : > { %3437 = vmatmul.msk.f32.gmra.mxu3 %vm274_vm1, %v267_v23  ;;  %3410 = vmatmul.msk.f32.gmra.mxu0 %vm274_vm1, %v240_v24 }
  0x38   : > { %3420 = vmatmul.msk.f32.gmra.mxu1 %vm274_vm1, %v250_v25  ;;  %3429 = vmatmul.msk.f32.gmra.mxu2 %vm274_vm1, %v259_v26  ;;  %v209_v26 = vld [vmem:[%s3836_s5 + $0x50] sm:$0xff] }
  0x39   : > { %3438 = vmatmul.msk.f32.gmra.mxu3 %vm274_vm1, %v268_v27  ;;  %3411 = vmatmul.msk.f32.gmra.mxu0 %vm274_vm1, %v241_v28  ;;  %v1068_v27 = vld [vmem:[%s3836_s5 + $0x62] sm:$0xff] }
  0x40   : > { %3421 = vmatmul.msk.f32.gmra.mxu1 %vm274_vm1, %v251_v32  ;;  %3430 = vmatmul.msk.f32.gmra.mxu2 %vm274_vm1, %v260_v33  ;;  %v210_v33 = vld [vmem:[%s3836_s5 + $0x58] sm:$0xff] }
  0x41   : > { %3439 = vmatmul.msk.f32.gmra.mxu3 %vm274_vm1, %v269_v34  ;;  %3412 = vmatmul.msk.f32.gmra.mxu0 %vm274_vm1, %v242_v35  ;;  %v1069_v34 = vld [vmem:[%s3836_s5 + $0x6a] sm:$0xff] }
  0x48   : > { %3422 = vmatmul.msk.f32.gmra.mxu1 %vm274_vm1, %v252_v37  ;;  %3431 = vmatmul.msk.f32.gmra.mxu2 %vm274_vm1, %v261_v38 }
  0x49   : > { %3440 = vmatmul.msk.f32.gmra.mxu3 %vm274_vm1, %v270_v39  ;;  %3413 = vmatmul.msk.f32.gmra.mxu0 %vm274_vm1, %v243_v40  ;;  %v211_v40 = vld [vmem:[%s3836_s5 + $0x60] sm:$0xff] }
  0x50   : > { %3423 = vmatmul.msk.f32.gmra.mxu1 %vm274_vm1, %v253_v41  ;;  %3432 = vmatmul.msk.f32.gmra.mxu2 %vm274_vm1, %v262_v42  ;;  %v1070_v41 = vld [vmem:[%s3836_s5 + $0x72] sm:$0xff] }
  0x51   : > { %3441 = vmatmul.msk.f32.gmra.mxu3 %vm274_vm1, %v271_v43  ;;  %3414 = vmatmul.msk.f32.gmra.mxu0 %vm274_vm1, %v244_v44  ;;  %v1380_v43 = vld [vmem:[%s3836_s5 + $0x73] sm:$0xff] }
  0x58   : > { %3443 = vmatmul.msk.f32.vlgmr.msrb.gmra.mxu1 %vm274_vm1, %v199_v45  ;;  %3481 = vmatmul.msk.f32.vlgmr.msrb.gmra.mxu2 %vm274_vm1, %v748_v46 }
  0x59   : > { %3519 = vmatmul.msk.f32.vlgmr.msrb.gmra.mxu3 %vm274_vm1, %v1058_v47  ;;  %3557 = vmatmul.msk.f32.vlgmr.msrb.gmra.mxu0 %vm274_vm1, %v1368_v48  ;;  %v1071_v48 = vld [vmem:[%s3836_s5 + $0x7a] sm:$0xff] }
  0x60   : > { %3444 = vmatmul.msk.f32.gmra.mxu1 %vm274_vm1, %v200_v49  ;;  %3482 = vmatmul.msk.f32.gmra.mxu2 %vm274_vm1, %v749_v50  ;;  %v1381_v50 = vld [vmem:[%s3836_s5 + $0x7b] sm:$0xff] }
  0x61   : > { %3520 = vmatmul.msk.f32.gmra.mxu3 %vm274_vm1, %v1059_v51  ;;  %3558 = vmatmul.msk.f32.gmra.mxu0 %vm274_vm1, %v1369_v52 }
  0x68   : > { %3445 = vmatmul.msk.f32.gmra.mxu1 %vm274_vm1, %v201_v53  ;;  %3483 = vmatmul.msk.f32.gmra.mxu2 %vm274_vm1, %v1058_v47  ;;  %v212_v47 = vld [vmem:[%s3836_s5 + $0x68] sm:$0xff] }
  0x69   : > { %3521 = vmatmul.msk.f32.gmra.mxu3 %vm274_vm1, %v1060_v54  ;;  %3559 = vmatmul.msk.f32.gmra.mxu0 %vm274_vm1, %v1370_v55  ;;  %v1072_v55 = vld [vmem:[%s3836_s5 + $0x82] sm:$0xff] }
  0x70   : > { %3446 = vmatmul.msk.f32.gmra.mxu1 %vm274_vm1, %v202_v56  ;;  %3484 = vmatmul.msk.f32.gmra.mxu2 %vm274_vm1, %v1059_v51 }
  0x71   : > { %3522 = vmatmul.msk.f32.gmra.mxu3 %vm274_vm1, %v1061_v57  ;;  %3560 = vmatmul.msk.f32.gmra.mxu0 %vm274_vm1, %v1371_v58 }
  0x78   : > { %3447 = vmatmul.msk.f32.gmra.mxu1 %vm274_vm1, %v203_v59  ;;  %3485 = vmatmul.msk.f32.gmra.mxu2 %vm274_vm1, %v1060_v54  ;;  %v213_v54 = vld [vmem:[%s3836_s5 + $0x70] sm:$0xff] }
  0x79   : > { %3523 = vmatmul.msk.f32.gmra.mxu3 %vm274_vm1, %v1062_v60  ;;  %3561 = vmatmul.msk.f32.gmra.mxu0 %vm274_vm1, %v1372_v61  ;;  %v214_v61 = vld [vmem:[%s3836_s5 + $0x78] sm:$0xff] }
  0x80   : > { %3448 = vmatmul.msk.f32.gmra.mxu1 %vm274_vm1, %v204_v62  ;;  %3486 = vmatmul.msk.f32.gmra.mxu2 %vm274_vm1, %v1061_v57  ;;  %v1382_v57 = vld [vmem:[%s3836_s5 + $0x83] sm:$0xff] }
  0x81   : > { %3524 = vmatmul.msk.f32.gmra.mxu3 %vm274_vm1, %v1063_v63  ;;  %3562 = vmatmul.msk.f32.gmra.mxu0 %vm274_vm1, %v1373_v0  ;;  %v1073_v62 = vld [vmem:[%s3836_s5 + $0x8a] sm:$0xff] }
  0x82   : > { %v1383_v0 = vld [vmem:[%s3836_s5 + $0x8b] sm:$0xff] }
  0x88   : > { %3449 = vmatmul.msk.f32.gmra.mxu1 %vm274_vm1, %v205_v1  ;;  %3487 = vmatmul.msk.f32.gmra.mxu2 %vm274_vm1, %v1062_v60 }
  0x89   : > { %3525 = vmatmul.msk.f32.gmra.mxu3 %vm274_vm1, %v1064_v2  ;;  %3563 = vmatmul.msk.f32.gmra.mxu0 %vm274_vm1, %v1374_v3 }
  0x8d   : > { %v3977_v4 = vpop.f32.mrf.mxu1 }
  0x8e   : > { %v3981_v7 = vpop.f32.mrf.mxu0 }
  0x90   : > { %3450 = vmatmul.msk.f32.gmra.mxu1 %vm274_vm1, %v206_v5  ;;  %3488 = vmatmul.msk.f32.gmra.mxu2 %vm274_vm1, %v1063_v63  ;;  %v215_v5 = vld [vmem:[%s3836_s5 + $0x80] sm:$0xff] }
  0x91   : > { %3526 = vmatmul.msk.f32.gmra.mxu3 %vm274_vm1, %v1065_v6  ;;  %3564 = vmatmul.msk.f32.gmra.mxu0 %vm274_vm1, %v1375_v8 }
  0x93   : > { %v3988_v9 = vpop.f32.mrf.mxu2 }
  0x94   : > { %v3990_v10 = vpop.f32.mrf.mxu3 }
  0x95   : > { %v3992_v11 = vpop.f32.mrf.mxu1 }
  0x96   : > { %v3996_v14 = vpop.f32.mrf.mxu0 }
  0x98   : > { %3451 = vmatmul.msk.f32.gmra.mxu1 %vm274_vm1, %v207_v12  ;;  %3489 = vmatmul.msk.f32.gmra.mxu2 %vm274_vm1, %v1064_v2  ;;  %v1384_v12 = vld [vmem:[%s3836_s5 + $0x93] sm:$0xff] }
  0x99   : > { %3527 = vmatmul.msk.f32.gmra.mxu3 %vm274_vm1, %v1066_v13  ;;  %3565 = vmatmul.msk.f32.gmra.mxu0 %vm274_vm1, %v1376_v15 }
  0x9b   : > { %v4003_v16 = vpop.f32.mrf.mxu2 }
  0x9c   : > { %v4005_v17 = vpop.f32.mrf.mxu3 }
  0x9d   : > { %v4007_v18 = vpop.f32.mrf.mxu1 }
  0x9e   : > { %v4011_v21 = vpop.f32.mrf.mxu0 }
  0xa0   : > { %3452 = vmatmul.msk.f32.gmra.mxu1 %vm274_vm1, %v208_v19  ;;  %3490 = vmatmul.msk.f32.gmra.mxu2 %vm274_vm1, %v1065_v6  ;;  %v1074_v6 = vld [vmem:[%s3836_s5 + $0x92] sm:$0xff] }
  0xa1   : > { %3528 = vmatmul.msk.f32.gmra.mxu3 %vm274_vm1, %v1067_v20  ;;  %3566 = vmatmul.msk.f32.gmra.mxu0 %vm274_vm1, %v1377_v22 }
  0xa3   : > { %v4018_v23 = vpop.f32.mrf.mxu2 }
  0xa4   : > { %v4020_v24 = vpop.f32.mrf.mxu3 }
  0xa5   : > { %v4022_v25 = vpop.f32.mrf.mxu1 }
  0xa6   : > { %v4026_v28 = vpop.f32.mrf.mxu0 }
  0xa8   : > { %3453 = vmatmul.msk.f32.gmra.mxu1 %vm274_vm1, %v209_v26  ;;  %3491 = vmatmul.msk.f32.gmra.mxu2 %vm274_vm1, %v1066_v13  ;;  %v216_v26 = vld [vmem:[%s3836_s5 + $0x88] sm:$0xff] }
  0xa9   : > { %3529 = vmatmul.msk.f32.gmra.mxu3 %vm274_vm1, %v1068_v27  ;;  %3567 = vmatmul.msk.f32.gmra.mxu0 %vm274_vm1, %v1378_v29  ;;  %v1075_v29 = vld [vmem:[%s3836_s5 + $0x9a] sm:$0xff] }
  0xab   : > { %v4033_v30 = vpop.f32.mrf.mxu2 }
  0xac   : > { %v4035_v31 = vpop.f32.mrf.mxu3 }
  0xad   : > { %v4037_v32 = vpop.f32.mrf.mxu1 }
  0xae   : > { %v4041_v35 = vpop.f32.mrf.mxu0 }
  0xb0   : > { %3454 = vmatmul.msk.f32.gmra.mxu1 %vm274_vm1, %v210_v33  ;;  %3492 = vmatmul.msk.f32.gmra.mxu2 %vm274_vm1, %v1067_v20 }
  0xb1   : > { %3530 = vmatmul.msk.f32.gmra.mxu3 %vm274_vm1, %v1069_v34  ;;  %3568 = vmatmul.msk.f32.gmra.mxu0 %vm274_vm1, %v1379_v36 }
  0xb3   : > { %v4048_v37 = vpop.f32.mrf.mxu2 }
  0xb4   : > { %v4050_v38 = vpop.f32.mrf.mxu3 }
  0xb5   : > { %v4052_v39 = vpop.f32.mrf.mxu1 }
  0xb6   : > { %v4056_v42 = vpop.f32.mrf.mxu0 }
  0xb8   : > { %3455 = vmatmul.msk.f32.gmra.mxu1 %vm274_vm1, %v211_v40  ;;  %3493 = vmatmul.msk.f32.gmra.mxu2 %vm274_vm1, %v1068_v27 }
  0xb9   : > { %3531 = vmatmul.msk.f32.gmra.mxu3 %vm274_vm1, %v1070_v41  ;;  %3569 = vmatmul.msk.f32.gmra.mxu0 %vm274_vm1, %v1380_v43 }
  0xbb   : > { %v4063_v44 = vpop.f32.mrf.mxu2 }
  0xbc   : > { %v4065_v45 = vpop.f32.mrf.mxu3 }
  0xbd   : > { %v4067_v46 = vpop.f32.mrf.mxu1 }
  0xbe   : > { %v4071_v49 = vpop.f32.mrf.mxu0 }
  0xc0   : > { %3456 = vmatmul.msk.f32.gmra.mxu1 %vm274_vm1, %v212_v47  ;;  %3494 = vmatmul.msk.f32.gmra.mxu2 %vm274_vm1, %v1069_v34  ;;  %v1385_v34 = vld [vmem:[%s3836_s5 + $0x9b] sm:$0xff] }
  0xc1   : > { %3532 = vmatmul.msk.f32.gmra.mxu3 %vm274_vm1, %v1071_v48  ;;  %3570 = vmatmul.msk.f32.gmra.mxu0 %vm274_vm1, %v1381_v50 }
  0xc3   : > { %v4078_v51 = vpop.f32.mrf.mxu2 }
  0xc4   : > { %v4080_v52 = vpop.f32.mrf.mxu3 }
  0xc5   : > { %v4082_v53 = vpop.f32.mrf.mxu1 }
  0xc6   : > { %v4086_v56 = vpop.f32.mrf.mxu0 }
  0xc8   : > { %3457 = vmatmul.msk.f32.gmra.mxu1 %vm274_vm1, %v213_v54  ;;  %3495 = vmatmul.msk.f32.gmra.mxu2 %vm274_vm1, %v1070_v41  ;;  %v1076_v54 = vld [vmem:[%s3836_s5 + $0xa2] sm:$0xff] }
  0xc9   : > { %3533 = vmatmul.msk.f32.gmra.mxu3 %vm274_vm1, %v1072_v55  ;;  %3571 = vmatmul.msk.f32.gmra.mxu0 %vm274_vm1, %v1382_v57  ;;  %v1386_v57 = vld [vmem:[%s3836_s5 + $0xa3] sm:$0xff] }
  0xcb   : > { %v4093_v58 = vpop.f32.mrf.mxu2 }
  0xcc   : > { %v4095_v59 = vpop.f32.mrf.mxu3 }
  0xcd   : > { %v4097_v60 = vpop.f32.mrf.mxu1 }
  0xce   : > { %v4101_v63 = vpop.f32.mrf.mxu0 }
  0xd0   : > { %3458 = vmatmul.msk.f32.gmra.mxu1 %vm274_vm1, %v214_v61  ;;  %3496 = vmatmul.msk.f32.gmra.mxu2 %vm274_vm1, %v1071_v48  ;;  %v217_v48 = vld [vmem:[%s3836_s5 + $0x90] sm:$0xff] }
  0xd1   : > { %3534 = vmatmul.msk.f32.gmra.mxu3 %vm274_vm1, %v1073_v62  ;;  %3572 = vmatmul.msk.f32.gmra.mxu0 %vm274_vm1, %v1383_v0 }
  0xd3   : > { %v4108_v1 = vpop.f32.mrf.mxu2 }
  0xd4   : > { %v4110_v2 = vpop.f32.mrf.mxu3 }
  0xd5   : > { %v640_v3 = vpop.f32.mrf.mxu1 }
  0xd6   : > { %v1534_v8 = vpop.f32.mrf.mxu0  ;;  %v641_v13 = vadd.f32 %v640_v3, %v3981_v7 }
  0xd8   : > { %3459 = vmatmul.msk.f32.gmra.mxu1 %vm274_vm1, %v215_v5  ;;  %3497 = vmatmul.msk.f32.gmra.mxu2 %vm274_vm1, %v1072_v55 }
  0xd9   : > { %3535 = vmatmul.msk.f32.gmra.mxu3 %vm274_vm1, %v1074_v6  ;;  %3573 = vmatmul.msk.f32.gmra.mxu0 %vm274_vm1, %v1384_v12 }
  0xdb   : > { %v914_v15 = vpop.f32.mrf.mxu2 }
  0xdc   : > { %v1022_v19 = vadd.f32 %v914_v15, %v641_v13  ;;  %v1224_v20 = vpop.f32.mrf.mxu3  ;;  %v1077_v13 = vld [vmem:[%s3836_s5 + $0xaa] sm:$0xff] }
  0xdd   : > { %v643_v22 = vpop.f32.mrf.mxu1 }
  0xde   : > { %v1332_v27 = vadd.f32 %v1224_v20, %v1022_v19  ;;  %v1537_v33 = vpop.f32.mrf.mxu0  ;;  %v644_v7 = vadd.f32 %v643_v22, %v3996_v14  ;;  %v1387_v19 = vld [vmem:[%s3836_s5 + $0xab] sm:$0xff] }
  0xe0   : > { %v4123_v36 = vadd.f32 %v1534_v8, %v1332_v27  ;;  %3460 = vmatmul.msk.f32.gmra.mxu1 %vm274_vm1, %v216_v26  ;;  %3498 = vmatmul.msk.f32.gmra.mxu2 %vm274_vm1, %v1073_v62  ;;  %v218_v8 = vld [vmem:[%s3836_s5 + $0x98] sm:$0xff] }
  0xe1   : > { %3536 = vmatmul.msk.f32.gmra.mxu3 %vm274_vm1, %v1075_v29  ;;  %3574 = vmatmul.msk.f32.gmra.mxu0 %vm274_vm1, %v1385_v34 }
  0xe3   : > { %v917_v40 = vpop.f32.mrf.mxu2 }
  0xe4   : > { %v1023_v41 = vadd.f32 %v917_v40, %v644_v7  ;;  %v1227_v43 = vpop.f32.mrf.mxu3  ;;  %v1078_v7 = vld [vmem:[%s3836_s5 + $0xb2] sm:$0xff] }
  0xe5   : > { %v646_v47 = vpop.f32.mrf.mxu1 }
  0xe6   : > { %v1333_v50 = vadd.f32 %v1227_v43, %v1023_v41  ;;  %v1540_v55 = vpop.f32.mrf.mxu0  ;;  %v647_v14 = vadd.f32 %v646_v47, %v4011_v21  ;;  %v1388_v41 = vld [vmem:[%s3836_s5 + $0xb3] sm:$0xff] }
  0xe8   : > { %v4133_v61 = vadd.f32 %v1537_v33, %v1333_v50  ;;  %3461 = vmatmul.msk.f32.gmra.mxu1 %vm274_vm1, %v217_v48  ;;  %3499 = vmatmul.msk.f32.gmra.mxu2 %vm274_vm1, %v1074_v6  ;;  %v219_v33 = vld [vmem:[%s3836_s5 + $0xa0] sm:$0xff] }
  0xe9   : > { %3537 = vmatmul.msk.f32.gmra.mxu3 %vm274_vm1, %v1076_v54  ;;  %3575 = vmatmul.msk.f32.gmra.mxu0 %vm274_vm1, %v1386_v57 }
  0xeb   : > { %v920_v62 = vpop.f32.mrf.mxu2 }
  0xec   : > { %v1024_v0 = vadd.f32 %v920_v62, %v647_v14  ;;  %v1230_v3 = vpop.f32.mrf.mxu3  ;;  %v1079_v14 = vld [vmem:[%s3836_s5 + $0xba] sm:$0xff] }
  0xed   : > { %v649_v5 = vpop.f32.mrf.mxu1 }
  0xee   : > { %v1334_v12 = vadd.f32 %v1230_v3, %v1024_v0  ;;  %v1543_v15 = vpop.f32.mrf.mxu0  ;;  %v650_v21 = vadd.f32 %v649_v5, %v4026_v28  ;;  %v1389_v0 = vld [vmem:[%s3836_s5 + $0xbb] sm:$0xff] }
  0xf0   : > { %v4143_v20 = vadd.f32 %v1540_v55, %v1334_v12  ;;  %3462 = vmatmul.msk.f32.gmra.mxu1 %vm274_vm1, %v218_v8  ;;  %3500 = vmatmul.msk.f32.gmra.mxu2 %vm274_vm1, %v1075_v29  ;;  %v220_v55 = vld [vmem:[%s3836_s5 + $0xa8] sm:$0xff] }
  0xf1   : > { %3538 = vmatmul.msk.f32.gmra.mxu3 %vm274_vm1, %v1077_v13  ;;  %3576 = vmatmul.msk.f32.gmra.mxu0 %vm274_vm1, %v1387_v19 }
  0xf3   : > { %v923_v6 = vpop.f32.mrf.mxu2 }
  0xf4   : > { %v1025_v22 = vadd.f32 %v923_v6, %v650_v21  ;;  %v1233_v26 = vpop.f32.mrf.mxu3  ;;  %v1080_v21 = vld [vmem:[%s3836_s5 + $0xc2] sm:$0xff] }
  0xf5   : > { %v652_v27 = vpop.f32.mrf.mxu1 }
  0xf6   : > { %v1335_v34 = vadd.f32 %v1233_v26, %v1025_v22  ;;  %v1546_v40 = vpop.f32.mrf.mxu0  ;;  %v653_v28 = vadd.f32 %v652_v27, %v4041_v35  ;;  %v1390_v22 = vld [vmem:[%s3836_s5 + $0xc3] sm:$0xff] }
  0xf8   : > { %v4153_v43 = vadd.f32 %v1543_v15, %v1335_v34  ;;  %3463 = vmatmul.msk.f32.gmra.mxu1 %vm274_vm1, %v219_v33  ;;  %3501 = vmatmul.msk.f32.gmra.mxu2 %vm274_vm1, %v1076_v54  ;;  %v221_v15 = vld [vmem:[%s3836_s5 + $0xb0] sm:$0xff] }
  0xf9   : > { %3539 = vmatmul.msk.f32.gmra.mxu3 %vm274_vm1, %v1078_v7  ;;  %3577 = vmatmul.msk.f32.gmra.mxu0 %vm274_vm1, %v1388_v41 }
  0xfb   : > { %v926_v29 = vpop.f32.mrf.mxu2 }
  0xfc   : > { %v1026_v47 = vadd.f32 %v926_v29, %v653_v28  ;;  %v1236_v48 = vpop.f32.mrf.mxu3  ;;  %v1081_v28 = vld [vmem:[%s3836_s5 + $0xca] sm:$0xff] }
  0xfd   : > { %v655_v50 = vpop.f32.mrf.mxu1 }
  0xfe   : > { %v1336_v57 = vadd.f32 %v1236_v48, %v1026_v47  ;;  %v1549_v62 = vpop.f32.mrf.mxu0  ;;  %v656_v35 = vadd.f32 %v655_v50, %v4056_v42  ;;  %v1391_v47 = vld [vmem:[%s3836_s5 + $0xcb] sm:$0xff] }
 0x100   : > { %v4163_v3 = vadd.f32 %v1546_v40, %v1336_v57  ;;  %3464 = vmatmul.msk.f32.gmra.mxu1 %vm274_vm1, %v220_v55  ;;  %3502 = vmatmul.msk.f32.gmra.mxu2 %vm274_vm1, %v1077_v13  ;;  %v222_v40 = vld [vmem:[%s3836_s5 + $0xb8] sm:$0xff] }
 0x101   : > { %3540 = vmatmul.msk.f32.gmra.mxu3 %vm274_vm1, %v1079_v14  ;;  %3578 = vmatmul.msk.f32.gmra.mxu0 %vm274_vm1, %v1389_v0 }
 0x103   : > { %v929_v54 = vpop.f32.mrf.mxu2 }
 0x104   : > { %v1027_v5 = vadd.f32 %v929_v54, %v656_v35  ;;  %v1239_v8 = vpop.f32.mrf.mxu3  ;;  %v1082_v35 = vld [vmem:[%s3836_s5 + $0xd2] sm:$0xff] }
 0x105   : > { %v658_v12 = vpop.f32.mrf.mxu1 }
 0x106   : > { %v1337_v19 = vadd.f32 %v1239_v8, %v1027_v5  ;;  %v1552_v6 = vpop.f32.mrf.mxu0  ;;  %v659_v42 = vadd.f32 %v658_v12, %v4071_v49  ;;  %v1392_v5 = vld [vmem:[%s3836_s5 + $0xd3] sm:$0xff] }
 0x108   : > { %v4173_v26 = vadd.f32 %v1549_v62, %v1337_v19  ;;  %3465 = vmatmul.msk.f32.gmra.mxu1 %vm274_vm1, %v221_v15  ;;  %3503 = vmatmul.msk.f32.gmra.mxu2 %vm274_vm1, %v1078_v7  ;;  %v223_v62 = vld [vmem:[%s3836_s5 + $0xc0] sm:$0xff] }
 0x109   : > { %3541 = vmatmul.msk.f32.gmra.mxu3 %vm274_vm1, %v1080_v21  ;;  %3579 = vmatmul.msk.f32.gmra.mxu0 %vm274_vm1, %v1390_v22 }
 0x10b   : > { %v932_v13 = vpop.f32.mrf.mxu2 }
 0x10c   : > { %v1028_v27 = vadd.f32 %v932_v13, %v659_v42  ;;  %v1242_v33 = vpop.f32.mrf.mxu3  ;;  %v1083_v42 = vld [vmem:[%s3836_s5 + $0xda] sm:$0xff] }
 0x10d   : > { %v661_v34 = vpop.f32.mrf.mxu1 }
 0x10e   : > { %v1338_v41 = vadd.f32 %v1242_v33, %v1028_v27  ;;  %v1555_v29 = vpop.f32.mrf.mxu0  ;;  %v662_v49 = vadd.f32 %v661_v34, %v4086_v56  ;;  %v1393_v27 = vld [vmem:[%s3836_s5 + $0xdb] sm:$0xff] }
 0x110   : > { %v4183_v48 = vadd.f32 %v1552_v6, %v1338_v41  ;;  %3466 = vmatmul.msk.f32.gmra.mxu1 %vm274_vm1, %v222_v40  ;;  %3504 = vmatmul.msk.f32.gmra.mxu2 %vm274_vm1, %v1079_v14  ;;  %v224_v6 = vld [vmem:[%s3836_s5 + $0xc8] sm:$0xff] }
 0x111   : > { %3542 = vmatmul.msk.f32.gmra.mxu3 %vm274_vm1, %v1081_v28  ;;  %3580 = vmatmul.msk.f32.gmra.mxu0 %vm274_vm1, %v1391_v47 }
 0x113   : > { %v935_v7 = vpop.f32.mrf.mxu2 }
 0x114   : > { %v1029_v50 = vadd.f32 %v935_v7, %v662_v49  ;;  %v1245_v55 = vpop.f32.mrf.mxu3  ;;  %v1084_v49 = vld [vmem:[%s3836_s5 + $0xe2] sm:$0xff] }
 0x115   : > { %v664_v57 = vpop.f32.mrf.mxu1 }
 0x116   : > { %v1339_v0 = vadd.f32 %v1245_v55, %v1029_v50  ;;  %v1558_v54 = vpop.f32.mrf.mxu0  ;;  %v665_v56 = vadd.f32 %v664_v57, %v4101_v63  ;;  %v1394_v50 = vld [vmem:[%s3836_s5 + $0xe3] sm:$0xff] }
 0x118   : > { %v4193_v8 = vadd.f32 %v1555_v29, %v1339_v0  ;;  %3467 = vmatmul.msk.f32.gmra.mxu1 %vm274_vm1, %v223_v62  ;;  %3505 = vmatmul.msk.f32.gmra.mxu2 %vm274_vm1, %v1080_v21  ;;  %v225_v29 = vld [vmem:[%s3836_s5 + $0xd0] sm:$0xff] }
 0x119   : > { %3543 = vmatmul.msk.f32.gmra.mxu3 %vm274_vm1, %v1082_v35  ;;  %3581 = vmatmul.msk.f32.gmra.mxu0 %vm274_vm1, %v1392_v5 }
 0x11b   : > { %v938_v14 = vpop.f32.mrf.mxu2 }
 0x11c   : > { %v1030_v12 = vadd.f32 %v938_v14, %v665_v56  ;;  %v1248_v15 = vpop.f32.mrf.mxu3  ;;  %v1085_v56 = vld [vmem:[%s3836_s5 + $0xea] sm:$0xff] }
 0x11d   : > { %v667_v19 = vpop.f32.mrf.mxu1 }
 0x11e   : > { %v1340_v22 = vadd.f32 %v1248_v15, %v1030_v12  ;;  %v1561_v13 = vpop.f32.mrf.mxu0  ;;  %v668_v63 = vadd.f32 %v667_v19, %v3977_v4  ;;  %v1395_v12 = vld [vmem:[%s3836_s5 + $0xeb] sm:$0xff] }
 0x120   : > { %v4203_v33 = vadd.f32 %v1558_v54, %v1340_v22  ;;  %3468 = vmatmul.msk.f32.gmra.mxu1 %vm274_vm1, %v224_v6  ;;  %3506 = vmatmul.msk.f32.gmra.mxu2 %vm274_vm1, %v1081_v28  ;;  %v226_v54 = vld [vmem:[%s3836_s5 + $0xd8] sm:$0xff] }
 0x121   : > { %3544 = vmatmul.msk.f32.gmra.mxu3 %vm274_vm1, %v1083_v42  ;;  %3582 = vmatmul.msk.f32.gmra.mxu0 %vm274_vm1, %v1393_v27 }
 0x123   : > { %v941_v21 = vpop.f32.mrf.mxu2 }
 0x124   : > { %v1031_v34 = vadd.f32 %v941_v21, %v668_v63  ;;  %v1251_v40 = vpop.f32.mrf.mxu3  ;;  %v1086_v63 = vld [vmem:[%s3836_s5 + $0xf2] sm:$0xff] }
 0x125   : > { %v670_v41 = vpop.f32.mrf.mxu1 }
 0x126   : > { %v1341_v47 = vadd.f32 %v1251_v40, %v1031_v34  ;;  %v1564_v7 = vpop.f32.mrf.mxu0  ;;  %v671_v4 = vadd.f32 %v670_v41, %v3992_v11  ;;  %v1396_v34 = vld [vmem:[%s3836_s5 + $0xf3] sm:$0xff] }
 0x128   : > { %v4213_v55 = vadd.f32 %v1561_v13, %v1341_v47  ;;  %3469 = vmatmul.msk.f32.gmra.mxu1 %vm274_vm1, %v225_v29  ;;  %3507 = vmatmul.msk.f32.gmra.mxu2 %vm274_vm1, %v1082_v35  ;;  %v227_v13 = vld [vmem:[%s3836_s5 + $0xe0] sm:$0xff] }
 0x129   : > { %3545 = vmatmul.msk.f32.gmra.mxu3 %vm274_vm1, %v1084_v49  ;;  %3583 = vmatmul.msk.f32.gmra.mxu0 %vm274_vm1, %v1394_v50 }
 0x12b   : > { %v944_v28 = vpop.f32.mrf.mxu2 }
 0x12c   : > { %v1032_v57 = vadd.f32 %v944_v28, %v671_v4  ;;  %v1254_v62 = vpop.f32.mrf.mxu3  ;;  %v1087_v4 = vld [vmem:[%s3836_s5 + $0xfa] sm:$0xff] }
 0x12d   : > { %v673_v0 = vpop.f32.mrf.mxu1 }
 0x12e   : > { %v1342_v5 = vadd.f32 %v1254_v62, %v1032_v57  ;;  %v1567_v14 = vpop.f32.mrf.mxu0  ;;  %v674_v11 = vadd.f32 %v673_v0, %v4007_v18  ;;  %v1397_v57 = vld [vmem:[%s3836_s5 + $0xfb] sm:$0xff] }
 0x130   : > { %v4223_v15 = vadd.f32 %v1564_v7, %v1342_v5  ;;  %3470 = vmatmul.msk.f32.gmra.mxu1 %vm274_vm1, %v226_v54  ;;  %3508 = vmatmul.msk.f32.gmra.mxu2 %vm274_vm1, %v1083_v42  ;;  %v228_v7 = vld [vmem:[%s3836_s5 + $0xe8] sm:$0xff] }
 0x131   : > { %3546 = vmatmul.msk.f32.gmra.mxu3 %vm274_vm1, %v1085_v56  ;;  %3584 = vmatmul.msk.f32.gmra.mxu0 %vm274_vm1, %v1395_v12 }
 0x133   : > { %v947_v35 = vpop.f32.mrf.mxu2 }
 0x134   : > { %v1033_v19 = vadd.f32 %v947_v35, %v674_v11  ;;  %v1257_v6 = vpop.f32.mrf.mxu3  ;;  %v1088_v11 = vld [vmem:[%s3836_s5 + $0x102] sm:$0xff] }
 0x135   : > { %v676_v22 = vpop.f32.mrf.mxu1 }
 0x136   : > { %v1343_v27 = vadd.f32 %v1257_v6, %v1033_v19  ;;  %v1570_v21 = vpop.f32.mrf.mxu0  ;;  %v677_v18 = vadd.f32 %v676_v22, %v4022_v25  ;;  %v1398_v19 = vld [vmem:[%s3836_s5 + $0x103] sm:$0xff] }
 0x138   : > { %v4233_v40 = vadd.f32 %v1567_v14, %v1343_v27  ;;  %3471 = vmatmul.msk.f32.gmra.mxu1 %vm274_vm1, %v227_v13  ;;  %3509 = vmatmul.msk.f32.gmra.mxu2 %vm274_vm1, %v1084_v49  ;;  %v229_v14 = vld [vmem:[%s3836_s5 + $0xf0] sm:$0xff] }
 0x139   : > { %3547 = vmatmul.msk.f32.gmra.mxu3 %vm274_vm1, %v1086_v63  ;;  %3585 = vmatmul.msk.f32.gmra.mxu0 %vm274_vm1, %v1396_v34 }
 0x13b   : > { %v950_v42 = vpop.f32.mrf.mxu2 }
 0x13c   : > { %v1034_v41 = vadd.f32 %v950_v42, %v677_v18  ;;  %v1260_v29 = vpop.f32.mrf.mxu3  ;;  %v1089_v18 = vld [vmem:[%s3836_s5 + $0x10a] sm:$0xff] }
 0x13d   : > { %v679_v47 = vpop.f32.mrf.mxu1 }
 0x13e   : > { %v1344_v50 = vadd.f32 %v1260_v29, %v1034_v41  ;;  %v1573_v28 = vpop.f32.mrf.mxu0  ;;  %v680_v25 = vadd.f32 %v679_v47, %v4037_v32  ;;  %v1399_v41 = vld [vmem:[%s3836_s5 + $0x10b] sm:$0xff] }
 0x140   : > { %v4243_v62 = vadd.f32 %v1570_v21, %v1344_v50  ;;  %3472 = vmatmul.msk.f32.gmra.mxu1 %vm274_vm1, %v228_v7  ;;  %3510 = vmatmul.msk.f32.gmra.mxu2 %vm274_vm1, %v1085_v56  ;;  %v230_v21 = vld [vmem:[%s3836_s5 + $0xf8] sm:$0xff] }
 0x141   : > { %3548 = vmatmul.msk.f32.gmra.mxu3 %vm274_vm1, %v1087_v4  ;;  %3586 = vmatmul.msk.f32.gmra.mxu0 %vm274_vm1, %v1397_v57 }
 0x143   : > { %v953_v49 = vpop.f32.mrf.mxu2 }
 0x144   : > { %v1035_v0 = vadd.f32 %v953_v49, %v680_v25  ;;  %v1263_v54 = vpop.f32.mrf.mxu3  ;;  %v1090_v25 = vld [vmem:[%s3836_s5 + $0x112] sm:$0xff] }
 0x145   : > { %v682_v5 = vpop.f32.mrf.mxu1 }
 0x146   : > { %v1345_v12 = vadd.f32 %v1263_v54, %v1035_v0  ;;  %v1576_v35 = vpop.f32.mrf.mxu0  ;;  %v683_v32 = vadd.f32 %v682_v5, %v4052_v39  ;;  %v1400_v0 = vld [vmem:[%s3836_s5 + $0x113] sm:$0xff] }
 0x148   : > { %v4253_v6 = vadd.f32 %v1573_v28, %v1345_v12  ;;  %3473 = vmatmul.msk.f32.gmra.mxu1 %vm274_vm1, %v229_v14  ;;  %3511 = vmatmul.msk.f32.gmra.mxu2 %vm274_vm1, %v1086_v63  ;;  %v231_v28 = vld [vmem:[%s3836_s5 + $0x100] sm:$0xff] }
 0x149   : > { %3549 = vmatmul.msk.f32.gmra.mxu3 %vm274_vm1, %v1088_v11  ;;  %3587 = vmatmul.msk.f32.gmra.mxu0 %vm274_vm1, %v1398_v19 }
 0x14b   : > { %v956_v56 = vpop.f32.mrf.mxu2 }
 0x14c   : > { %v1036_v22 = vadd.f32 %v956_v56, %v683_v32  ;;  %v1266_v13 = vpop.f32.mrf.mxu3  ;;  %v1091_v32 = vld [vmem:[%s3836_s5 + $0x11a] sm:$0xff] }
 0x14d   : > { %v685_v27 = vpop.f32.mrf.mxu1 }
 0x14e   : > { %v1346_v34 = vadd.f32 %v1266_v13, %v1036_v22  ;;  %v1579_v42 = vpop.f32.mrf.mxu0  ;;  %v686_v39 = vadd.f32 %v685_v27, %v4067_v46  ;;  %v1401_v22 = vld [vmem:[%s3836_s5 + $0x11b] sm:$0xff] }
 0x150   : > { %v4263_v29 = vadd.f32 %v1576_v35, %v1346_v34  ;;  %3474 = vmatmul.msk.f32.gmra.mxu1 %vm274_vm1, %v230_v21  ;;  %3512 = vmatmul.msk.f32.gmra.mxu2 %vm274_vm1, %v1087_v4  ;;  %v232_v35 = vld [vmem:[%s3836_s5 + $0x108] sm:$0xff] }
 0x151   : > { %3550 = vmatmul.msk.f32.gmra.mxu3 %vm274_vm1, %v1089_v18  ;;  %3588 = vmatmul.msk.f32.gmra.mxu0 %vm274_vm1, %v1399_v41 }
 0x153   : > { %v959_v63 = vpop.f32.mrf.mxu2 }
 0x154   : > { %v1037_v47 = vadd.f32 %v959_v63, %v686_v39  ;;  %v1269_v7 = vpop.f32.mrf.mxu3  ;;  %v1092_v39 = vld [vmem:[%s3836_s5 + $0x122] sm:$0xff] }
 0x155   : > { %v688_v50 = vpop.f32.mrf.mxu1 }
 0x156   : > { %v1347_v57 = vadd.f32 %v1269_v7, %v1037_v47  ;;  %v1582_v49 = vpop.f32.mrf.mxu0  ;;  %v689_v46 = vadd.f32 %v688_v50, %v4082_v53  ;;  %v1402_v47 = vld [vmem:[%s3836_s5 + $0x123] sm:$0xff] }
 0x158   : > { %v4273_v54 = vadd.f32 %v1579_v42, %v1347_v57  ;;  %3475 = vmatmul.msk.f32.gmra.mxu1 %vm274_vm1, %v231_v28  ;;  %3513 = vmatmul.msk.f32.gmra.mxu2 %vm274_vm1, %v1088_v11  ;;  %v233_v42 = vld [vmem:[%s3836_s5 + $0x110] sm:$0xff] }
 0x159   : > { %3551 = vmatmul.msk.f32.gmra.mxu3 %vm274_vm1, %v1090_v25  ;;  %3589 = vmatmul.msk.f32.gmra.mxu0 %vm274_vm1, %v1400_v0 }
 0x15b   : > { %v962_v4 = vpop.f32.mrf.mxu2 }
 0x15c   : > { %v1038_v5 = vadd.f32 %v962_v4, %v689_v46  ;;  %v1272_v14 = vpop.f32.mrf.mxu3  ;;  %v1093_v46 = vld [vmem:[%s3836_s5 + $0x12a] sm:$0xff] }
 0x15d   : > { %v691_v12 = vpop.f32.mrf.mxu1 }
 0x15e   : > { %v1348_v19 = vadd.f32 %v1272_v14, %v1038_v5  ;;  %v1585_v56 = vpop.f32.mrf.mxu0  ;;  %v692_v53 = vadd.f32 %v691_v12, %v4097_v60  ;;  %v1403_v5 = vld [vmem:[%s3836_s5 + $0x12b] sm:$0xff] }
 0x160   : > { %v4283_v13 = vadd.f32 %v1582_v49, %v1348_v19  ;;  %3476 = vmatmul.msk.f32.gmra.mxu1 %vm274_vm1, %v232_v35  ;;  %3514 = vmatmul.msk.f32.gmra.mxu2 %vm274_vm1, %v1089_v18  ;;  %v234_v49 = vld [vmem:[%s3836_s5 + $0x118] sm:$0xff] }
 0x161   : > { %3552 = vmatmul.msk.f32.gmra.mxu3 %vm274_vm1, %v1091_v32  ;;  %3590 = vmatmul.msk.f32.gmra.mxu0 %vm274_vm1, %v1401_v22  ;;  %v1988_v22 = vld [vmem:[%s3836_s5 + $0x24] sm:$0xff] }
 0x163   : > { %v965_v11 = vpop.f32.mrf.mxu2 }
 0x164   : > { %v1039_v27 = vadd.f32 %v965_v11, %v692_v53  ;;  %v1275_v21 = vpop.f32.mrf.mxu3  ;;  %v2298_v11 = vld [vmem:[%s3836_s5 + $0x25] sm:$0xff] }
 0x165   : > { %v694_v34 = vpop.f32.mrf.mxu1 }
 0x166   : > { %v1349_v41 = vadd.f32 %v1275_v21, %v1039_v27  ;;  %v1588_v63 = vpop.f32.mrf.mxu0  ;;  %v695_v60 = vadd.f32 %v694_v34, %v3988_v9  ;;  %v2608_v21 = vld [vmem:[%s3836_s5 + $0x26] sm:$0xff] }
 0x168   : > { %v4293_v7 = vadd.f32 %v1585_v56, %v1349_v41  ;;  %3477 = vmatmul.msk.f32.gmra.mxu1 %vm274_vm1, %v233_v42  ;;  %3515 = vmatmul.msk.f32.gmra.mxu2 %vm274_vm1, %v1090_v25  ;;  %v1678_v56 = vld [vmem:[%s3836_s5 + $0x14] sm:$0xff] }
 0x169   : > { %3553 = vmatmul.msk.f32.gmra.mxu3 %vm274_vm1, %v1092_v39  ;;  %3591 = vmatmul.msk.f32.gmra.mxu0 %vm274_vm1, %v1402_v47  ;;  %v1989_v47 = vld [vmem:[%s3836_s5 + $0x2c] sm:$0xff] }
 0x16b   : > { %v968_v18 = vpop.f32.mrf.mxu2 }
 0x16c   : > { %v1040_v50 = vadd.f32 %v968_v18, %v695_v60  ;;  %v1278_v28 = vpop.f32.mrf.mxu3  ;;  %v2299_v18 = vld [vmem:[%s3836_s5 + $0x2d] sm:$0xff] }
 0x16d   : > { %v697_v57 = vpop.f32.mrf.mxu1 }
 0x16e   : > { %v1350_v0 = vadd.f32 %v1278_v28, %v1040_v50  ;;  %v1591_v4 = vpop.f32.mrf.mxu0  ;;  %v698_v9 = vadd.f32 %v697_v57, %v4003_v16  ;;  %v2609_v28 = vld [vmem:[%s3836_s5 + $0x2e] sm:$0xff] }
 0x170   : > { %v4303_v25 = vadd.f32 %v1588_v63, %v1350_v0  ;;  %3478 = vmatmul.msk.f32.gmra.mxu1 %vm274_vm1, %v234_v49  ;;  %3516 = vmatmul.msk.f32.gmra.mxu2 %vm274_vm1, %v1091_v32  ;;  %v1679_v63 = vld [vmem:[%s3836_s5 + $0x1c] sm:$0xff] }
 0x171   : > { %3554 = vmatmul.msk.f32.gmra.mxu3 %vm274_vm1, %v1093_v46  ;;  %3592 = vmatmul.msk.f32.gmra.mxu0 %vm274_vm1, %v1403_v5  ;;  %v1990_v5 = vld [vmem:[%s3836_s5 + $0x34] sm:$0xff] }
 0x173   : > { %v971_v14 = vpop.f32.mrf.mxu2 }
 0x174   : > { %v1041_v12 = vadd.f32 %v971_v14, %v698_v9  ;;  %v1281_v35 = vpop.f32.mrf.mxu3  ;;  %v2300_v14 = vld [vmem:[%s3836_s5 + $0x35] sm:$0xff] }
 0x175   : > { %v700_v19 = vpop.f32.mrf.mxu1 }
 0x176   : > { %v1351_v53 = vadd.f32 %v1281_v35, %v1041_v12  ;;  %v1594_v27 = vpop.f32.mrf.mxu0  ;;  %v701_v16 = vadd.f32 %v700_v19, %v4018_v23  ;;  %v2610_v35 = vld [vmem:[%s3836_s5 + $0x36] sm:$0xff] }
 0x178   : > { %v4314_v32 = vadd.f32 %v1591_v4, %v1351_v53  ;;  %3595 = vmatmul.msk.f32.vlgmr.msra.gmra.mxu1 %vm274_vm1, %v1678_v56  ;;  %3633 = vmatmul.msk.f32.vlgmr.msra.gmra.mxu2 %vm274_vm1, %v1988_v22 }
 0x179   : > { %3671 = vmatmul.msk.f32.vlgmr.msra.gmra.mxu3 %vm274_vm1, %v2298_v11  ;;  %3709 = vmatmul.msk.f32.vlgmr.msra.gmra.mxu0 %vm274_vm1, %v2608_v21  ;;  %v1991_v21 = vld [vmem:[%s3836_s5 + $0x3c] sm:$0xff] }
 0x17b   : > { %v974_v34 = vpop.f32.mrf.mxu2 }
 0x17c   : > { %v1042_v42 = vadd.f32 %v974_v34, %v701_v16  ;;  %v1284_v41 = vpop.f32.mrf.mxu3  ;;  %v2301_v34 = vld [vmem:[%s3836_s5 + $0x3d] sm:$0xff] }
 0x17d   : > { %v703_v39 = vpop.f32.mrf.mxu1 }
 0x17e   : > { %v1352_v60 = vadd.f32 %v1284_v41, %v1042_v42  ;;  %v1597_v50 = vpop.f32.mrf.mxu0  ;;  %v704_v23 = vadd.f32 %v703_v39, %v4033_v30 }
 0x180   : > { %v4325_v57 = vadd.f32 %v1594_v27, %v1352_v60  ;;  %3596 = vmatmul.msk.f32.gmra.mxu1 %vm274_vm1, %v1679_v63  ;;  %3634 = vmatmul.msk.f32.gmra.mxu2 %vm274_vm1, %v1989_v47 }
 0x181   : > { %3672 = vmatmul.msk.f32.gmra.mxu3 %vm274_vm1, %v2299_v18  ;;  %3710 = vmatmul.msk.f32.gmra.mxu0 %vm274_vm1, %v2609_v28 }
 0x183   : > { %v977_v49 = vpop.f32.mrf.mxu2 }
 0x184   : > { %v1043_v0 = vadd.f32 %v977_v49, %v704_v23  ;;  %v1287_v46 = vpop.f32.mrf.mxu3  ;;  %v2302_v23 = vld [vmem:[%s3836_s5 + $0x45] sm:$0xff] }
 0x185   : > { %v706_v4 = vpop.f32.mrf.mxu1 }
 0x186   : > { %v1353_v9 = vadd.f32 %v1287_v46, %v1043_v0  ;;  %v1600_v12 = vpop.f32.mrf.mxu0  ;;  %v707_v30 = vadd.f32 %v706_v4, %v4048_v37 }
 0x188   : > { %v4335_v19 = vadd.f32 %v1597_v50, %v1353_v9  ;;  %3597 = vmatmul.msk.f32.gmra.mxu1 %vm274_vm1, %v1988_v22  ;;  %3635 = vmatmul.msk.f32.gmra.mxu2 %vm274_vm1, %v1990_v5  ;;  %v2611_v22 = vld [vmem:[%s3836_s5 + $0x3e] sm:$0xff] }
 0x189   : > { %3673 = vmatmul.msk.f32.gmra.mxu3 %vm274_vm1, %v2300_v14  ;;  %3711 = vmatmul.msk.f32.gmra.mxu0 %vm274_vm1, %v2610_v35  ;;  %v1992_v50 = vld [vmem:[%s3836_s5 + $0x44] sm:$0xff] }
 0x18b   : > { %v980_v56 = vpop.f32.mrf.mxu2 }
 0x18c   : > { %v1044_v53 = vadd.f32 %v980_v56, %v707_v30  ;;  %v1290_v11 = vpop.f32.mrf.mxu3  ;;  %v2303_v30 = vld [vmem:[%s3836_s5 + $0x4d] sm:$0xff] }
 0x18d   : > { %v709_v27 = vpop.f32.mrf.mxu1 }
 0x18e   : > { %v1354_v16 = vadd.f32 %v1290_v11, %v1044_v53  ;;  %v1603_v42 = vpop.f32.mrf.mxu0  ;;  %v710_v37 = vadd.f32 %v709_v27, %v4063_v44 }
 0x190   : > { %v4345_v41 = vadd.f32 %v1600_v12, %v1354_v16  ;;  %3598 = vmatmul.msk.f32.gmra.mxu1 %vm274_vm1, %v1989_v47  ;;  %3636 = vmatmul.msk.f32.gmra.mxu2 %vm274_vm1, %v1991_v21  ;;  %v2612_v47 = vld [vmem:[%s3836_s5 + $0x46] sm:$0xff] }
 0x191   : > { %3674 = vmatmul.msk.f32.gmra.mxu3 %vm274_vm1, %v2301_v34  ;;  %3712 = vmatmul.msk.f32.gmra.mxu0 %vm274_vm1, %v2611_v22  ;;  %v1993_v12 = vld [vmem:[%s3836_s5 + $0x4c] sm:$0xff] }
 0x193   : > { %v983_v39 = vpop.f32.mrf.mxu2 }
 0x194   : > { %v1045_v63 = vadd.f32 %v983_v39, %v710_v37  ;;  %v1293_v60 = vpop.f32.mrf.mxu3  ;;  %v2304_v37 = vld [vmem:[%s3836_s5 + $0x55] sm:$0xff] }
 0x195   : > { %v712_v18 = vpop.f32.mrf.mxu1 }
 0x196   : > { %v1355_v28 = vadd.f32 %v1293_v60, %v1045_v63  ;;  %v1606_v49 = vpop.f32.mrf.mxu0  ;;  %v713_v44 = vadd.f32 %v712_v18, %v4078_v51 }
 0x198   : > { %v4355_v0 = vadd.f32 %v1603_v42, %v1355_v28  ;;  %3599 = vmatmul.msk.f32.gmra.mxu1 %vm274_vm1, %v1990_v5  ;;  %3637 = vmatmul.msk.f32.gmra.mxu2 %vm274_vm1, %v1992_v50  ;;  %v2613_v5 = vld [vmem:[%s3836_s5 + $0x4e] sm:$0xff] }
 0x199   : > { %3675 = vmatmul.msk.f32.gmra.mxu3 %vm274_vm1, %v2302_v23  ;;  %3713 = vmatmul.msk.f32.gmra.mxu0 %vm274_vm1, %v2612_v47  ;;  %v1994_v42 = vld [vmem:[%s3836_s5 + $0x54] sm:$0xff] }
 0x19b   : > { %v986_v46 = vpop.f32.mrf.mxu2 }
 0x19c   : > { %v1046_v4 = vadd.f32 %v986_v46, %v713_v44  ;;  %v1296_v9 = vpop.f32.mrf.mxu3  ;;  %v2305_v44 = vld [vmem:[%s3836_s5 + $0x5d] sm:$0xff] }
 0x19d   : > { %v715_v14 = vpop.f32.mrf.mxu1 }
 0x19e   : > { %v1356_v35 = vadd.f32 %v1296_v9, %v1046_v4  ;;  %v1609_v56 = vpop.f32.mrf.mxu0  ;;  %v716_v51 = vadd.f32 %v715_v14, %v4093_v58 }
 0x1a0   : > { %v4365_v53 = vadd.f32 %v1606_v49, %v1356_v35  ;;  %3600 = vmatmul.msk.f32.gmra.mxu1 %vm274_vm1, %v1991_v21  ;;  %3638 = vmatmul.msk.f32.gmra.mxu2 %vm274_vm1, %v1993_v12  ;;  %v2614_v21 = vld [vmem:[%s3836_s5 + $0x56] sm:$0xff] }
 0x1a1   : > { %3676 = vmatmul.msk.f32.gmra.mxu3 %vm274_vm1, %v2303_v30  ;;  %3714 = vmatmul.msk.f32.gmra.mxu0 %vm274_vm1, %v2613_v5  ;;  %v1995_v49 = vld [vmem:[%s3836_s5 + $0x5c] sm:$0xff] }
 0x1a3   : > { %v989_v11 = vpop.f32.mrf.mxu2 }
 0x1a4   : > { %v1047_v27 = vadd.f32 %v989_v11, %v716_v51  ;;  %v1299_v16 = vpop.f32.mrf.mxu3  ;;  %v2306_v51 = vld [vmem:[%s3836_s5 + $0x65] sm:$0xff] }
 0x1a5   : > { %v718_v34 = vpop.f32.mrf.mxu1 }
 0x1a6   : > { %v1357_v22 = vadd.f32 %v1299_v16, %v1047_v27  ;;  %v1612_v39 = vpop.f32.mrf.mxu0  ;;  %v719_v58 = vadd.f32 %v718_v34, %v4108_v1 }
 0x1a8   : > { %v4375_v63 = vadd.f32 %v1609_v56, %v1357_v22  ;;  %3601 = vmatmul.msk.f32.gmra.mxu1 %vm274_vm1, %v1992_v50  ;;  %3639 = vmatmul.msk.f32.gmra.mxu2 %vm274_vm1, %v1994_v42  ;;  %v2615_v50 = vld [vmem:[%s3836_s5 + $0x5e] sm:$0xff] }
 0x1a9   : > { %3677 = vmatmul.msk.f32.gmra.mxu3 %vm274_vm1, %v2304_v37  ;;  %3715 = vmatmul.msk.f32.gmra.mxu0 %vm274_vm1, %v2614_v21  ;;  %v1996_v56 = vld [vmem:[%s3836_s5 + $0x64] sm:$0xff] }
 0x1ab   : > { %v992_v60 = vpop.f32.mrf.mxu2 }
 0x1ac   : > { %v1048_v18 = vadd.f32 %v992_v60, %v719_v58  ;;  %v1302_v28 = vpop.f32.mrf.mxu3  ;;  %v2307_v58 = vld [vmem:[%s3836_s5 + $0x6d] sm:$0xff] }
 0x1ad   : > { %v721_v23 = vpop.f32.mrf.mxu1 }
 0x1ae   : > { %v1358_v47 = vadd.f32 %v1302_v28, %v1048_v18  ;;  %v1615_v46 = vpop.f32.mrf.mxu0  ;;  %v722_v1 = vadd.f32 %v721_v23, %v3990_v10 }
 0x1b0   : > { %v4385_v4 = vadd.f32 %v1612_v39, %v1358_v47  ;;  %3602 = vmatmul.msk.f32.gmra.mxu1 %vm274_vm1, %v1993_v12  ;;  %3640 = vmatmul.msk.f32.gmra.mxu2 %vm274_vm1, %v1995_v49  ;;  %v2616_v12 = vld [vmem:[%s3836_s5 + $0x66] sm:$0xff] }
 0x1b1   : > { %3678 = vmatmul.msk.f32.gmra.mxu3 %vm274_vm1, %v2305_v44  ;;  %3716 = vmatmul.msk.f32.gmra.mxu0 %vm274_vm1, %v2615_v50  ;;  %v1997_v39 = vld [vmem:[%s3836_s5 + $0x6c] sm:$0xff] }
 0x1b3   : > { %v995_v9 = vpop.f32.mrf.mxu2 }
 0x1b4   : > { %v1049_v14 = vadd.f32 %v995_v9, %v722_v1  ;;  %v1305_v35 = vpop.f32.mrf.mxu3  ;;  %v2308_v1 = vld [vmem:[%s3836_s5 + $0x75] sm:$0xff] }
 0x1b5   : > { %v724_v30 = vpop.f32.mrf.mxu1 }
 0x1b6   : > { %v1359_v5 = vadd.f32 %v1305_v35, %v1049_v14  ;;  %v1618_v11 = vpop.f32.mrf.mxu0  ;;  %v725_v10 = vadd.f32 %v724_v30, %v4005_v17 }
 0x1b8   : > { %v4395_v27 = vadd.f32 %v1615_v46, %v1359_v5  ;;  %3603 = vmatmul.msk.f32.gmra.mxu1 %vm274_vm1, %v1994_v42  ;;  %3641 = vmatmul.msk.f32.gmra.mxu2 %vm274_vm1, %v1996_v56  ;;  %v2617_v42 = vld [vmem:[%s3836_s5 + $0x6e] sm:$0xff] }
 0x1b9   : > { %3679 = vmatmul.msk.f32.gmra.mxu3 %vm274_vm1, %v2306_v51  ;;  %3717 = vmatmul.msk.f32.gmra.mxu0 %vm274_vm1, %v2616_v12  ;;  %v1998_v46 = vld [vmem:[%s3836_s5 + $0x74] sm:$0xff] }
 0x1bb   : > { %v998_v16 = vpop.f32.mrf.mxu2 }
 0x1bc   : > { %v1050_v34 = vadd.f32 %v998_v16, %v725_v10  ;;  %v1308_v22 = vpop.f32.mrf.mxu3  ;;  %v2309_v10 = vld [vmem:[%s3836_s5 + $0x7d] sm:$0xff] }
 0x1bd   : > { %v727_v37 = vpop.f32.mrf.mxu1 }
 0x1be   : > { %v1360_v21 = vadd.f32 %v1308_v22, %v1050_v34  ;;  %v1621_v60 = vpop.f32.mrf.mxu0  ;;  %v728_v17 = vadd.f32 %v727_v37, %v4020_v24 }
 0x1c0   : > { %v4405_v18 = vadd.f32 %v1618_v11, %v1360_v21  ;;  %3604 = vmatmul.msk.f32.gmra.mxu1 %vm274_vm1, %v1995_v49  ;;  %3642 = vmatmul.msk.f32.gmra.mxu2 %vm274_vm1, %v1997_v39  ;;  %v2618_v49 = vld [vmem:[%s3836_s5 + $0x76] sm:$0xff] }
 0x1c1   : > { %3680 = vmatmul.msk.f32.gmra.mxu3 %vm274_vm1, %v2307_v58  ;;  %3718 = vmatmul.msk.f32.gmra.mxu0 %vm274_vm1, %v2617_v42  ;;  %v1999_v11 = vld [vmem:[%s3836_s5 + $0x7c] sm:$0xff] }
 0x1c3   : > { %v1001_v28 = vpop.f32.mrf.mxu2 }
 0x1c4   : > { %v1051_v23 = vadd.f32 %v1001_v28, %v728_v17  ;;  %v1311_v47 = vpop.f32.mrf.mxu3  ;;  %v2310_v17 = vld [vmem:[%s3836_s5 + $0x85] sm:$0xff] }
 0x1c5   : > { %v730_v44 = vpop.f32.mrf.mxu1 }
 0x1c6   : > { %v1361_v50 = vadd.f32 %v1311_v47, %v1051_v23  ;;  %v1624_v9 = vpop.f32.mrf.mxu0  ;;  %v731_v24 = vadd.f32 %v730_v44, %v4035_v31 }
 0x1c8   : > { %v4415_v14 = vadd.f32 %v1621_v60, %v1361_v50  ;;  %3605 = vmatmul.msk.f32.gmra.mxu1 %vm274_vm1, %v1996_v56  ;;  %3643 = vmatmul.msk.f32.gmra.mxu2 %vm274_vm1, %v1998_v46  ;;  %v2619_v56 = vld [vmem:[%s3836_s5 + $0x7e] sm:$0xff] }
 0x1c9   : > { %3681 = vmatmul.msk.f32.gmra.mxu3 %vm274_vm1, %v2308_v1  ;;  %3719 = vmatmul.msk.f32.gmra.mxu0 %vm274_vm1, %v2618_v49  ;;  %v2000_v60 = vld [vmem:[%s3836_s5 + $0x84] sm:$0xff] }
 0x1cb   : > { %v1004_v35 = vpop.f32.mrf.mxu2 }
 0x1cc   : > { %v1052_v30 = vadd.f32 %v1004_v35, %v731_v24  ;;  %v1314_v5 = vpop.f32.mrf.mxu3  ;;  %v2311_v24 = vld [vmem:[%s3836_s5 + $0x8d] sm:$0xff] }
 0x1cd   : > { %v733_v51 = vpop.f32.mrf.mxu1 }
 0x1ce   : > { %v1362_v12 = vadd.f32 %v1314_v5, %v1052_v30  ;;  %v1627_v16 = vpop.f32.mrf.mxu0  ;;  %v734_v31 = vadd.f32 %v733_v51, %v4050_v38 }
 0x1d0   : > { %v4425_v34 = vadd.f32 %v1624_v9, %v1362_v12  ;;  %3606 = vmatmul.msk.f32.gmra.mxu1 %vm274_vm1, %v1997_v39  ;;  %3644 = vmatmul.msk.f32.gmra.mxu2 %vm274_vm1, %v1999_v11  ;;  %v2620_v39 = vld [vmem:[%s3836_s5 + $0x86] sm:$0xff] }
 0x1d1   : > { %3682 = vmatmul.msk.f32.gmra.mxu3 %vm274_vm1, %v2309_v10  ;;  %3720 = vmatmul.msk.f32.gmra.mxu0 %vm274_vm1, %v2619_v56  ;;  %v2001_v9 = vld [vmem:[%s3836_s5 + $0x8c] sm:$0xff] }
 0x1d3   : > { %v1007_v22 = vpop.f32.mrf.mxu2 }
 0x1d4   : > { %v1053_v37 = vadd.f32 %v1007_v22, %v734_v31  ;;  %v1317_v21 = vpop.f32.mrf.mxu3  ;;  %v2312_v31 = vld [vmem:[%s3836_s5 + $0x95] sm:$0xff] }
 0x1d5   : > { %v736_v58 = vpop.f32.mrf.mxu1 }
 0x1d6   : > { %v1363_v42 = vadd.f32 %v1317_v21, %v1053_v37  ;;  %v1630_v28 = vpop.f32.mrf.mxu0  ;;  %v737_v38 = vadd.f32 %v736_v58, %v4065_v45 }
 0x1d8   : > { %v4435_v23 = vadd.f32 %v1627_v16, %v1363_v42  ;;  %3607 = vmatmul.msk.f32.gmra.mxu1 %vm274_vm1, %v1998_v46  ;;  %3645 = vmatmul.msk.f32.gmra.mxu2 %vm274_vm1, %v2000_v60  ;;  %v2621_v46 = vld [vmem:[%s3836_s5 + $0x8e] sm:$0xff] }
 0x1d9   : > { %3683 = vmatmul.msk.f32.gmra.mxu3 %vm274_vm1, %v2310_v17  ;;  %3721 = vmatmul.msk.f32.gmra.mxu0 %vm274_vm1, %v2620_v39  ;;  %v2002_v16 = vld [vmem:[%s3836_s5 + $0x94] sm:$0xff] }
 0x1db   : > { %v1010_v47 = vpop.f32.mrf.mxu2 }
 0x1dc   : > { %v1054_v44 = vadd.f32 %v1010_v47, %v737_v38  ;;  %v1320_v50 = vpop.f32.mrf.mxu3  ;;  %v2313_v38 = vld [vmem:[%s3836_s5 + $0x9d] sm:$0xff] }
 0x1dd   : > { %v739_v1 = vpop.f32.mrf.mxu1 }
 0x1de   : > { %v1364_v49 = vadd.f32 %v1320_v50, %v1054_v44  ;;  %v1633_v35 = vpop.f32.mrf.mxu0  ;;  %v740_v45 = vadd.f32 %v739_v1, %v4080_v52 }
 0x1e0   : > { %v4445_v30 = vadd.f32 %v1630_v28, %v1364_v49  ;;  %3608 = vmatmul.msk.f32.gmra.mxu1 %vm274_vm1, %v1999_v11  ;;  %3646 = vmatmul.msk.f32.gmra.mxu2 %vm274_vm1, %v2001_v9  ;;  %v2622_v11 = vld [vmem:[%s3836_s5 + $0x96] sm:$0xff] }
 0x1e1   : > { %3684 = vmatmul.msk.f32.gmra.mxu3 %vm274_vm1, %v2311_v24  ;;  %3722 = vmatmul.msk.f32.gmra.mxu0 %vm274_vm1, %v2621_v46  ;;  %v2003_v28 = vld [vmem:[%s3836_s5 + $0x9c] sm:$0xff] }
 0x1e3   : > { %v1013_v5 = vpop.f32.mrf.mxu2 }
 0x1e4   : > { %v1055_v51 = vadd.f32 %v1013_v5, %v740_v45  ;;  %v1323_v12 = vpop.f32.mrf.mxu3  ;;  %v2314_v45 = vld [vmem:[%s3836_s5 + $0xa5] sm:$0xff] }
 0x1e5   : > { %v742_v10 = vpop.f32.mrf.mxu1 }
 0x1e6   : > { %v1365_v56 = vadd.f32 %v1323_v12, %v1055_v51  ;;  %v1636_v22 = vpop.f32.mrf.mxu0  ;;  %v743_v52 = vadd.f32 %v742_v10, %v4095_v59 }
 0x1e8   : > { %v4455_v37 = vadd.f32 %v1633_v35, %v1365_v56  ;;  %3609 = vmatmul.msk.f32.gmra.mxu1 %vm274_vm1, %v2000_v60  ;;  %3647 = vmatmul.msk.f32.gmra.mxu2 %vm274_vm1, %v2002_v16  ;;  %v2623_v60 = vld [vmem:[%s3836_s5 + $0x9e] sm:$0xff] }
 0x1e9   : > { %3685 = vmatmul.msk.f32.gmra.mxu3 %vm274_vm1, %v2312_v31  ;;  %3723 = vmatmul.msk.f32.gmra.mxu0 %vm274_vm1, %v2622_v11  ;;  %v2004_v35 = vld [vmem:[%s3836_s5 + $0xa4] sm:$0xff] }
 0x1eb   : > { %v1016_v21 = vpop.f32.mrf.mxu2 }
 0x1ec   : > { %v1056_v58 = vadd.f32 %v1016_v21, %v743_v52  ;;  %v1326_v42 = vpop.f32.mrf.mxu3  ;;  %v2315_v52 = vld [vmem:[%s3836_s5 + $0xad] sm:$0xff] }
 0x1ed   : > { %v745_v17 = vpop.f32.mrf.mxu1 }
 0x1ee   : > { %v1366_v39 = vadd.f32 %v1326_v42, %v1056_v58  ;;  %v1639_v47 = vpop.f32.mrf.mxu0  ;;  %v746_v59 = vadd.f32 %v745_v17, %v4110_v2 }
 0x1f0   : > { %v4465_v44 = vadd.f32 %v1636_v22, %v1366_v39  ;;  %3610 = vmatmul.msk.f32.gmra.mxu1 %vm274_vm1, %v2001_v9  ;;  %3648 = vmatmul.msk.f32.gmra.mxu2 %vm274_vm1, %v2003_v28  ;;  %v2624_v9 = vld [vmem:[%s3836_s5 + $0xa6] sm:$0xff] }
 0x1f1   : > { %3686 = vmatmul.msk.f32.gmra.mxu3 %vm274_vm1, %v2313_v38  ;;  %3724 = vmatmul.msk.f32.gmra.mxu0 %vm274_vm1, %v2623_v60  ;;  %v2005_v22 = vld [vmem:[%s3836_s5 + $0xac] sm:$0xff] }
 0x1f3   : > { %v1019_v50 = vpop.f32.mrf.mxu2 }
 0x1f4   : > { %v1057_v1 = vadd.f32 %v1019_v50, %v746_v59  ;;  %v1329_v49 = vpop.f32.mrf.mxu3  ;;  %v2316_v59 = vld [vmem:[%s3836_s5 + $0xb5] sm:$0xff] }
 0x1f5   : > { %v1844_v24 = vpop.f32.mrf.mxu1  ;;  %v2626_v50 = vld [vmem:[%s3836_s5 + $0xb6] sm:$0xff] }
 0x1f6   : > { %v1367_v46 = vadd.f32 %v1329_v49, %v1057_v1  ;;  %v2774_v5 = vpop.f32.mrf.mxu0  ;;  %v1952_v2 = vadd.f32 %v1844_v24, %v4123_v36 }
 0x1f8   : > { %v4476_v51 = vadd.f32 %v1639_v47, %v1367_v46  ;;  %3611 = vmatmul.msk.f32.gmra.mxu1 %vm274_vm1, %v2002_v16  ;;  %3649 = vmatmul.msk.f32.gmra.mxu2 %vm274_vm1, %v2004_v35  ;;  %v2625_v16 = vld [vmem:[%s3836_s5 + $0xae] sm:$0xff] }
 0x1f9   : > { %3687 = vmatmul.msk.f32.gmra.mxu3 %vm274_vm1, %v2314_v45  ;;  %3725 = vmatmul.msk.f32.gmra.mxu0 %vm274_vm1, %v2624_v9  ;;  %v2006_v47 = vld [vmem:[%s3836_s5 + $0xb4] sm:$0xff] }
 0x1fb   : > { %v2154_v12 = vpop.f32.mrf.mxu2 }
 0x1fc   : > { %v2262_v10 = vadd.f32 %v2154_v12, %v1952_v2  ;;  %v2464_v56 = vpop.f32.mrf.mxu3  ;;  %v2317_v2 = vld [vmem:[%s3836_s5 + $0xbd] sm:$0xff] }
 0x1fd   : > { %v1847_v31 = vpop.f32.mrf.mxu1  ;;  %v2627_v12 = vld [vmem:[%s3836_s5 + $0xbe] sm:$0xff] }
 0x1fe   : > { %v2572_v11 = vadd.f32 %v2464_v56, %v2262_v10  ;;  %v2777_v21 = vpop.f32.mrf.mxu0  ;;  %v1953_v58 = vadd.f32 %v1847_v31, %v4133_v61 }
 0x200   : > { %v4491_v36 = vadd.f32 %v2774_v5, %v2572_v11  ;;  %3612 = vmatmul.msk.f32.gmra.mxu1 %vm274_vm1, %v2003_v28  ;;  %3650 = vmatmul.msk.f32.gmra.mxu2 %vm274_vm1, %v2005_v22  ;;  %v2007_v5 = vld [vmem:[%s3836_s5 + $0xbc] sm:$0xff] }
 0x201   : > { %3688 = vmatmul.msk.f32.gmra.mxu3 %vm274_vm1, %v2315_v52  ;;  %3726 = vmatmul.msk.f32.gmra.mxu0 %vm274_vm1, %v2625_v16 }
 0x202   : > { %2918 = vst [vmem:[%s4489_s20] sm:$0xff] %v4491_v36 }
 0x203   : > { %v2157_v42 = vpop.f32.mrf.mxu2 }
 0x204   : > { %v2263_v17 = vadd.f32 %v2157_v42, %v1953_v58  ;;  %v2467_v39 = vpop.f32.mrf.mxu3  ;;  %v2318_v58 = vld [vmem:[%s3836_s5 + $0xc5] sm:$0xff] }
 0x205   : > { %v1850_v38 = vpop.f32.mrf.mxu1  ;;  %v2628_v42 = vld [vmem:[%s3836_s5 + $0xc6] sm:$0xff] }
 0x206   : > { %v2573_v60 = vadd.f32 %v2467_v39, %v2263_v17  ;;  %v2780_v28 = vpop.f32.mrf.mxu0  ;;  %v1954_v61 = vadd.f32 %v1850_v38, %v4143_v20 }
 0x208   : > { %v4503_v1 = vadd.f32 %v2777_v21, %v2573_v60  ;;  %3613 = vmatmul.msk.f32.gmra.mxu1 %vm274_vm1, %v2004_v35  ;;  %3651 = vmatmul.msk.f32.gmra.mxu2 %vm274_vm1, %v2006_v47  ;;  %v2008_v21 = vld [vmem:[%s3836_s5 + $0xc4] sm:$0xff] }
 0x209   : > { %3689 = vmatmul.msk.f32.gmra.mxu3 %vm274_vm1, %v2316_v59  ;;  %3727 = vmatmul.msk.f32.gmra.mxu0 %vm274_vm1, %v2626_v50 }
 0x20a   : > { %2919 = vst [vmem:[%s4489_s20 + $0x8] sm:$0xff] %v4503_v1 }
 0x20b   : > { %v2160_v49 = vpop.f32.mrf.mxu2 }
 0x20c   : > { %v2264_v24 = vadd.f32 %v2160_v49, %v1954_v61  ;;  %v2470_v46 = vpop.f32.mrf.mxu3  ;;  %v2319_v61 = vld [vmem:[%s3836_s5 + $0xcd] sm:$0xff] }
 0x20d   : > { %v1853_v45 = vpop.f32.mrf.mxu1  ;;  %v2629_v49 = vld [vmem:[%s3836_s5 + $0xce] sm:$0xff] }
 0x20e   : > { %v2574_v9 = vadd.f32 %v2470_v46, %v2264_v24  ;;  %v2783_v35 = vpop.f32.mrf.mxu0  ;;  %v1955_v20 = vadd.f32 %v1853_v45, %v4153_v43 }
 0x210   : > { %v4515_v10 = vadd.f32 %v2780_v28, %v2574_v9  ;;  %3614 = vmatmul.msk.f32.gmra.mxu1 %vm274_vm1, %v2005_v22  ;;  %3652 = vmatmul.msk.f32.gmra.mxu2 %vm274_vm1, %v2007_v5  ;;  %v2009_v28 = vld [vmem:[%s3836_s5 + $0xcc] sm:$0xff] }
 0x211   : > { %3690 = vmatmul.msk.f32.gmra.mxu3 %vm274_vm1, %v2317_v2  ;;  %3728 = vmatmul.msk.f32.gmra.mxu0 %vm274_vm1, %v2627_v12 }
 0x212   : > { %2920 = vst [vmem:[%s4489_s20 + $0x10] sm:$0xff] %v4515_v10 }
 0x213   : > { %v2163_v56 = vpop.f32.mrf.mxu2 }
 0x214   : > { %v2265_v31 = vadd.f32 %v2163_v56, %v1955_v20  ;;  %v2473_v11 = vpop.f32.mrf.mxu3  ;;  %v2320_v20 = vld [vmem:[%s3836_s5 + $0xd5] sm:$0xff] }
 0x215   : > { %v1856_v52 = vpop.f32.mrf.mxu1  ;;  %v2630_v56 = vld [vmem:[%s3836_s5 + $0xd6] sm:$0xff] }
 0x216   : > { %v2575_v16 = vadd.f32 %v2473_v11, %v2265_v31  ;;  %v2786_v22 = vpop.f32.mrf.mxu0  ;;  %v1956_v43 = vadd.f32 %v1856_v52, %v4163_v3 }
 0x218   : > { %v4527_v17 = vadd.f32 %v2783_v35, %v2575_v16  ;;  %3615 = vmatmul.msk.f32.gmra.mxu1 %vm274_vm1, %v2006_v47  ;;  %3653 = vmatmul.msk.f32.gmra.mxu2 %vm274_vm1, %v2008_v21  ;;  %v2010_v35 = vld [vmem:[%s3836_s5 + $0xd4] sm:$0xff] }
 0x219   : > { %3691 = vmatmul.msk.f32.gmra.mxu3 %vm274_vm1, %v2318_v58  ;;  %3729 = vmatmul.msk.f32.gmra.mxu0 %vm274_vm1, %v2628_v42 }
 0x21a   : > { %2921 = vst [vmem:[%s4489_s20 + $0x18] sm:$0xff] %v4527_v17 }
 0x21b   : > { %v2166_v39 = vpop.f32.mrf.mxu2 }
 0x21c   : > { %v2266_v38 = vadd.f32 %v2166_v39, %v1956_v43  ;;  %v2476_v60 = vpop.f32.mrf.mxu3  ;;  %v2321_v43 = vld [vmem:[%s3836_s5 + $0xdd] sm:$0xff] }
 0x21d   : > { %v1859_v59 = vpop.f32.mrf.mxu1  ;;  %v2631_v39 = vld [vmem:[%s3836_s5 + $0xde] sm:$0xff] }
 0x21e   : > { %v2576_v50 = vadd.f32 %v2476_v60, %v2266_v38  ;;  %v2789_v47 = vpop.f32.mrf.mxu0  ;;  %v1957_v3 = vadd.f32 %v1859_v59, %v4173_v26 }
 0x220   : > { %v4539_v24 = vadd.f32 %v2786_v22, %v2576_v50  ;;  %3616 = vmatmul.msk.f32.gmra.mxu1 %vm274_vm1, %v2007_v5  ;;  %3654 = vmatmul.msk.f32.gmra.mxu2 %vm274_vm1, %v2009_v28  ;;  %v2011_v22 = vld [vmem:[%s3836_s5 + $0xdc] sm:$0xff] }
 0x221   : > { %3692 = vmatmul.msk.f32.gmra.mxu3 %vm274_vm1, %v2319_v61  ;;  %3730 = vmatmul.msk.f32.gmra.mxu0 %vm274_vm1, %v2629_v49 }
 0x222   : > { %2922 = vst [vmem:[%s4489_s20 + $0x20] sm:$0xff] %v4539_v24 }
 0x223   : > { %v2169_v46 = vpop.f32.mrf.mxu2 }
 0x224   : > { %v2267_v45 = vadd.f32 %v2169_v46, %v1957_v3  ;;  %v2479_v9 = vpop.f32.mrf.mxu3  ;;  %v2322_v3 = vld [vmem:[%s3836_s5 + $0xe5] sm:$0xff] }
 0x225   : > { %v1862_v2 = vpop.f32.mrf.mxu1  ;;  %v2632_v46 = vld [vmem:[%s3836_s5 + $0xe6] sm:$0xff] }
 0x226   : > { %v2577_v12 = vadd.f32 %v2479_v9, %v2267_v45  ;;  %v2792_v5 = vpop.f32.mrf.mxu0  ;;  %v1958_v26 = vadd.f32 %v1862_v2, %v4183_v48 }
 0x228   : > { %v4551_v31 = vadd.f32 %v2789_v47, %v2577_v12  ;;  %3617 = vmatmul.msk.f32.gmra.mxu1 %vm274_vm1, %v2008_v21  ;;  %3655 = vmatmul.msk.f32.gmra.mxu2 %vm274_vm1, %v2010_v35  ;;  %v2012_v47 = vld [vmem:[%s3836_s5 + $0xe4] sm:$0xff] }
 0x229   : > { %3693 = vmatmul.msk.f32.gmra.mxu3 %vm274_vm1, %v2320_v20  ;;  %3731 = vmatmul.msk.f32.gmra.mxu0 %vm274_vm1, %v2630_v56 }
 0x22a   : > { %2923 = vst [vmem:[%s4489_s20 + $0x28] sm:$0xff] %v4551_v31 }
 0x22b   : > { %v2172_v11 = vpop.f32.mrf.mxu2 }
 0x22c   : > { %v2268_v52 = vadd.f32 %v2172_v11, %v1958_v26  ;;  %v2482_v16 = vpop.f32.mrf.mxu3  ;;  %v2323_v26 = vld [vmem:[%s3836_s5 + $0xed] sm:$0xff] }
 0x22d   : > { %v1865_v58 = vpop.f32.mrf.mxu1  ;;  %v2633_v11 = vld [vmem:[%s3836_s5 + $0xee] sm:$0xff] }
 0x22e   : > { %v2578_v42 = vadd.f32 %v2482_v16, %v2268_v52  ;;  %v2795_v21 = vpop.f32.mrf.mxu0  ;;  %v1959_v48 = vadd.f32 %v1865_v58, %v4193_v8 }
 0x230   : > { %v4563_v38 = vadd.f32 %v2792_v5, %v2578_v42  ;;  %3618 = vmatmul.msk.f32.gmra.mxu1 %vm274_vm1, %v2009_v28  ;;  %3656 = vmatmul.msk.f32.gmra.mxu2 %vm274_vm1, %v2011_v22  ;;  %v2013_v5 = vld [vmem:[%s3836_s5 + $0xec] sm:$0xff] }
 0x231   : > { %3694 = vmatmul.msk.f32.gmra.mxu3 %vm274_vm1, %v2321_v43  ;;  %3732 = vmatmul.msk.f32.gmra.mxu0 %vm274_vm1, %v2631_v39 }
 0x232   : > { %2924 = vst [vmem:[%s4489_s20 + $0x30] sm:$0xff] %v4563_v38 }
 0x233   : > { %v2175_v60 = vpop.f32.mrf.mxu2 }
 0x234   : > { %v2269_v59 = vadd.f32 %v2175_v60, %v1959_v48  ;;  %v2485_v50 = vpop.f32.mrf.mxu3  ;;  %v2324_v48 = vld [vmem:[%s3836_s5 + $0xf5] sm:$0xff] }
 0x235   : > { %v1868_v61 = vpop.f32.mrf.mxu1  ;;  %v2634_v60 = vld [vmem:[%s3836_s5 + $0xf6] sm:$0xff] }
 0x236   : > { %v2579_v49 = vadd.f32 %v2485_v50, %v2269_v59  ;;  %v2798_v28 = vpop.f32.mrf.mxu0  ;;  %v1960_v8 = vadd.f32 %v1868_v61, %v4203_v33 }
 0x238   : > { %v4575_v45 = vadd.f32 %v2795_v21, %v2579_v49  ;;  %3619 = vmatmul.msk.f32.gmra.mxu1 %vm274_vm1, %v2010_v35  ;;  %3657 = vmatmul.msk.f32.gmra.mxu2 %vm274_vm1, %v2012_v47  ;;  %v2014_v21 = vld [vmem:[%s3836_s5 + $0xf4] sm:$0xff] }
 0x239   : > { %3695 = vmatmul.msk.f32.gmra.mxu3 %vm274_vm1, %v2322_v3  ;;  %3733 = vmatmul.msk.f32.gmra.mxu0 %vm274_vm1, %v2632_v46 }
 0x23a   : > { %2925 = vst [vmem:[%s4489_s20 + $0x38] sm:$0xff] %v4575_v45 }
 0x23b   : > { %v2178_v9 = vpop.f32.mrf.mxu2 }
 0x23c   : > { %v2270_v2 = vadd.f32 %v2178_v9, %v1960_v8  ;;  %v2488_v12 = vpop.f32.mrf.mxu3  ;;  %v2325_v8 = vld [vmem:[%s3836_s5 + $0xfd] sm:$0xff] }
 0x23d   : > { %v1871_v20 = vpop.f32.mrf.mxu1  ;;  %v2635_v9 = vld [vmem:[%s3836_s5 + $0xfe] sm:$0xff] }
 0x23e   : > { %v2580_v56 = vadd.f32 %v2488_v12, %v2270_v2  ;;  %v2801_v35 = vpop.f32.mrf.mxu0  ;;  %v1961_v33 = vadd.f32 %v1871_v20, %v4213_v55 }
 0x240   : > { %v4587_v52 = vadd.f32 %v2798_v28, %v2580_v56  ;;  %3620 = vmatmul.msk.f32.gmra.mxu1 %vm274_vm1, %v2011_v22  ;;  %3658 = vmatmul.msk.f32.gmra.mxu2 %vm274_vm1, %v2013_v5  ;;  %v2015_v28 = vld [vmem:[%s3836_s5 + $0xfc] sm:$0xff] }
 0x241   : > { %3696 = vmatmul.msk.f32.gmra.mxu3 %vm274_vm1, %v2323_v26  ;;  %3734 = vmatmul.msk.f32.gmra.mxu0 %vm274_vm1, %v2633_v11 }
 0x242   : > { %2926 = vst [vmem:[%s4489_s20 + $0x40] sm:$0xff] %v4587_v52 }
 0x243   : > { %v2181_v16 = vpop.f32.mrf.mxu2 }
 0x244   : > { %v2271_v58 = vadd.f32 %v2181_v16, %v1961_v33  ;;  %v2491_v42 = vpop.f32.mrf.mxu3  ;;  %v2326_v33 = vld [vmem:[%s3836_s5 + $0x105] sm:$0xff] }
 0x245   : > { %v1874_v43 = vpop.f32.mrf.mxu1  ;;  %v2636_v16 = vld [vmem:[%s3836_s5 + $0x106] sm:$0xff] }
 0x246   : > { %v2581_v39 = vadd.f32 %v2491_v42, %v2271_v58  ;;  %v2804_v22 = vpop.f32.mrf.mxu0  ;;  %v1962_v55 = vadd.f32 %v1874_v43, %v4223_v15 }
 0x248   : > { %v4599_v59 = vadd.f32 %v2801_v35, %v2581_v39  ;;  %3621 = vmatmul.msk.f32.gmra.mxu1 %vm274_vm1, %v2012_v47  ;;  %3659 = vmatmul.msk.f32.gmra.mxu2 %vm274_vm1, %v2014_v21  ;;  %v2016_v35 = vld [vmem:[%s3836_s5 + $0x104] sm:$0xff] }
 0x249   : > { %3697 = vmatmul.msk.f32.gmra.mxu3 %vm274_vm1, %v2324_v48  ;;  %3735 = vmatmul.msk.f32.gmra.mxu0 %vm274_vm1, %v2634_v60 }
 0x24a   : > { %2927 = vst [vmem:[%s4489_s20 + $0x48] sm:$0xff] %v4599_v59 }
 0x24b   : > { %v2184_v50 = vpop.f32.mrf.mxu2 }
 0x24c   : > { %v2272_v61 = vadd.f32 %v2184_v50, %v1962_v55  ;;  %v2494_v49 = vpop.f32.mrf.mxu3  ;;  %v2327_v55 = vld [vmem:[%s3836_s5 + $0x10d] sm:$0xff] }
 0x24d   : > { %v1877_v3 = vpop.f32.mrf.mxu1  ;;  %v2637_v50 = vld [vmem:[%s3836_s5 + $0x10e] sm:$0xff] }
 0x24e   : > { %v2582_v46 = vadd.f32 %v2494_v49, %v2272_v61  ;;  %v2807_v47 = vpop.f32.mrf.mxu0  ;;  %v1963_v15 = vadd.f32 %v1877_v3, %v4233_v40 }
 0x250   : > { %v4611_v2 = vadd.f32 %v2804_v22, %v2582_v46  ;;  %3622 = vmatmul.msk.f32.gmra.mxu1 %vm274_vm1, %v2013_v5  ;;  %3660 = vmatmul.msk.f32.gmra.mxu2 %vm274_vm1, %v2015_v28  ;;  %v2017_v22 = vld [vmem:[%s3836_s5 + $0x10c] sm:$0xff] }
 0x251   : > { %3698 = vmatmul.msk.f32.gmra.mxu3 %vm274_vm1, %v2325_v8  ;;  %3736 = vmatmul.msk.f32.gmra.mxu0 %vm274_vm1, %v2635_v9 }
 0x252   : > { %2928 = vst [vmem:[%s4489_s20 + $0x50] sm:$0xff] %v4611_v2 }
 0x253   : > { %v2187_v12 = vpop.f32.mrf.mxu2 }
 0x254   : > { %v2273_v20 = vadd.f32 %v2187_v12, %v1963_v15  ;;  %v2497_v56 = vpop.f32.mrf.mxu3  ;;  %v2328_v15 = vld [vmem:[%s3836_s5 + $0x115] sm:$0xff] }
 0x255   : > { %v1880_v26 = vpop.f32.mrf.mxu1  ;;  %v2638_v12 = vld [vmem:[%s3836_s5 + $0x116] sm:$0xff] }
 0x256   : > { %v2583_v11 = vadd.f32 %v2497_v56, %v2273_v20  ;;  %v2810_v5 = vpop.f32.mrf.mxu0  ;;  %v1964_v40 = vadd.f32 %v1880_v26, %v4243_v62 }
 0x258   : > { %v4623_v58 = vadd.f32 %v2807_v47, %v2583_v11  ;;  %3623 = vmatmul.msk.f32.gmra.mxu1 %vm274_vm1, %v2014_v21  ;;  %3661 = vmatmul.msk.f32.gmra.mxu2 %vm274_vm1, %v2016_v35  ;;  %v2018_v47 = vld [vmem:[%s3836_s5 + $0x114] sm:$0xff] }
 0x259   : > { %3699 = vmatmul.msk.f32.gmra.mxu3 %vm274_vm1, %v2326_v33  ;;  %3737 = vmatmul.msk.f32.gmra.mxu0 %vm274_vm1, %v2636_v16 }
 0x25a   : > { %2929 = vst [vmem:[%s4489_s20 + $0x58] sm:$0xff] %v4623_v58 }
 0x25b   : > { %v2190_v42 = vpop.f32.mrf.mxu2 }
 0x25c   : > { %v2274_v43 = vadd.f32 %v2190_v42, %v1964_v40  ;;  %v2500_v39 = vpop.f32.mrf.mxu3  ;;  %v2329_v40 = vld [vmem:[%s3836_s5 + $0x11d] sm:$0xff] }
 0x25d   : > { %v1883_v48 = vpop.f32.mrf.mxu1  ;;  %v2639_v42 = vld [vmem:[%s3836_s5 + $0x11e] sm:$0xff] }
 0x25e   : > { %v2584_v60 = vadd.f32 %v2500_v39, %v2274_v43  ;;  %v2813_v21 = vpop.f32.mrf.mxu0  ;;  %v1965_v62 = vadd.f32 %v1883_v48, %v4253_v6 }
 0x260   : > { %v4635_v61 = vadd.f32 %v2810_v5, %v2584_v60  ;;  %3624 = vmatmul.msk.f32.gmra.mxu1 %vm274_vm1, %v2015_v28  ;;  %3662 = vmatmul.msk.f32.gmra.mxu2 %vm274_vm1, %v2017_v22  ;;  %v2019_v5 = vld [vmem:[%s3836_s5 + $0x11c] sm:$0xff] }
 0x261   : > { %3700 = vmatmul.msk.f32.gmra.mxu3 %vm274_vm1, %v2327_v55  ;;  %3738 = vmatmul.msk.f32.gmra.mxu0 %vm274_vm1, %v2637_v50 }
 0x262   : > { %2930 = vst [vmem:[%s4489_s20 + $0x60] sm:$0xff] %v4635_v61 }
 0x263   : > { %v2193_v49 = vpop.f32.mrf.mxu2 }
 0x264   : > { %v2275_v3 = vadd.f32 %v2193_v49, %v1965_v62  ;;  %v2503_v46 = vpop.f32.mrf.mxu3  ;;  %v2330_v62 = vld [vmem:[%s3836_s5 + $0x125] sm:$0xff] }
 0x265   : > { %v1886_v8 = vpop.f32.mrf.mxu1  ;;  %v2640_v49 = vld [vmem:[%s3836_s5 + $0x126] sm:$0xff] }
 0x266   : > { %v2585_v9 = vadd.f32 %v2503_v46, %v2275_v3  ;;  %v2816_v28 = vpop.f32.mrf.mxu0  ;;  %v1966_v6 = vadd.f32 %v1886_v8, %v4263_v29 }
 0x268   : > { %v4647_v20 = vadd.f32 %v2813_v21, %v2585_v9  ;;  %3625 = vmatmul.msk.f32.gmra.mxu1 %vm274_vm1, %v2016_v35  ;;  %3663 = vmatmul.msk.f32.gmra.mxu2 %vm274_vm1, %v2018_v47  ;;  %v2020_v21 = vld [vmem:[%s3836_s5 + $0x124] sm:$0xff] }
 0x269   : > { %3701 = vmatmul.msk.f32.gmra.mxu3 %vm274_vm1, %v2328_v15  ;;  %3739 = vmatmul.msk.f32.gmra.mxu0 %vm274_vm1, %v2638_v12 }
 0x26a   : > { %2931 = vst [vmem:[%s4489_s20 + $0x68] sm:$0xff] %v4647_v20 }
 0x26b   : > { %v2196_v56 = vpop.f32.mrf.mxu2 }
 0x26c   : > { %v2276_v26 = vadd.f32 %v2196_v56, %v1966_v6  ;;  %v2506_v11 = vpop.f32.mrf.mxu3  ;;  %v2331_v6 = vld [vmem:[%s3836_s5 + $0x12d] sm:$0xff] }
 0x26d   : > { %v1889_v33 = vpop.f32.mrf.mxu1  ;;  %v2641_v56 = vld [vmem:[%s3836_s5 + $0x12e] sm:$0xff] }
 0x26e   : > { %v2586_v16 = vadd.f32 %v2506_v11, %v2276_v26  ;;  %v2819_v35 = vpop.f32.mrf.mxu0  ;;  %v1967_v29 = vadd.f32 %v1889_v33, %v4273_v54 }
 0x270   : > { %v4659_v43 = vadd.f32 %v2816_v28, %v2586_v16  ;;  %3626 = vmatmul.msk.f32.gmra.mxu1 %vm274_vm1, %v2017_v22  ;;  %3664 = vmatmul.msk.f32.gmra.mxu2 %vm274_vm1, %v2019_v5  ;;  %v2021_v28 = vld [vmem:[%s3836_s5 + $0x12c] sm:$0xff] }
 0x271   : > { %3702 = vmatmul.msk.f32.gmra.mxu3 %vm274_vm1, %v2329_v40  ;;  %3740 = vmatmul.msk.f32.gmra.mxu0 %vm274_vm1, %v2639_v42 }
 0x272   : > { %2932 = vst [vmem:[%s4489_s20 + $0x70] sm:$0xff] %v4659_v43 }
 0x273   : > { %v2199_v39 = vpop.f32.mrf.mxu2 }
 0x274   : > { %v2277_v48 = vadd.f32 %v2199_v39, %v1967_v29  ;;  %v2509_v60 = vpop.f32.mrf.mxu3  ;;  %v2332_v29 = vld [vmem:[%s3836_s5 + $0x135] sm:$0xff] }
 0x275   : > { %v1892_v55 = vpop.f32.mrf.mxu1  ;;  %v2642_v39 = vld [vmem:[%s3836_s5 + $0x136] sm:$0xff] }
 0x276   : > { %v2587_v50 = vadd.f32 %v2509_v60, %v2277_v48  ;;  %v2822_v22 = vpop.f32.mrf.mxu0  ;;  %v1968_v54 = vadd.f32 %v1892_v55, %v4283_v13 }
 0x278   : > { %v4671_v3 = vadd.f32 %v2819_v35, %v2587_v50  ;;  %3627 = vmatmul.msk.f32.gmra.mxu1 %vm274_vm1, %v2018_v47  ;;  %3665 = vmatmul.msk.f32.gmra.mxu2 %vm274_vm1, %v2020_v21  ;;  %v2022_v35 = vld [vmem:[%s3836_s5 + $0x134] sm:$0xff] }
 0x279   : > { %3703 = vmatmul.msk.f32.gmra.mxu3 %vm274_vm1, %v2330_v62  ;;  %3741 = vmatmul.msk.f32.gmra.mxu0 %vm274_vm1, %v2640_v49 }
 0x27a   : > { %2933 = vst [vmem:[%s4489_s20 + $0x78] sm:$0xff] %v4671_v3 }
 0x27b   : > { %v2202_v46 = vpop.f32.mrf.mxu2 }
 0x27c   : > { %v2278_v8 = vadd.f32 %v2202_v46, %v1968_v54  ;;  %v2512_v9 = vpop.f32.mrf.mxu3  ;;  %v2333_v54 = vld [vmem:[%s3836_s5 + $0x13d] sm:$0xff] }
 0x27d   : > { %v1895_v15 = vpop.f32.mrf.mxu1 }
 0x27e   : > { %v2588_v12 = vadd.f32 %v2512_v9, %v2278_v8  ;;  %v2825_v47 = vpop.f32.mrf.mxu0  ;;  %v1969_v13 = vadd.f32 %v1895_v15, %v4293_v7 }
 0x280   : > { %v4683_v26 = vadd.f32 %v2822_v22, %v2588_v12  ;;  %3628 = vmatmul.msk.f32.gmra.mxu1 %vm274_vm1, %v2019_v5  ;;  %3666 = vmatmul.msk.f32.gmra.mxu2 %vm274_vm1, %v2021_v28  ;;  %v2023_v22 = vld [vmem:[%s3836_s5 + $0x13c] sm:$0xff] }
 0x281   : > { %3704 = vmatmul.msk.f32.gmra.mxu3 %vm274_vm1, %v2331_v6  ;;  %3742 = vmatmul.msk.f32.gmra.mxu0 %vm274_vm1, %v2641_v56 }
 0x282   : > { %2934 = vst [vmem:[%s4489_s20 + $0x80] sm:$0xff] %v4683_v26 }
 0x283   : > { %v2205_v11 = vpop.f32.mrf.mxu2 }
 0x284   : > { %v2279_v33 = vadd.f32 %v2205_v11, %v1969_v13  ;;  %v2515_v16 = vpop.f32.mrf.mxu3 }
 0x285   : > { %v1898_v40 = vpop.f32.mrf.mxu1 }
 0x286   : > { %v2589_v42 = vadd.f32 %v2515_v16, %v2279_v33  ;;  %v2828_v5 = vpop.f32.mrf.mxu0  ;;  %v1970_v7 = vadd.f32 %v1898_v40, %v4303_v25 }
 0x288   : > { %v4695_v48 = vadd.f32 %v2825_v47, %v2589_v42  ;;  %3629 = vmatmul.msk.f32.gmra.mxu1 %vm274_vm1, %v2020_v21  ;;  %3667 = vmatmul.msk.f32.gmra.mxu2 %vm274_vm1, %v2022_v35  ;;  %v2643_v21 = vld [vmem:[%s3836_s5 + $0x13e] sm:$0xff] }
 0x289   : > { %3705 = vmatmul.msk.f32.gmra.mxu3 %vm274_vm1, %v2332_v29  ;;  %3743 = vmatmul.msk.f32.gmra.mxu0 %vm274_vm1, %v2642_v39 }
 0x28a   : > { %2935 = vst [vmem:[%s4489_s20 + $0x88] sm:$0xff] %v4695_v48 }
 0x28b   : > { %v2208_v60 = vpop.f32.mrf.mxu2 }
 0x28c   : > { %v2280_v55 = vadd.f32 %v2208_v60, %v1970_v7  ;;  %v2518_v50 = vpop.f32.mrf.mxu3 }
 0x28d   : > { %v1901_v62 = vpop.f32.mrf.mxu1 }
 0x28e   : > { %v2590_v49 = vadd.f32 %v2518_v50, %v2280_v55  ;;  %v2831_v46 = vpop.f32.mrf.mxu0  ;;  %v1971_v25 = vadd.f32 %v1901_v62, %v4314_v32 }
 0x290   : > { %v4707_v8 = vadd.f32 %v2828_v5, %v2590_v49  ;;  %3630 = vmatmul.msk.f32.gmra.mxu1 %vm274_vm1, %v2021_v28  ;;  %3668 = vmatmul.msk.f32.gmra.mxu2 %vm274_vm1, %v2023_v22 }
 0x291   : > { %3706 = vmatmul.msk.f32.gmra.mxu3 %vm274_vm1, %v2333_v54  ;;  %3744 = vmatmul.msk.f32.gmra.mxu0 %vm274_vm1, %v2643_v21 }
 0x292   : > { %2936 = vst [vmem:[%s4489_s20 + $0x90] sm:$0xff] %v4707_v8 }
 0x293   : > { %v2211_v9 = vpop.f32.mrf.mxu2 }
 0x294   : > { %v2281_v15 = vadd.f32 %v2211_v9, %v1971_v25  ;;  %v2521_v12 = vpop.f32.mrf.mxu3 }
 0x295   : > { %v1904_v6 = vpop.f32.mrf.mxu1 }
 0x296   : > { %v2591_v47 = vadd.f32 %v2521_v12, %v2281_v15  ;;  %v2834_v56 = vpop.f32.mrf.mxu0  ;;  %v1972_v28 = vadd.f32 %v1904_v6, %v4325_v57 }
 0x298   : > { %v4716_v13 = vadd.f32 %v2831_v46, %v2591_v47 }
 0x29a   : > { %2937 = vst [vmem:[%s4489_s20 + $0x98] sm:$0xff] %v4716_v13 }
 0x29b   : > { %v2214_v11 = vpop.f32.mrf.mxu2 }
 0x29c   : > { %v2282_v33 = vadd.f32 %v2214_v11, %v1972_v28  ;;  %v2524_v16 = vpop.f32.mrf.mxu3 }
 0x29d   : > { %v1907_v32 = vpop.f32.mrf.mxu1 }
 0x29e   : > { %v2592_v40 = vadd.f32 %v2524_v16, %v2282_v33  ;;  %v2837_v35 = vpop.f32.mrf.mxu0  ;;  %v1973_v29 = vadd.f32 %v1907_v32, %v4335_v19 }
 0x2a0   : > { %v4721_v42 = vadd.f32 %v2834_v56, %v2592_v40 }
 0x2a2   : > { %2938 = vst [vmem:[%s4489_s20 + $0xa0] sm:$0xff] %v4721_v42 }
 0x2a3   : > { %v2217_v5 = vpop.f32.mrf.mxu2 }
 0x2a4   : > { %v2283_v39 = vadd.f32 %v2217_v5, %v1973_v29  ;;  %v2527_v7 = vpop.f32.mrf.mxu3 }
 0x2a5   : > { %v1910_v57 = vpop.f32.mrf.mxu1 }
 0x2a6   : > { %v2593_v60 = vadd.f32 %v2527_v7, %v2283_v39  ;;  %v2840_v55 = vpop.f32.mrf.mxu0  ;;  %v1974_v62 = vadd.f32 %v1910_v57, %v4345_v41 }
 0x2a8   : > { %v4726_v50 = vadd.f32 %v2837_v35, %v2593_v60 }
 0x2aa   : > { %2939 = vst [vmem:[%s4489_s20 + $0xa8] sm:$0xff] %v4726_v50 }
 0x2ab   : > { %v2220_v22 = vpop.f32.mrf.mxu2 }
 0x2ac   : > { %v2284_v49 = vadd.f32 %v2220_v22, %v1974_v62  ;;  %v2530_v54 = vpop.f32.mrf.mxu3 }
 0x2ad   : > { %v1913_v19 = vpop.f32.mrf.mxu1 }
 0x2ae   : > { %v2594_v46 = vadd.f32 %v2530_v54, %v2284_v49  ;;  %v2843_v21 = vpop.f32.mrf.mxu0  ;;  %v1975_v9 = vadd.f32 %v1913_v19, %v4355_v0 }
 0x2b0   : > { %v4731_v25 = vadd.f32 %v2840_v55, %v2594_v46 }
 0x2b2   : > { %2940 = vst [vmem:[%s4489_s20 + $0xb0] sm:$0xff] %v4731_v25 }
 0x2b3   : > { %v2223_v15 = vpop.f32.mrf.mxu2 }
 0x2b4   : > { %v2285_v12 = vadd.f32 %v2223_v15, %v1975_v9  ;;  %v2533_v6 = vpop.f32.mrf.mxu3 }
 0x2b5   : > { %v1916_v41 = vpop.f32.mrf.mxu1 }
 0x2b6   : > { %v2595_v47 = vadd.f32 %v2533_v6, %v2285_v12  ;;  %v2846_v56 = vpop.f32.mrf.mxu0  ;;  %v1976_v11 = vadd.f32 %v1916_v41, %v4365_v53 }
 0x2b8   : > { %v4736_v28 = vadd.f32 %v2843_v21, %v2595_v47 }
 0x2ba   : > { %2941 = vst [vmem:[%s4489_s20 + $0xb8] sm:$0xff] %v4736_v28 }
 0x2bb   : > { %v2226_v33 = vpop.f32.mrf.mxu2 }
 0x2bc   : > { %v2286_v16 = vadd.f32 %v2226_v33, %v1976_v11  ;;  %v2536_v32 = vpop.f32.mrf.mxu3 }
 0x2bd   : > { %v1919_v0 = vpop.f32.mrf.mxu1 }
 0x2be   : > { %v2596_v40 = vadd.f32 %v2536_v32, %v2286_v16  ;;  %v2849_v35 = vpop.f32.mrf.mxu0  ;;  %v1977_v5 = vadd.f32 %v1919_v0, %v4375_v63 }
 0x2c0   : > { %v4741_v29 = vadd.f32 %v2846_v56, %v2596_v40 }
 0x2c2   : > { %2942 = vst [vmem:[%s4489_s20 + $0xc0] sm:$0xff] %v4741_v29 }
 0x2c3   : > { %v2229_v39 = vpop.f32.mrf.mxu2 }
 0x2c4   : > { %v2287_v7 = vadd.f32 %v2229_v39, %v1977_v5  ;;  %v2539_v57 = vpop.f32.mrf.mxu3 }
 0x2c5   : > { %v1922_v53 = vpop.f32.mrf.mxu1 }
 0x2c6   : > { %v2597_v60 = vadd.f32 %v2539_v57, %v2287_v7  ;;  %v2852_v55 = vpop.f32.mrf.mxu0  ;;  %v1978_v22 = vadd.f32 %v1922_v53, %v4385_v4 }
 0x2c8   : > { %v4746_v62 = vadd.f32 %v2849_v35, %v2597_v60 }
 0x2ca   : > { %2943 = vst [vmem:[%s4489_s20 + $0xc8] sm:$0xff] %v4746_v62 }
 0x2cb   : > { %v2232_v49 = vpop.f32.mrf.mxu2 }
 0x2cc   : > { %v2288_v54 = vadd.f32 %v2232_v49, %v1978_v22  ;;  %v2542_v19 = vpop.f32.mrf.mxu3 }
 0x2cd   : > { %v1925_v63 = vpop.f32.mrf.mxu1 }
 0x2ce   : > { %v2598_v46 = vadd.f32 %v2542_v19, %v2288_v54  ;;  %v2855_v21 = vpop.f32.mrf.mxu0  ;;  %v1979_v15 = vadd.f32 %v1925_v63, %v4395_v27 }
 0x2d0   : > { %v4751_v9 = vadd.f32 %v2852_v55, %v2598_v46 }
 0x2d2   : > { %2944 = vst [vmem:[%s4489_s20 + $0xd0] sm:$0xff] %v4751_v9 }
 0x2d3   : > { %v2235_v12 = vpop.f32.mrf.mxu2 }
 0x2d4   : > { %v2289_v6 = vadd.f32 %v2235_v12, %v1979_v15  ;;  %v2545_v41 = vpop.f32.mrf.mxu3 }
 0x2d5   : > { %v1928_v4 = vpop.f32.mrf.mxu1 }
 0x2d6   : > { %v2599_v47 = vadd.f32 %v2545_v41, %v2289_v6  ;;  %v2858_v56 = vpop.f32.mrf.mxu0  ;;  %v1980_v33 = vadd.f32 %v1928_v4, %v4405_v18 }
 0x2d8   : > { %v4756_v11 = vadd.f32 %v2855_v21, %v2599_v47 }
 0x2da   : > { %2945 = vst [vmem:[%s4489_s20 + $0xd8] sm:$0xff] %v4756_v11 }
 0x2db   : > { %v2238_v16 = vpop.f32.mrf.mxu2 }
 0x2dc   : > { %v2290_v32 = vadd.f32 %v2238_v16, %v1980_v33  ;;  %v2548_v0 = vpop.f32.mrf.mxu3 }
 0x2dd   : > { %v1931_v27 = vpop.f32.mrf.mxu1 }
 0x2de   : > { %v2600_v40 = vadd.f32 %v2548_v0, %v2290_v32  ;;  %v2861_v35 = vpop.f32.mrf.mxu0  ;;  %v1981_v39 = vadd.f32 %v1931_v27, %v4415_v14 }
 0x2e0   : > { %v4761_v5 = vadd.f32 %v2858_v56, %v2600_v40 }
 0x2e2   : > { %2946 = vst [vmem:[%s4489_s20 + $0xe0] sm:$0xff] %v4761_v5 }
 0x2e3   : > { %v2241_v7 = vpop.f32.mrf.mxu2 }
 0x2e4   : > { %v2291_v57 = vadd.f32 %v2241_v7, %v1981_v39  ;;  %v2551_v53 = vpop.f32.mrf.mxu3 }
 0x2e5   : > { %v1934_v18 = vpop.f32.mrf.mxu1 }
 0x2e6   : > { %v2601_v60 = vadd.f32 %v2551_v53, %v2291_v57  ;;  %v2864_v55 = vpop.f32.mrf.mxu0  ;;  %v1982_v49 = vadd.f32 %v1934_v18, %v4425_v34 }
 0x2e8   : > { %v4766_v22 = vadd.f32 %v2861_v35, %v2601_v60 }
 0x2ea   : > { %2947 = vst [vmem:[%s4489_s20 + $0xe8] sm:$0xff] %v4766_v22 }
 0x2eb   : > { %v2244_v54 = vpop.f32.mrf.mxu2 }
 0x2ec   : > { %v2292_v19 = vadd.f32 %v2244_v54, %v1982_v49  ;;  %v2554_v63 = vpop.f32.mrf.mxu3 }
 0x2ed   : > { %v1937_v14 = vpop.f32.mrf.mxu1 }
 0x2ee   : > { %v2602_v46 = vadd.f32 %v2554_v63, %v2292_v19  ;;  %v2867_v21 = vpop.f32.mrf.mxu0  ;;  %v1983_v12 = vadd.f32 %v1937_v14, %v4435_v23 }
 0x2f0   : > { %v4771_v15 = vadd.f32 %v2864_v55, %v2602_v46 }
 0x2f2   : > { %2948 = vst [vmem:[%s4489_s20 + $0xf0] sm:$0xff] %v4771_v15 }
 0x2f3   : > { %v2247_v6 = vpop.f32.mrf.mxu2 }
 0x2f4   : > { %v2293_v41 = vadd.f32 %v2247_v6, %v1983_v12  ;;  %v2557_v4 = vpop.f32.mrf.mxu3 }
 0x2f5   : > { %v1940_v34 = vpop.f32.mrf.mxu1 }
 0x2f6   : > { %v2603_v47 = vadd.f32 %v2557_v4, %v2293_v41  ;;  %v2870_v56 = vpop.f32.mrf.mxu0  ;;  %v1984_v16 = vadd.f32 %v1940_v34, %v4445_v30 }
 0x2f8   : > { %v4776_v33 = vadd.f32 %v2867_v21, %v2603_v47 }
 0x2fa   : > { %2949 = vst [vmem:[%s4489_s20 + $0xf8] sm:$0xff] %v4776_v33 }
 0x2fb   : > { %v2250_v32 = vpop.f32.mrf.mxu2 }
 0x2fc   : > { %v2294_v0 = vadd.f32 %v2250_v32, %v1984_v16  ;;  %v2560_v27 = vpop.f32.mrf.mxu3 }
 0x2fd   : > { %v1943_v23 = vpop.f32.mrf.mxu1 }
 0x2fe   : > { %v2604_v40 = vadd.f32 %v2560_v27, %v2294_v0  ;;  %v2873_v39 = vpop.f32.mrf.mxu0  ;;  %v1985_v7 = vadd.f32 %v1943_v23, %v4455_v37 }
 0x300   : > { %v4781_v35 = vadd.f32 %v2870_v56, %v2604_v40 }
 0x302   : > { %2950 = vst [vmem:[%s4489_s20 + $0x100] sm:$0xff] %v4781_v35 }
 0x303   : > { %v2253_v57 = vpop.f32.mrf.mxu2 }
 0x304   : > { %v2295_v53 = vadd.f32 %v2253_v57, %v1985_v7  ;;  %v2563_v18 = vpop.f32.mrf.mxu3 }
 0x305   : > { %v1946_v30 = vpop.f32.mrf.mxu1 }
 0x306   : > { %v2605_v60 = vadd.f32 %v2563_v18, %v2295_v53  ;;  %v1986_v49 = vadd.f32 %v1946_v30, %v4465_v44  ;;  %v2876_v19 = vpop.f32.mrf.mxu0 }
 0x308   : > { %v4786_v55 = vadd.f32 %v2873_v39, %v2605_v60 }
 0x30a   : > { %2951 = vst [vmem:[%s4489_s20 + $0x108] sm:$0xff] %v4786_v55 }
 0x30b   : > { %v2256_v54 = vpop.f32.mrf.mxu2 }
 0x30c   : > { %v2296_v63 = vadd.f32 %v2256_v54, %v1986_v49  ;;  %v2566_v14 = vpop.f32.mrf.mxu3 }
 0x30d   : > { %v1949_v46 = vpop.f32.mrf.mxu1 }
 0x30e   : > { %v2606_v37 = vadd.f32 %v2566_v14, %v2296_v63  ;;  %v1987_v12 = vadd.f32 %v1949_v46, %v4476_v51  ;;  %v2879_v34 = vpop.f32.mrf.mxu0 }
 0x310   : > { %v4791_v21 = vadd.f32 %v2876_v19, %v2606_v37 }
 0x312   : > { %2952 = vst [vmem:[%s4489_s20 + $0x110] sm:$0xff] %v4791_v21 }
 0x313   : > { %v2259_v6 = vpop.f32.mrf.mxu2 }
 0x314   : > { %v2297_v41 = vadd.f32 %v2259_v6, %v1987_v12  ;;  %v2569_v4 = vpop.f32.mrf.mxu3 }
 0x316   : > { %v2607_v44 = vadd.f32 %v2569_v4, %v2297_v41  ;;  %2957 = sbr.rel (%p3745_p5) target bundleno = 797 (0x31d), region = 36 }
 0x318   : > { %v4796_v47 = vadd.f32 %v2879_v34, %v2607_v44 }
 0x31a   : > { %2953 = vst [vmem:[%s4489_s20 + $0x118] sm:$0xff] %v4796_v47 }
 0x31b   : > { %v3772_v56 = vmov 0.0  }
 0x31c   : > { %2958 = vst [vmem:[%s5003_s4] sm:$0x3] %v3772_v56 }
 0x31d PF: > { %v2963_v51 = vld [vmem:[%s5001_s2 + $0x20] sm:$0xff]  ;;  %v2961_v16 = vld [vmem:[%s5001_s2 + $0x10] sm:$0xff]  ;;  %v3773_v0 = vmov 0   ;;  %v2964_v27 = vld [vmem:[%s5001_s2 + $0x28] sm:$0xff] }
 0x31e   : > { %v2959_v32 = vld [vmem:[%s5001_s2] sm:$0xff]  ;;  %3763 = vset.pattern.permute.xlu2 %v3773_v0  ;;  %3762 = vset.pattern.permute.xlu1 %v3773_v0  ;;  %v2962_v23 = vld [vmem:[%s5001_s2 + $0x18] sm:$0xff]  ;;  %v2960_v40 = vld [vmem:[%s5001_s2 + $0x8] sm:$0xff] }
 0x31f   : > { %3761 = vset.pattern.permute.xlu0 %v3773_v0  ;;  %3017 = vperm.xlu2 %3763, %v2963_v51   ;;  %v2967_v39 = vld [vmem:[%s5001_s2 + $0x40] sm:$0xff]  ;;  %v2966_v7 = vld [vmem:[%s5001_s2 + $0x38] sm:$0xff]  ;;  %v2965_v57 = vld [vmem:[%s5001_s2 + $0x30] sm:$0xff] }
 0x320   : > { %3007 = vperm.xlu1 %3762, %v2961_v16   ;;  %2997 = vperm.xlu0 %3761, %v2959_v32   ;;  %v2970_v53 = vld [vmem:[%s5001_s2 + $0x58] sm:$0xff]  ;;  %v2969_v18 = vld [vmem:[%s5001_s2 + $0x50] sm:$0xff]  ;;  %v2968_v30 = vld [vmem:[%s5001_s2 + $0x48] sm:$0xff] }
 0x321   : > { %v2973_v60 = vld [vmem:[%s5001_s2 + $0x70] sm:$0xff]  ;;  %v2972_v49 = vld [vmem:[%s5001_s2 + $0x68] sm:$0xff]  ;;  %v2971_v54 = vld [vmem:[%s5001_s2 + $0x60] sm:$0xff] }
 0x322   : > { %v2976_v19 = vld [vmem:[%s5001_s2 + $0x88] sm:$0xff]  ;;  %v2975_v63 = vld [vmem:[%s5001_s2 + $0x80] sm:$0xff]  ;;  %v2974_v14 = vld [vmem:[%s5001_s2 + $0x78] sm:$0xff] }
 0x323   : > { %v2979_v37 = vld [vmem:[%s5001_s2 + $0xa0] sm:$0xff]  ;;  %v2978_v46 = vld [vmem:[%s5001_s2 + $0x98] sm:$0xff]  ;;  %v2977_v12 = vld [vmem:[%s5001_s2 + $0x90] sm:$0xff] }
 0x324   : > { %v2982_v6 = vld [vmem:[%s5001_s2 + $0xb8] sm:$0xff]  ;;  %v2981_v41 = vld [vmem:[%s5001_s2 + $0xb0] sm:$0xff]  ;;  %v2980_v4 = vld [vmem:[%s5001_s2 + $0xa8] sm:$0xff] }
 0x325   : > { %v2985_v34 = vld [vmem:[%s5001_s2 + $0xd0] sm:$0xff]  ;;  %v2984_v44 = vld [vmem:[%s5001_s2 + $0xc8] sm:$0xff]  ;;  %v2983_v56 = vld [vmem:[%s5001_s2 + $0xc0] sm:$0xff] }
 0x326   : > { %v2988_v51 = vld [vmem:[%s5001_s2 + $0xe8] sm:$0xff]  ;;  %v2987_v16 = vld [vmem:[%s5001_s2 + $0xe0] sm:$0xff]  ;;  %v2986_v32 = vld [vmem:[%s5001_s2 + $0xd8] sm:$0xff] }
 0x327   : > { %3022 = vperm.xlu2 %3763, %v2964_v27   ;;  %v2991_v0 = vld [vmem:[%s5001_s2 + $0x100] sm:$0xff]  ;;  %v2990_v27 = vld [vmem:[%s5001_s2 + $0xf8] sm:$0xff] }
 0x328   : > { %3012 = vperm.xlu1 %3762, %v2962_v23   ;;  %3002 = vperm.xlu0 %3761, %v2960_v40   ;;  %v2989_v23 = vld [vmem:[%s5001_s2 + $0xf0] sm:$0xff]  ;;  %v2994_v40 = vld [vmem:[%s5001_s2 + $0x118] sm:$0xff] }
 0x32f   : > { %3037 = vperm.xlu2 %3763, %v2967_v39   ;;  %v2993_v39 = vld [vmem:[%s5001_s2 + $0x110] sm:$0xff] }
 0x330   : > { %3032 = vperm.xlu1 %3762, %v2966_v7   ;;  %3027 = vperm.xlu0 %3761, %v2965_v57   ;;  %v2992_v7 = vld [vmem:[%s5001_s2 + $0x108] sm:$0xff] }
 0x337   : > { %3052 = vperm.xlu2 %3763, %v2970_v53  }
 0x338   : > { %3047 = vperm.xlu1 %3762, %v2969_v18   ;;  %3042 = vperm.xlu0 %3761, %v2968_v30  }
 0x33f   : > { %3067 = vperm.xlu2 %3763, %v2973_v60  }
 0x340   : > { %3062 = vperm.xlu1 %3762, %v2972_v49   ;;  %3057 = vperm.xlu0 %3761, %v2971_v54  }
 0x347   : > { %3082 = vperm.xlu2 %3763, %v2976_v19  }
 0x348   : > { %3077 = vperm.xlu1 %3762, %v2975_v63   ;;  %3072 = vperm.xlu0 %3761, %v2974_v14  }
 0x34f   : > { %3097 = vperm.xlu2 %3763, %v2979_v37  }
 0x350   : > { %3092 = vperm.xlu1 %3762, %v2978_v46   ;;  %3087 = vperm.xlu0 %3761, %v2977_v12  }
 0x357   : > { %3112 = vperm.xlu2 %3763, %v2982_v6  }
 0x358   : > { %3107 = vperm.xlu1 %3762, %v2981_v41   ;;  %3102 = vperm.xlu0 %3761, %v2980_v4  }
 0x35f   : > { %3127 = vperm.xlu2 %3763, %v2985_v34  }
 0x360   : > { %3122 = vperm.xlu1 %3762, %v2984_v44   ;;  %3117 = vperm.xlu0 %3761, %v2983_v56  }
 0x367   : > { %3142 = vperm.xlu2 %3763, %v2988_v51  }
 0x368   : > { %3137 = vperm.xlu1 %3762, %v2987_v16   ;;  %3132 = vperm.xlu0 %3761, %v2986_v32  }
 0x36f   : > { %3157 = vperm.xlu2 %3763, %v2991_v0  }
 0x370   : > { %3152 = vperm.xlu1 %3762, %v2990_v27   ;;  %3147 = vperm.xlu0 %3761, %v2989_v23  }
 0x377   : > { %3172 = vperm.xlu2 %3763, %v2994_v40  }
 0x378   : > { %3167 = vperm.xlu1 %3762, %v2993_v39   ;;  %3162 = vperm.xlu0 %3761, %v2992_v7  }
 0x379   : > { %v3018_v57 = vpop.permute.xlu2 %3017 }
 0x37a   : > { %v3179_v4 = vmul.f32 %v3018_v57, %v4539_v24 }
 0x381   : > { %v3023_v53 = vpop.permute.xlu2 %3022 }
 0x382   : > { %v3180_v51 = vmul.f32 %v3023_v53, %v4551_v31 }
 0x384   : > { %v3257_v57 = vmul.f32 %v3180_v51, %v4551_v31 }
 0x389   : > { %v3038_v18 = vpop.permute.xlu2 %3037 }
 0x38a   : > { %v3183_v53 = vmul.f32 %v3038_v18, %v4587_v52 }
 0x391   : > { %v3053_v49 = vpop.permute.xlu2 %3052 }
 0x392   : > { %v3008_v30 = vpop.permute.xlu1 %3007  ;;  %v2998_v60 = vpop.permute.xlu0 %2997 }
 0x393   : > { %v3175_v54 = vmul.f32 %v2998_v60, %v4491_v36  ;;  %v3177_v14 = vmul.f32 %v3008_v30, %v4515_v10 }
 0x395   : > { %v3252_v46 = vmul.f32 %v3175_v54, %v4491_v36  ;;  %v3254_v34 = vmul.f32 %v3177_v14, %v4515_v10  ;;  %v3256_v36 = vmul.f32 %v3179_v4, %v4539_v24 }
 0x399   : > { %v3068_v40 = vpop.permute.xlu2 %3067 }
 0x39a   : > { %v3013_v19 = vpop.permute.xlu1 %3012  ;;  %v3003_v63 = vpop.permute.xlu0 %3002 }
 0x39b   : > { %v3176_v37 = vmul.f32 %v3003_v63, %v4503_v1  ;;  %v3178_v12 = vmul.f32 %v3013_v19, %v4527_v17 }
 0x39d   : > { %v3211_v6 = vadd.f32 %v3176_v37, %v3175_v54  ;;  %v3253_v41 = vmul.f32 %v3176_v37, %v4503_v1  ;;  %v3255_v16 = vmul.f32 %v3178_v12, %v4527_v17  ;;  %v3260_v37 = vmul.f32 %v3183_v53, %v4587_v52 }
 0x39f   : > { %v3212_v44 = vadd.f32 %v3211_v6, %v3177_v14  ;;  %v3288_v56 = vadd.f32 %v3253_v41, %v3252_v46 }
 0x3a1   : > { %v3213_v32 = vadd.f32 %v3212_v44, %v3178_v12  ;;  %v3289_v0 = vadd.f32 %v3288_v56, %v3254_v34  ;;  %v3083_v34 = vpop.permute.xlu2 %3082 }
 0x3a2   : > { %v3033_v27 = vpop.permute.xlu1 %3032  ;;  %v3028_v23 = vpop.permute.xlu0 %3027 }
 0x3a3   : > { %v3290_v39 = vadd.f32 %v3289_v0, %v3255_v16  ;;  %v3214_v7 = vadd.f32 %v3213_v32, %v3179_v4  ;;  %v3181_v1 = vmul.f32 %v3028_v23, %v4563_v38  ;;  %v3182_v10 = vmul.f32 %v3033_v27, %v4575_v45 }
 0x3a5   : > { %v3215_v30 = vadd.f32 %v3214_v7, %v3180_v51  ;;  %v3291_v60 = vadd.f32 %v3290_v39, %v3256_v36  ;;  %v3258_v19 = vmul.f32 %v3181_v1, %v4563_v38  ;;  %v3259_v63 = vmul.f32 %v3182_v10, %v4575_v45 }
 0x3a6   : > { %v3186_v38 = vmul.f32 %v3053_v49, %v4623_v58  ;;  %v3189_v49 = vmul.f32 %v3068_v40, %v4659_v43  ;;  %v3192_v40 = vmul.f32 %v3083_v34, %v4695_v48 }
 0x3a7   : > { %v3292_v17 = vadd.f32 %v3291_v60, %v3257_v57  ;;  %v3216_v54 = vadd.f32 %v3215_v30, %v3181_v1 }
 0x3a8   : > { %v3263_v27 = vmul.f32 %v3186_v38, %v4623_v58  ;;  %v3266_v58 = vmul.f32 %v3189_v49, %v4659_v43  ;;  %v3269_v43 = vmul.f32 %v3192_v40, %v4695_v48 }
 0x3a9   : > { %v3217_v24 = vadd.f32 %v3216_v54, %v3182_v10  ;;  %v3293_v14 = vadd.f32 %v3292_v17, %v3258_v19  ;;  %v3098_v57 = vpop.permute.xlu2 %3097 }
 0x3aa   : > { %v3048_v46 = vpop.permute.xlu1 %3047  ;;  %v3043_v12 = vpop.permute.xlu0 %3042  ;;  %v3195_v34 = vmul.f32 %v3098_v57, %v4721_v42 }
 0x3ab   : > { %v3294_v6 = vadd.f32 %v3293_v14, %v3259_v63  ;;  %v3185_v31 = vmul.f32 %v3048_v46, %v4611_v2  ;;  %v3218_v41 = vadd.f32 %v3217_v24, %v3183_v53  ;;  %v3184_v4 = vmul.f32 %v3043_v12, %v4599_v59 }
 0x3ac   : > { %v3272_v48 = vmul.f32 %v3195_v34, %v4721_v42 }
 0x3ad   : > { %v3295_v18 = vadd.f32 %v3294_v6, %v3260_v37  ;;  %v3219_v44 = vadd.f32 %v3218_v41, %v3184_v4  ;;  %v3261_v56 = vmul.f32 %v3184_v4, %v4599_v59  ;;  %v3262_v45 = vmul.f32 %v3185_v31, %v4611_v2 }
 0x3af   : > { %v3220_v51 = vadd.f32 %v3219_v44, %v3185_v31  ;;  %v3296_v16 = vadd.f32 %v3295_v18, %v3261_v56 }
 0x3b1   : > { %v3297_v52 = vadd.f32 %v3296_v16, %v3262_v45  ;;  %v3221_v36 = vadd.f32 %v3220_v51, %v3186_v38  ;;  %v3113_v12 = vpop.permute.xlu2 %3112 }
 0x3b2   : > { %v3063_v32 = vpop.permute.xlu1 %3062  ;;  %v3058_v0 = vpop.permute.xlu0 %3057 }
 0x3b3   : > { %v3188_v23 = vmul.f32 %v3063_v32, %v4647_v20  ;;  %v3187_v39 = vmul.f32 %v3058_v0, %v4635_v61  ;;  %v3298_v7 = vadd.f32 %v3297_v52, %v3263_v27 }
 0x3b5   : > { %v3222_v1 = vadd.f32 %v3221_v36, %v3187_v39  ;;  %v3264_v59 = vmul.f32 %v3187_v39, %v4635_v61  ;;  %v3265_v2 = vmul.f32 %v3188_v23, %v4647_v20 }
 0x3b7   : > { %v3223_v10 = vadd.f32 %v3222_v1, %v3188_v23  ;;  %v3299_v30 = vadd.f32 %v3298_v7, %v3264_v59  ;;  %v3198_v1 = vmul.f32 %v3113_v12, %v4736_v28 }
 0x3b9   : > { %v3300_v60 = vadd.f32 %v3299_v30, %v3265_v2  ;;  %v3224_v19 = vadd.f32 %v3223_v10, %v3189_v49  ;;  %v3128_v0 = vpop.permute.xlu2 %3127  ;;  %v3275_v42 = vmul.f32 %v3198_v1, %v4736_v28 }
 0x3ba   : > { %v3078_v53 = vpop.permute.xlu1 %3077  ;;  %v3073_v17 = vpop.permute.xlu0 %3072 }
 0x3bb   : > { %v3191_v54 = vmul.f32 %v3078_v53, %v4683_v26  ;;  %v3190_v63 = vmul.f32 %v3073_v17, %v4671_v3  ;;  %v3301_v24 = vadd.f32 %v3300_v60, %v3266_v58 }
 0x3bd   : > { %v3225_v14 = vadd.f32 %v3224_v19, %v3190_v63  ;;  %v3267_v61 = vmul.f32 %v3190_v63, %v4671_v3  ;;  %v3268_v20 = vmul.f32 %v3191_v54, %v4683_v26  ;;  %v3201_v19 = vmul.f32 %v3128_v0, %v4751_v9 }
 0x3bf   : > { %v3226_v37 = vadd.f32 %v3225_v14, %v3191_v54  ;;  %v3302_v46 = vadd.f32 %v3301_v24, %v3267_v61  ;;  %v3278_v28 = vmul.f32 %v3201_v19, %v4751_v9 }
 0x3c1   : > { %v3303_v6 = vadd.f32 %v3302_v46, %v3268_v20  ;;  %v3227_v18 = vadd.f32 %v3226_v37, %v3192_v40  ;;  %v3143_v17 = vpop.permute.xlu2 %3142 }
 0x3c2   : > { %v3093_v31 = vpop.permute.xlu1 %3092  ;;  %v3088_v41 = vpop.permute.xlu0 %3087 }
 0x3c3   : > { %v3194_v4 = vmul.f32 %v3093_v31, %v4716_v13  ;;  %v3193_v44 = vmul.f32 %v3088_v41, %v4707_v8  ;;  %v3304_v56 = vadd.f32 %v3303_v6, %v3269_v43  ;;  %v3204_v31 = vmul.f32 %v3143_v17, %v4766_v22 }
 0x3c5   : > { %v3228_v38 = vadd.f32 %v3227_v18, %v3193_v44  ;;  %v3270_v3 = vmul.f32 %v3193_v44, %v4707_v8  ;;  %v3271_v26 = vmul.f32 %v3194_v4, %v4716_v13  ;;  %v3281_v9 = vmul.f32 %v3204_v31, %v4766_v22 }
 0x3c7   : > { %v3229_v45 = vadd.f32 %v3228_v38, %v3194_v4  ;;  %v3305_v51 = vadd.f32 %v3304_v56, %v3270_v3 }
 0x3c9   : > { %v3306_v16 = vadd.f32 %v3305_v51, %v3271_v26  ;;  %v3230_v23 = vadd.f32 %v3229_v45, %v3195_v34  ;;  %v3158_v41 = vpop.permute.xlu2 %3157 }
 0x3ca   : > { %v3108_v52 = vpop.permute.xlu1 %3107  ;;  %v3103_v32 = vpop.permute.xlu0 %3102  ;;  %v3207_v51 = vmul.f32 %v3158_v41, %v4781_v35 }
 0x3cb   : > { %v3197_v27 = vmul.f32 %v3108_v52, %v4731_v25  ;;  %v3196_v36 = vmul.f32 %v3103_v32, %v4726_v50  ;;  %v3307_v39 = vadd.f32 %v3306_v16, %v3272_v48 }
 0x3cc   : > { %v3284_v22 = vmul.f32 %v3207_v51, %v4781_v35 }
 0x3cd   : > { %v3231_v7 = vadd.f32 %v3230_v23, %v3196_v36  ;;  %v3273_v8 = vmul.f32 %v3196_v36, %v4726_v50  ;;  %v3274_v13 = vmul.f32 %v3197_v27, %v4731_v25 }
 0x3cf   : > { %v3232_v59 = vadd.f32 %v3231_v7, %v3197_v27  ;;  %v3308_v49 = vadd.f32 %v3307_v39, %v3273_v8 }
 0x3d1   : > { %v3309_v57 = vadd.f32 %v3308_v49, %v3274_v13  ;;  %v3233_v60 = vadd.f32 %v3232_v59, %v3198_v1  ;;  %v3173_v32 = vpop.permute.xlu2 %3172 }
 0x3d2   : > { %v3123_v2 = vpop.permute.xlu1 %3122  ;;  %v3118_v10 = vpop.permute.xlu0 %3117  ;;  %v3210_v7 = vmul.f32 %v3173_v32, %v4796_v47 }
 0x3d3   : > { %v3200_v30 = vmul.f32 %v3123_v2, %v4746_v62  ;;  %v3199_v53 = vmul.f32 %v3118_v10, %v4741_v29  ;;  %v3310_v58 = vadd.f32 %v3309_v57, %v3275_v42 }
 0x3d4   : > { %v3287_v49 = vmul.f32 %v3210_v7, %v4796_v47  ;;  %v3332_v47 = vld [vmem:[%s5003_s4 + $0x1] sm:$0x1] }
 0x3d5   : > { %v3234_v54 = vadd.f32 %v3233_v60, %v3199_v53  ;;  %v3276_v50 = vmul.f32 %v3199_v53, %v4741_v29  ;;  %v3277_v25 = vmul.f32 %v3200_v30, %v4746_v62 }
 0x3d7   : > { %v3235_v63 = vadd.f32 %v3234_v54, %v3200_v30  ;;  %v3311_v24 = vadd.f32 %v3310_v58, %v3276_v50 }
 0x3d9   : > { %v3312_v14 = vadd.f32 %v3311_v24, %v3277_v25  ;;  %v3236_v37 = vadd.f32 %v3235_v63, %v3201_v19 }
 0x3da   : > { %v3138_v61 = vpop.permute.xlu1 %3137  ;;  %v3133_v40 = vpop.permute.xlu0 %3132 }
 0x3db   : > { %v3203_v20 = vmul.f32 %v3138_v61, %v4761_v5  ;;  %v3202_v46 = vmul.f32 %v3133_v40, %v4756_v11  ;;  %v3313_v12 = vadd.f32 %v3312_v14, %v3278_v28 }
 0x3dd   : > { %v3237_v6 = vadd.f32 %v3236_v37, %v3202_v46  ;;  %v3279_v29 = vmul.f32 %v3202_v46, %v4756_v11  ;;  %v3280_v62 = vmul.f32 %v3203_v20, %v4761_v5 }
 0x3df   : > { %v3238_v43 = vadd.f32 %v3237_v6, %v3203_v20  ;;  %v3314_v4 = vadd.f32 %v3313_v12, %v3279_v29 }
 0x3e1   : > { %v3315_v18 = vadd.f32 %v3314_v4, %v3280_v62  ;;  %v3239_v3 = vadd.f32 %v3238_v43, %v3204_v31 }
 0x3e2   : > { %v3153_v44 = vpop.permute.xlu1 %3152  ;;  %v3148_v56 = vpop.permute.xlu0 %3147 }
 0x3e3   : > { %v3206_v38 = vmul.f32 %v3153_v44, %v4776_v33  ;;  %v3205_v34 = vmul.f32 %v3148_v56, %v4771_v15  ;;  %v3316_v26 = vadd.f32 %v3315_v18, %v3281_v9 }
 0x3e5   : > { %v3240_v45 = vadd.f32 %v3239_v3, %v3205_v34  ;;  %v3282_v11 = vmul.f32 %v3205_v34, %v4771_v15  ;;  %v3283_v5 = vmul.f32 %v3206_v38, %v4776_v33 }
 0x3e7   : > { %v3241_v16 = vadd.f32 %v3240_v45, %v3206_v38  ;;  %v3317_v52 = vadd.f32 %v3316_v26, %v3282_v11 }
 0x3e9   : > { %v3318_v48 = vadd.f32 %v3317_v52, %v3283_v5  ;;  %v3242_v36 = vadd.f32 %v3241_v16, %v3207_v51 }
 0x3ea   : > { %v3168_v0 = vpop.permute.xlu1 %3167  ;;  %v3163_v27 = vpop.permute.xlu0 %3162 }
 0x3eb   : > { %v3209_v23 = vmul.f32 %v3168_v0, %v4791_v21  ;;  %v3208_v39 = vmul.f32 %v3163_v27, %v4786_v55  ;;  %v3319_v15 = vadd.f32 %v3318_v48, %v3284_v22 }
 0x3ed   : > { %v3243_v8 = vadd.f32 %v3242_v36, %v3208_v39  ;;  %v3285_v1 = vmul.f32 %v3208_v39, %v4786_v55  ;;  %v3286_v33 = vmul.f32 %v3209_v23, %v4791_v21  ;;  %v3329_v55 = vld [vmem:[%s5003_s4] sm:$0x1] }
 0x3ef   : > { %v3244_v13 = vadd.f32 %v3243_v8, %v3209_v23  ;;  %v3320_v59 = vadd.f32 %v3319_v15, %v3285_v1 }
 0x3f1   : > { %v3245_v57 = vadd.f32 %v3244_v13, %v3210_v7  ;;  %v3321_v2 = vadd.f32 %v3320_v59, %v3286_v33 }
 0x3f3   : > { %v3246_v35 = vrot.slane %v3245_v57, 4  ;;  %v3322_v10 = vadd.f32 %v3321_v2, %v3287_v49 }
 0x3f5   : > { %v3247_v42 = vadd.f32 %v3246_v35, %v3245_v57  ;;  %v3323_v30 = vrot.slane %v3322_v10, 4 }
 0x3f7   : > { %v3248_v60 = vrot.slane %v3247_v42, 2  ;;  %v3324_v53 = vadd.f32 %v3323_v30, %v3322_v10 }
 0x3f9   : > { %v3249_v17 = vadd.f32 %v3248_v60, %v3247_v42  ;;  %v3325_v58 = vrot.slane %v3324_v53, 2 }
 0x3fb   : > { %v3250_v54 = vrot.slane %v3249_v17, 1  ;;  %v3326_v50 = vadd.f32 %v3325_v58, %v3324_v53 }
 0x3fd   : > { %v3251_v21 = vadd.f32 %v3250_v54, %v3249_v17  ;;  %v3327_v19 = vrot.slane %v3326_v50, 1 }
 0x3ff   : > { %v3328_v25 = vadd.f32 %v3327_v19, %v3326_v50  ;;  %v3330_v63 = vadd.f32 %v3329_v55, %v3251_v21 }
 0x401   : > { %3331 = vst [vmem:[%s5003_s4] sm:$0x1] %v3330_v63  ;;  %v3333_v24 = vadd.f32 %v3332_v47, %v3328_v25 }
 0x403   : > { %3334 = vst [vmem:[%s5003_s4 + $0x1] sm:$0x1] %v3333_v24 }
 0x404 PF: > { %s15_s15 = sadd.s32 1, %s3770_s15  }
 0x405   : > { %p12_p6 = scmp.ge.s32.totalorder %s15_s15, 4  }
 0x407   :  { %14 = sbr.rel (!%p12_p6) target bundleno = 1 (0x1), region = 82 }

</bundles_post_ra>
